<compile_context>
chip_gen: v7x
topology: tpu7x:2x2x1
jax: 0.10.0
libtpu: 0.0.40
codegen_flags: <defaults>
</compile_context>

<pallas_src>
import functools

import jax
import jax.numpy as jnp
from jax import lax
from jax.experimental import pallas as pl
from jax.experimental.pallas import tpu as pltpu


# ---------------------------------------------------------------------------
# Fused kernel: conv1 + ReLU -> conv2 + ReLU -> fc -> discriminator
# ---------------------------------------------------------------------------
def _classifier_fused_kernel(x_ref, w1_ref, b1_ref, w2_ref, b2_ref,
                             wfc_ref, fcb_ref, wd_ref, db_ref,
                             enc_ref, pred_ref, yflat_ref,
                             *, kh, w_dim, c1, c2):
    n_batch = x_ref.shape[0]
    hw = x_ref.shape[2]                       # H * W
    s1 = hw - (kh - 1) * w_dim                # OH1 * W  (valid conv along H, kw=1)
    s2 = s1 - (kh - 1) * w_dim                # OH2 * W

    # Hoisted broadcasts / loads shared by all samples.
    b1_b = jnp.broadcast_to(b1_ref[...], (c1, s1))     # (16, 276) f32
    b2_b = jnp.broadcast_to(b2_ref[...], (c2, s2))     # (32, 252) f32
    w2m = w2_ref[...]                                  # (32, 80)  bf16

    for n in range(n_batch):                           # tiny static batch -> unroll
        xs = x_ref[n]                                  # (1, H*W) f32

        # ---- conv1 + ReLU on the VPU: kh shifted broadcast-FMAs (f32) ----------
        acc1 = b1_b
        for dh in range(kh):
            acc1 = acc1 + w1_ref[dh] * xs[:, dh * w_dim: dh * w_dim + s1]
        y1 = jnp.maximum(acc1, 0.0).astype(jnp.bfloat16)          # (16, 276)

        # ---- conv2 + ReLU: single K = kh*c1 = 80 MXU matmul (f32 acc) -----------
        y1_stack = jnp.concatenate(
            [y1[:, dh * w_dim: dh * w_dim + s2] for dh in range(kh)], axis=0)
        acc2 = jnp.dot(w2m, y1_stack,
                       preferred_element_type=jnp.float32) + b2_b  # (32, 252)
        y2 = jnp.maximum(acc2, 0.0).astype(jnp.bfloat16)           # (32, 252)

        # ---- flatten (channels-major == PyTorch NCHW flatten) into scratch -----
        for c in range(c2):
            yflat_ref[n, pl.ds(c * s2, s2)] = y2[c]

    # ---- fc: ONE batched rhs-transposed matmul, K = c2*s2 = 8064 ---------------
    yf = yflat_ref[...]                                            # (N, 8064) bf16
    enc = lax.dot_general(
        yf, wfc_ref[...],
        dimension_numbers=(((1,), (1,)), ((), ())),                # contract last dims
        preferred_element_type=jnp.float32) + fcb_ref[...]         # (N, enc) f32

    # ---- discriminator (Dropout is identity in eval mode), batched -------------
    # TODO(synk): training-mode dropout would need a pltpu.prng_* Bernoulli mask.
    logits = jnp.dot(enc.astype(jnp.bfloat16), wd_ref[...],
                     preferred_element_type=jnp.float32) + db_ref[...]

    enc_ref[...] = enc                                             # single dense stores
    pred_ref[...] = logits


def make_classifier_forward(n_classes, enc_dim, input_shape, *, kh=5, c1=16, c2=32):
    c_in, h, w = input_shape
    assert c_in == 1, "Encoder expects a single input channel"
    oh2 = h - 2 * (kh - 1)
    s2 = oh2 * w

    kernel = functools.partial(_classifier_fused_kernel,
                               kh=kh, w_dim=w, c1=c1, c2=c2)

    def forward(prep, x):
        n = x.shape[0]
        x_k = x.reshape(n, 1, h * w).astype(jnp.float32)    # (N, 1, H*W)
        encoded, pred = pl.pallas_call(
            kernel,
            out_shape=(jax.ShapeDtypeStruct((n, enc_dim), jnp.float32),
                       jax.ShapeDtypeStruct((n, n_classes), jnp.float32)),
            scratch_shapes=[pltpu.VMEM((n, c2 * s2), jnp.bfloat16)],
        )(x_k, prep["w1"], prep["b1"], prep["w2"], prep["b2"],
          prep["wfc"], prep["fcb"], prep["wd"], prep["db"])
        return encoded, pred

    return forward


# ---------------------------------------------------------------------------
# Parameters: PyTorch layouts -> kernel layouts/dtypes (one-time, outside jit)
# ---------------------------------------------------------------------------
def init_params(key, *, n_classes, enc_dim, input_shape, kh=5, c1=16, c2=32):
    """Synthetic parameters in PyTorch layouts (Conv: OIHW, Linear: (out, in))."""
    c_in, h, w = input_shape
    oh2 = h - 2 * (kh - 1)
    flat_dim = c2 * oh2 * w
    ks = jax.random.split(key, 8)
    s = 0.05
    return {
        "conv1_w": s * jax.random.normal(ks[0], (c1, c_in, kh, 1), jnp.float32),
        "conv1_b": s * jax.random.normal(ks[1], (c1,), jnp.float32),
        "conv2_w": s * jax.random.normal(ks[2], (c2, c1, kh, 1), jnp.float32),
        "conv2_b": s * jax.random.normal(ks[3], (c2,), jnp.float32),
        "fc_w":    s * jax.random.normal(ks[4], (enc_dim, flat_dim), jnp.float32),
        "fc_b":    s * jax.random.normal(ks[5], (enc_dim,), jnp.float32),
        "disc_w":  s * jax.random.normal(ks[6], (n_classes, enc_dim), jnp.float32),
        "disc_b":  s * jax.random.normal(ks[7], (n_classes,), jnp.float32),
    }


def prepare_params(params):
    """Convert PyTorch-layout weights to the fused kernel's layouts/dtypes."""
    c1_out, _, kh, _ = params["conv1_w"].shape             # (16, 1, 5, 1)
    c2_out = params["conv2_w"].shape[0]                    # 32
    enc_dim, _ = params["fc_w"].shape                      # (enc, C2*OH2*W)
    n_classes = params["disc_w"].shape[0]

    # conv1: (C1, 1, kh, 1) -> (kh, C1, 1)  (VPU broadcast-FMA layout)
    w1 = params["conv1_w"].reshape(c1_out, kh).T.reshape(kh, c1_out, 1)
    # conv2: (C2, C1, kh, 1) -> (C2, kh*C1), matching the sublane-stacked y1 slices
    # (row dh*C1 + c1 of the stack is y1[c1, p + dh*W]).
    w2 = params["conv2_w"][..., 0].transpose(0, 2, 1).reshape(c2_out, kh * c1_out)
    return {
        "w1":  w1.astype(jnp.float32),                                     # VPU: f32
        "b1":  params["conv1_b"].reshape(c1_out, 1).astype(jnp.float32),
        "w2":  w2.astype(jnp.bfloat16),                                    # MXU: bf16
        "b2":  params["conv2_b"].reshape(c2_out, 1).astype(jnp.float32),
        "wfc": params["fc_w"].astype(jnp.bfloat16),        # (enc, 8064): lane-dense
        "fcb": params["fc_b"].reshape(1, enc_dim).astype(jnp.float32),
        "wd":  params["disc_w"].T.astype(jnp.bfloat16),    # (enc, n_classes) bf16
        "db":  params["disc_b"].reshape(1, n_classes).astype(jnp.float32),
    }


# ---------------------------------------------------------------------------
# Pure-JAX reference (for correctness check only)
# ---------------------------------------------------------------------------
def reference_forward(params, x):
    def conv_relu(h, w_, b_):
        out = jax.lax.conv_general_dilated(
            h, w_, window_strides=(1, 1), padding="VALID",
            dimension_numbers=("NCHW", "OIHW", "NCHW"))
        return jax.nn.relu(out + b_[None, :, None, None])

    h = conv_relu(x, params["conv1_w"], params["conv1_b"])
    h = conv_relu(h, params["conv2_w"], params["conv2_b"])
    hf = h.reshape(h.shape[0], -1)
    enc = hf @ params["fc_w"].T + params["fc_b"]
    pred = enc @ params["disc_w"].T + params["disc_b"]
    return enc, pred


if __name__ == "__main__":
    n_classes = 4
    enc_dim = 32
    input_shape = (1, 50, 6)      # (C, H, W) — module default
    batch = 2

    key = jax.random.PRNGKey(0)
    k_param, k_x = jax.random.split(key)
    params = init_params(k_param, n_classes=n_classes, enc_dim=enc_dim,
                         input_shape=input_shape)
    X = jax.random.normal(k_x, (batch,) + input_shape, jnp.float32)   # NCHW

    prep = prepare_params(params)     # one-time layout / bf16 conversion
    forward = jax.jit(make_classifier_forward(n_classes, enc_dim, input_shape))

    encoded, pred = forward(prep, X)
    jax.block_until_ready((encoded, pred))

    assert encoded.shape == (batch, enc_dim)
    assert pred.shape == (batch, n_classes)

    enc_ref, pred_ref = reference_forward(params, X)
    assert jnp.allclose(encoded, enc_ref, atol=1e-2, rtol=1e-2), (
        f"encoded mismatch, max abs err {jnp.max(jnp.abs(encoded - enc_ref))}")
    assert jnp.allclose(pred, pred_ref, atol=1e-2, rtol=1e-2), (
        f"pred mismatch, max abs err {jnp.max(jnp.abs(pred - pred_ref))}")

    print("KERNEL_OK")
</pallas_src>

<mosaic_0001>
module attributes {stable_mosaic.version = 11 : i64} {
  func.func @_classifier_fused_kernel(%arg0: memref<2x1x300xf32, #tpu.memory_space<vmem>>, %arg1: memref<5x16x1xf32, #tpu.memory_space<vmem>>, %arg2: memref<16x1xf32, #tpu.memory_space<vmem>>, %arg3: memref<32x80xbf16, #tpu.memory_space<vmem>>, %arg4: memref<32x1xf32, #tpu.memory_space<vmem>>, %arg5: memref<32x8064xbf16, #tpu.memory_space<vmem>>, %arg6: memref<1x32xf32, #tpu.memory_space<vmem>>, %arg7: memref<32x4xbf16, #tpu.memory_space<vmem>>, %arg8: memref<1x4xf32, #tpu.memory_space<vmem>>, %arg9: memref<2x32xf32, #tpu.memory_space<vmem>>, %arg10: memref<2x4xf32, #tpu.memory_space<vmem>>, %arg11: memref<2x8064xbf16, #tpu.memory_space<vmem>>) attributes {dimension_semantics = [], scalar_prefetch = 0 : i64, scratch_operands = 1 : i64, tpu.core_type = #tpu.core_type<tc>} {
    %c0 = arith.constant 0 : index
    %c0_0 = arith.constant 0 : index
    %0 = vector.load %arg2[%c0, %c0_0] : memref<16x1xf32, #tpu.memory_space<vmem>>, vector<16x1xf32>
    %1 = vector.shape_cast %0 : vector<16x1xf32> to vector<16x1xf32>
    %2 = vector.broadcast %1 : vector<16x1xf32> to vector<16x276xf32>
    %c0_1 = arith.constant 0 : index
    %c0_2 = arith.constant 0 : index
    %3 = vector.load %arg4[%c0_1, %c0_2] : memref<32x1xf32, #tpu.memory_space<vmem>>, vector<32x1xf32>
    %4 = vector.shape_cast %3 : vector<32x1xf32> to vector<32x1xf32>
    %5 = vector.broadcast %4 : vector<32x1xf32> to vector<32x252xf32>
    %c0_3 = arith.constant 0 : index
    %c0_4 = arith.constant 0 : index
    %6 = vector.load %arg3[%c0_3, %c0_4] : memref<32x80xbf16, #tpu.memory_space<vmem>>, vector<32x80xbf16>
    %c0_5 = arith.constant 0 : index
    %c0_6 = arith.constant 0 : index
    %c0_7 = arith.constant 0 : index
    %7 = vector.load %arg0[%c0_5, %c0_6, %c0_7] : memref<2x1x300xf32, #tpu.memory_space<vmem>>, vector<1x1x300xf32>
    %8 = vector.shape_cast %7 : vector<1x1x300xf32> to vector<1x300xf32>
    %c0_8 = arith.constant 0 : index
    %c0_9 = arith.constant 0 : index
    %c0_10 = arith.constant 0 : index
    %9 = vector.load %arg1[%c0_8, %c0_9, %c0_10] : memref<5x16x1xf32, #tpu.memory_space<vmem>>, vector<1x16x1xf32>
    %10 = vector.shape_cast %9 : vector<1x16x1xf32> to vector<16x1xf32>
    %11 = vector.extract_strided_slice %8 {offsets = [0, 0], sizes = [1, 276], strides = [1, 1]} : vector<1x300xf32> to vector<1x276xf32>
    %12 = vector.broadcast %10 : vector<16x1xf32> to vector<16x276xf32>
    %13 = vector.broadcast %11 : vector<1x276xf32> to vector<16x276xf32>
    %14 = arith.mulf %12, %13 : vector<16x276xf32>
    %15 = arith.addf %2, %14 : vector<16x276xf32>
    %c1 = arith.constant 1 : index
    %c0_11 = arith.constant 0 : index
    %c0_12 = arith.constant 0 : index
    %16 = vector.load %arg1[%c1, %c0_11, %c0_12] : memref<5x16x1xf32, #tpu.memory_space<vmem>>, vector<1x16x1xf32>
    %17 = vector.shape_cast %16 : vector<1x16x1xf32> to vector<16x1xf32>
    %18 = vector.extract_strided_slice %8 {offsets = [0, 6], sizes = [1, 276], strides = [1, 1]} : vector<1x300xf32> to vector<1x276xf32>
    %19 = vector.broadcast %17 : vector<16x1xf32> to vector<16x276xf32>
    %20 = vector.broadcast %18 : vector<1x276xf32> to vector<16x276xf32>
    %21 = arith.mulf %19, %20 : vector<16x276xf32>
    %22 = arith.addf %15, %21 : vector<16x276xf32>
    %c2 = arith.constant 2 : index
    %c0_13 = arith.constant 0 : index
    %c0_14 = arith.constant 0 : index
    %23 = vector.load %arg1[%c2, %c0_13, %c0_14] : memref<5x16x1xf32, #tpu.memory_space<vmem>>, vector<1x16x1xf32>
    %24 = vector.shape_cast %23 : vector<1x16x1xf32> to vector<16x1xf32>
    %25 = vector.extract_strided_slice %8 {offsets = [0, 12], sizes = [1, 276], strides = [1, 1]} : vector<1x300xf32> to vector<1x276xf32>
    %26 = vector.broadcast %24 : vector<16x1xf32> to vector<16x276xf32>
    %27 = vector.broadcast %25 : vector<1x276xf32> to vector<16x276xf32>
    %28 = arith.mulf %26, %27 : vector<16x276xf32>
    %29 = arith.addf %22, %28 : vector<16x276xf32>
    %c3 = arith.constant 3 : index
    %c0_15 = arith.constant 0 : index
    %c0_16 = arith.constant 0 : index
    %30 = vector.load %arg1[%c3, %c0_15, %c0_16] : memref<5x16x1xf32, #tpu.memory_space<vmem>>, vector<1x16x1xf32>
    %31 = vector.shape_cast %30 : vector<1x16x1xf32> to vector<16x1xf32>
    %32 = vector.extract_strided_slice %8 {offsets = [0, 18], sizes = [1, 276], strides = [1, 1]} : vector<1x300xf32> to vector<1x276xf32>
    %33 = vector.broadcast %31 : vector<16x1xf32> to vector<16x276xf32>
    %34 = vector.broadcast %32 : vector<1x276xf32> to vector<16x276xf32>
    %35 = arith.mulf %33, %34 : vector<16x276xf32>
    %36 = arith.addf %29, %35 : vector<16x276xf32>
    %c4 = arith.constant 4 : index
    %c0_17 = arith.constant 0 : index
    %c0_18 = arith.constant 0 : index
    %37 = vector.load %arg1[%c4, %c0_17, %c0_18] : memref<5x16x1xf32, #tpu.memory_space<vmem>>, vector<1x16x1xf32>
    %38 = vector.shape_cast %37 : vector<1x16x1xf32> to vector<16x1xf32>
    %39 = vector.extract_strided_slice %8 {offsets = [0, 24], sizes = [1, 276], strides = [1, 1]} : vector<1x300xf32> to vector<1x276xf32>
    %40 = vector.broadcast %38 : vector<16x1xf32> to vector<16x276xf32>
    %41 = vector.broadcast %39 : vector<1x276xf32> to vector<16x276xf32>
    %42 = arith.mulf %40, %41 : vector<16x276xf32>
    %43 = arith.addf %36, %42 : vector<16x276xf32>
    %cst = arith.constant 0.000000e+00 : f32
    %44 = vector.broadcast %cst : f32 to vector<16x276xf32>
    %45 = arith.maximumf %43, %44 : vector<16x276xf32>
    %46 = arith.truncf %45 : vector<16x276xf32> to vector<16x276xbf16>
    %47 = vector.extract_strided_slice %46 {offsets = [0, 0], sizes = [16, 252], strides = [1, 1]} : vector<16x276xbf16> to vector<16x252xbf16>
    %48 = vector.extract_strided_slice %46 {offsets = [0, 6], sizes = [16, 252], strides = [1, 1]} : vector<16x276xbf16> to vector<16x252xbf16>
    %49 = vector.extract_strided_slice %46 {offsets = [0, 12], sizes = [16, 252], strides = [1, 1]} : vector<16x276xbf16> to vector<16x252xbf16>
    %50 = vector.extract_strided_slice %46 {offsets = [0, 18], sizes = [16, 252], strides = [1, 1]} : vector<16x276xbf16> to vector<16x252xbf16>
    %51 = vector.extract_strided_slice %46 {offsets = [0, 24], sizes = [16, 252], strides = [1, 1]} : vector<16x276xbf16> to vector<16x252xbf16>
    %52 = tpu.concatenate %47, %48, %49, %50, %51 in 0 : vector<16x252xbf16>, vector<16x252xbf16>, vector<16x252xbf16>, vector<16x252xbf16>, vector<16x252xbf16> -> vector<80x252xbf16>
    %cst_19 = arith.constant dense<0.000000e+00> : vector<32x252xf32>
    %53 = tpu.matmul %6, %52, %cst_19 {dimension_numbers = #tpu.dot_dimension_numbers<[1], [0], [0], [1], [0, 0, 1, 1], [], []>} : vector<32x80xbf16>, vector<80x252xbf16>, vector<32x252xf32> -> vector<32x252xf32>
    %54 = arith.addf %53, %5 : vector<32x252xf32>
    %cst_20 = arith.constant 0.000000e+00 : f32
    %55 = vector.broadcast %cst_20 : f32 to vector<32x252xf32>
    %56 = arith.maximumf %54, %55 : vector<32x252xf32>
    %57 = arith.truncf %56 : vector<32x252xf32> to vector<32x252xbf16>
    %58 = vector.extract_strided_slice %57 {offsets = [0, 0], sizes = [1, 252], strides = [1, 1]} : vector<32x252xbf16> to vector<1x252xbf16>
    %59 = vector.shape_cast %58 : vector<1x252xbf16> to vector<252xbf16>
    %c0_21 = arith.constant 0 : index
    %c0_22 = arith.constant 0 : index
    %60 = vector.load %arg11[%c0_21, %c0_22] : memref<2x8064xbf16, #tpu.memory_space<vmem>>, vector<1x252xbf16>
    %61 = vector.shape_cast %60 : vector<1x252xbf16> to vector<252xbf16>
    %62 = vector.shape_cast %59 : vector<252xbf16> to vector<1x252xbf16>
    tpu.vector_store %arg11[%c0_21, %c0_22], %62 {strides = array<i32>} : memref<2x8064xbf16, #tpu.memory_space<vmem>>, vector<1x252xbf16>,
    %63 = vector.extract_strided_slice %57 {offsets = [1, 0], sizes = [1, 252], strides = [1, 1]} : vector<32x252xbf16> to vector<1x252xbf16>
    %64 = vector.shape_cast %63 : vector<1x252xbf16> to vector<252xbf16>
    %c0_23 = arith.constant 0 : index
    %c252 = arith.constant 252 : index
    %65 = vector.load %arg11[%c0_23, %c252] : memref<2x8064xbf16, #tpu.memory_space<vmem>>, vector<1x252xbf16>
    %66 = vector.shape_cast %65 : vector<1x252xbf16> to vector<252xbf16>
    %67 = vector.shape_cast %64 : vector<252xbf16> to vector<1x252xbf16>
    tpu.vector_store %arg11[%c0_23, %c252], %67 {strides = array<i32>} : memref<2x8064xbf16, #tpu.memory_space<vmem>>, vector<1x252xbf16>,
    %68 = vector.extract_strided_slice %57 {offsets = [2, 0], sizes = [1, 252], strides = [1, 1]} : vector<32x252xbf16> to vector<1x252xbf16>
    %69 = vector.shape_cast %68 : vector<1x252xbf16> to vector<252xbf16>
    %c0_24 = arith.constant 0 : index
    %c504 = arith.constant 504 : index
    %70 = vector.load %arg11[%c0_24, %c504] : memref<2x8064xbf16, #tpu.memory_space<vmem>>, vector<1x252xbf16>
    %71 = vector.shape_cast %70 : vector<1x252xbf16> to vector<252xbf16>
    %72 = vector.shape_cast %69 : vector<252xbf16> to vector<1x252xbf16>
    tpu.vector_store %arg11[%c0_24, %c504], %72 {strides = array<i32>} : memref<2x8064xbf16, #tpu.memory_space<vmem>>, vector<1x252xbf16>,
    %73 = vector.extract_strided_slice %57 {offsets = [3, 0], sizes = [1, 252], strides = [1, 1]} : vector<32x252xbf16> to vector<1x252xbf16>
    %74 = vector.shape_cast %73 : vector<1x252xbf16> to vector<252xbf16>
    %c0_25 = arith.constant 0 : index
    %c756 = arith.constant 756 : index
    %75 = vector.load %arg11[%c0_25, %c756] : memref<2x8064xbf16, #tpu.memory_space<vmem>>, vector<1x252xbf16>
    %76 = vector.shape_cast %75 : vector<1x252xbf16> to vector<252xbf16>
    %77 = vector.shape_cast %74 : vector<252xbf16> to vector<1x252xbf16>
    tpu.vector_store %arg11[%c0_25, %c756], %77 {strides = array<i32>} : memref<2x8064xbf16, #tpu.memory_space<vmem>>, vector<1x252xbf16>,
    %78 = vector.extract_strided_slice %57 {offsets = [4, 0], sizes = [1, 252], strides = [1, 1]} : vector<32x252xbf16> to vector<1x252xbf16>
    %79 = vector.shape_cast %78 : vector<1x252xbf16> to vector<252xbf16>
    %c0_26 = arith.constant 0 : index
    %c1008 = arith.constant 1008 : index
    %80 = vector.load %arg11[%c0_26, %c1008] : memref<2x8064xbf16, #tpu.memory_space<vmem>>, vector<1x252xbf16>
    %81 = vector.shape_cast %80 : vector<1x252xbf16> to vector<252xbf16>
    %82 = vector.shape_cast %79 : vector<252xbf16> to vector<1x252xbf16>
    tpu.vector_store %arg11[%c0_26, %c1008], %82 {strides = array<i32>} : memref<2x8064xbf16, #tpu.memory_space<vmem>>, vector<1x252xbf16>,
    %83 = vector.extract_strided_slice %57 {offsets = [5, 0], sizes = [1, 252], strides = [1, 1]} : vector<32x252xbf16> to vector<1x252xbf16>
    %84 = vector.shape_cast %83 : vector<1x252xbf16> to vector<252xbf16>
    %c0_27 = arith.constant 0 : index
    %c1260 = arith.constant 1260 : index
    %85 = vector.load %arg11[%c0_27, %c1260] : memref<2x8064xbf16, #tpu.memory_space<vmem>>, vector<1x252xbf16>
    %86 = vector.shape_cast %85 : vector<1x252xbf16> to vector<252xbf16>
    %87 = vector.shape_cast %84 : vector<252xbf16> to vector<1x252xbf16>
    tpu.vector_store %arg11[%c0_27, %c1260], %87 {strides = array<i32>} : memref<2x8064xbf16, #tpu.memory_space<vmem>>, vector<1x252xbf16>,
    %88 = vector.extract_strided_slice %57 {offsets = [6, 0], sizes = [1, 252], strides = [1, 1]} : vector<32x252xbf16> to vector<1x252xbf16>
    %89 = vector.shape_cast %88 : vector<1x252xbf16> to vector<252xbf16>
    %c0_28 = arith.constant 0 : index
    %c1512 = arith.constant 1512 : index
    %90 = vector.load %arg11[%c0_28, %c1512] : memref<2x8064xbf16, #tpu.memory_space<vmem>>, vector<1x252xbf16>
    %91 = vector.shape_cast %90 : vector<1x252xbf16> to vector<252xbf16>
    %92 = vector.shape_cast %89 : vector<252xbf16> to vector<1x252xbf16>
    tpu.vector_store %arg11[%c0_28, %c1512], %92 {strides = array<i32>} : memref<2x8064xbf16, #tpu.memory_space<vmem>>, vector<1x252xbf16>,
    %93 = vector.extract_strided_slice %57 {offsets = [7, 0], sizes = [1, 252], strides = [1, 1]} : vector<32x252xbf16> to vector<1x252xbf16>
    %94 = vector.shape_cast %93 : vector<1x252xbf16> to vector<252xbf16>
    %c0_29 = arith.constant 0 : index
    %c1764 = arith.constant 1764 : index
    %95 = vector.load %arg11[%c0_29, %c1764] : memref<2x8064xbf16, #tpu.memory_space<vmem>>, vector<1x252xbf16>
    %96 = vector.shape_cast %95 : vector<1x252xbf16> to vector<252xbf16>
    %97 = vector.shape_cast %94 : vector<252xbf16> to vector<1x252xbf16>
    tpu.vector_store %arg11[%c0_29, %c1764], %97 {strides = array<i32>} : memref<2x8064xbf16, #tpu.memory_space<vmem>>, vector<1x252xbf16>,
    %98 = vector.extract_strided_slice %57 {offsets = [8, 0], sizes = [1, 252], strides = [1, 1]} : vector<32x252xbf16> to vector<1x252xbf16>
    %99 = vector.shape_cast %98 : vector<1x252xbf16> to vector<252xbf16>
    %c0_30 = arith.constant 0 : index
    %c2016 = arith.constant 2016 : index
    %100 = vector.load %arg11[%c0_30, %c2016] : memref<2x8064xbf16, #tpu.memory_space<vmem>>, vector<1x252xbf16>
    %101 = vector.shape_cast %100 : vector<1x252xbf16> to vector<252xbf16>
    %102 = vector.shape_cast %99 : vector<252xbf16> to vector<1x252xbf16>
    tpu.vector_store %arg11[%c0_30, %c2016], %102 {strides = array<i32>} : memref<2x8064xbf16, #tpu.memory_space<vmem>>, vector<1x252xbf16>,
    %103 = vector.extract_strided_slice %57 {offsets = [9, 0], sizes = [1, 252], strides = [1, 1]} : vector<32x252xbf16> to vector<1x252xbf16>
    %104 = vector.shape_cast %103 : vector<1x252xbf16> to vector<252xbf16>
    %c0_31 = arith.constant 0 : index
    %c2268 = arith.constant 2268 : index
    %105 = vector.load %arg11[%c0_31, %c2268] : memref<2x8064xbf16, #tpu.memory_space<vmem>>, vector<1x252xbf16>
    %106 = vector.shape_cast %105 : vector<1x252xbf16> to vector<252xbf16>
    %107 = vector.shape_cast %104 : vector<252xbf16> to vector<1x252xbf16>
    tpu.vector_store %arg11[%c0_31, %c2268], %107 {strides = array<i32>} : memref<2x8064xbf16, #tpu.memory_space<vmem>>, vector<1x252xbf16>,
    %108 = vector.extract_strided_slice %57 {offsets = [10, 0], sizes = [1, 252], strides = [1, 1]} : vector<32x252xbf16> to vector<1x252xbf16>
    %109 = vector.shape_cast %108 : vector<1x252xbf16> to vector<252xbf16>
    %c0_32 = arith.constant 0 : index
    %c2520 = arith.constant 2520 : index
    %110 = vector.load %arg11[%c0_32, %c2520] : memref<2x8064xbf16, #tpu.memory_space<vmem>>, vector<1x252xbf16>
    %111 = vector.shape_cast %110 : vector<1x252xbf16> to vector<252xbf16>
    %112 = vector.shape_cast %109 : vector<252xbf16> to vector<1x252xbf16>
    tpu.vector_store %arg11[%c0_32, %c2520], %112 {strides = array<i32>} : memref<2x8064xbf16, #tpu.memory_space<vmem>>, vector<1x252xbf16>,
    %113 = vector.extract_strided_slice %57 {offsets = [11, 0], sizes = [1, 252], strides = [1, 1]} : vector<32x252xbf16> to vector<1x252xbf16>
    %114 = vector.shape_cast %113 : vector<1x252xbf16> to vector<252xbf16>
    %c0_33 = arith.constant 0 : index
    %c2772 = arith.constant 2772 : index
    %115 = vector.load %arg11[%c0_33, %c2772] : memref<2x8064xbf16, #tpu.memory_space<vmem>>, vector<1x252xbf16>
    %116 = vector.shape_cast %115 : vector<1x252xbf16> to vector<252xbf16>
    %117 = vector.shape_cast %114 : vector<252xbf16> to vector<1x252xbf16>
    tpu.vector_store %arg11[%c0_33, %c2772], %117 {strides = array<i32>} : memref<2x8064xbf16, #tpu.memory_space<vmem>>, vector<1x252xbf16>,
    %118 = vector.extract_strided_slice %57 {offsets = [12, 0], sizes = [1, 252], strides = [1, 1]} : vector<32x252xbf16> to vector<1x252xbf16>
    %119 = vector.shape_cast %118 : vector<1x252xbf16> to vector<252xbf16>
    %c0_34 = arith.constant 0 : index
    %c3024 = arith.constant 3024 : index
    %120 = vector.load %arg11[%c0_34, %c3024] : memref<2x8064xbf16, #tpu.memory_space<vmem>>, vector<1x252xbf16>
    %121 = vector.shape_cast %120 : vector<1x252xbf16> to vector<252xbf16>
    %122 = vector.shape_cast %119 : vector<252xbf16> to vector<1x252xbf16>
    tpu.vector_store %arg11[%c0_34, %c3024], %122 {strides = array<i32>} : memref<2x8064xbf16, #tpu.memory_space<vmem>>, vector<1x252xbf16>,
    %123 = vector.extract_strided_slice %57 {offsets = [13, 0], sizes = [1, 252], strides = [1, 1]} : vector<32x252xbf16> to vector<1x252xbf16>
    %124 = vector.shape_cast %123 : vector<1x252xbf16> to vector<252xbf16>
    %c0_35 = arith.constant 0 : index
    %c3276 = arith.constant 3276 : index
    %125 = vector.load %arg11[%c0_35, %c3276] : memref<2x8064xbf16, #tpu.memory_space<vmem>>, vector<1x252xbf16>
    %126 = vector.shape_cast %125 : vector<1x252xbf16> to vector<252xbf16>
    %127 = vector.shape_cast %124 : vector<252xbf16> to vector<1x252xbf16>
    tpu.vector_store %arg11[%c0_35, %c3276], %127 {strides = array<i32>} : memref<2x8064xbf16, #tpu.memory_space<vmem>>, vector<1x252xbf16>,
    %128 = vector.extract_strided_slice %57 {offsets = [14, 0], sizes = [1, 252], strides = [1, 1]} : vector<32x252xbf16> to vector<1x252xbf16>
    %129 = vector.shape_cast %128 : vector<1x252xbf16> to vector<252xbf16>
    %c0_36 = arith.constant 0 : index
    %c3528 = arith.constant 3528 : index
    %130 = vector.load %arg11[%c0_36, %c3528] : memref<2x8064xbf16, #tpu.memory_space<vmem>>, vector<1x252xbf16>
    %131 = vector.shape_cast %130 : vector<1x252xbf16> to vector<252xbf16>
    %132 = vector.shape_cast %129 : vector<252xbf16> to vector<1x252xbf16>
    tpu.vector_store %arg11[%c0_36, %c3528], %132 {strides = array<i32>} : memref<2x8064xbf16, #tpu.memory_space<vmem>>, vector<1x252xbf16>,
    %133 = vector.extract_strided_slice %57 {offsets = [15, 0], sizes = [1, 252], strides = [1, 1]} : vector<32x252xbf16> to vector<1x252xbf16>
    %134 = vector.shape_cast %133 : vector<1x252xbf16> to vector<252xbf16>
    %c0_37 = arith.constant 0 : index
    %c3780 = arith.constant 3780 : index
    %135 = vector.load %arg11[%c0_37, %c3780] : memref<2x8064xbf16, #tpu.memory_space<vmem>>, vector<1x252xbf16>
    %136 = vector.shape_cast %135 : vector<1x252xbf16> to vector<252xbf16>
    %137 = vector.shape_cast %134 : vector<252xbf16> to vector<1x252xbf16>
    tpu.vector_store %arg11[%c0_37, %c3780], %137 {strides = array<i32>} : memref<2x8064xbf16, #tpu.memory_space<vmem>>, vector<1x252xbf16>,
    %138 = vector.extract_strided_slice %57 {offsets = [16, 0], sizes = [1, 252], strides = [1, 1]} : vector<32x252xbf16> to vector<1x252xbf16>
    %139 = vector.shape_cast %138 : vector<1x252xbf16> to vector<252xbf16>
    %c0_38 = arith.constant 0 : index
    %c4032 = arith.constant 4032 : index
    %140 = vector.load %arg11[%c0_38, %c4032] : memref<2x8064xbf16, #tpu.memory_space<vmem>>, vector<1x252xbf16>
    %141 = vector.shape_cast %140 : vector<1x252xbf16> to vector<252xbf16>
    %142 = vector.shape_cast %139 : vector<252xbf16> to vector<1x252xbf16>
    tpu.vector_store %arg11[%c0_38, %c4032], %142 {strides = array<i32>} : memref<2x8064xbf16, #tpu.memory_space<vmem>>, vector<1x252xbf16>,
    %143 = vector.extract_strided_slice %57 {offsets = [17, 0], sizes = [1, 252], strides = [1, 1]} : vector<32x252xbf16> to vector<1x252xbf16>
    %144 = vector.shape_cast %143 : vector<1x252xbf16> to vector<252xbf16>
    %c0_39 = arith.constant 0 : index
    %c4284 = arith.constant 4284 : index
    %145 = vector.load %arg11[%c0_39, %c4284] : memref<2x8064xbf16, #tpu.memory_space<vmem>>, vector<1x252xbf16>
    %146 = vector.shape_cast %145 : vector<1x252xbf16> to vector<252xbf16>
    %147 = vector.shape_cast %144 : vector<252xbf16> to vector<1x252xbf16>
    tpu.vector_store %arg11[%c0_39, %c4284], %147 {strides = array<i32>} : memref<2x8064xbf16, #tpu.memory_space<vmem>>, vector<1x252xbf16>,
    %148 = vector.extract_strided_slice %57 {offsets = [18, 0], sizes = [1, 252], strides = [1, 1]} : vector<32x252xbf16> to vector<1x252xbf16>
    %149 = vector.shape_cast %148 : vector<1x252xbf16> to vector<252xbf16>
    %c0_40 = arith.constant 0 : index
    %c4536 = arith.constant 4536 : index
    %150 = vector.load %arg11[%c0_40, %c4536] : memref<2x8064xbf16, #tpu.memory_space<vmem>>, vector<1x252xbf16>
    %151 = vector.shape_cast %150 : vector<1x252xbf16> to vector<252xbf16>
    %152 = vector.shape_cast %149 : vector<252xbf16> to vector<1x252xbf16>
    tpu.vector_store %arg11[%c0_40, %c4536], %152 {strides = array<i32>} : memref<2x8064xbf16, #tpu.memory_space<vmem>>, vector<1x252xbf16>,
    %153 = vector.extract_strided_slice %57 {offsets = [19, 0], sizes = [1, 252], strides = [1, 1]} : vector<32x252xbf16> to vector<1x252xbf16>
    %154 = vector.shape_cast %153 : vector<1x252xbf16> to vector<252xbf16>
    %c0_41 = arith.constant 0 : index
    %c4788 = arith.constant 4788 : index
    %155 = vector.load %arg11[%c0_41, %c4788] : memref<2x8064xbf16, #tpu.memory_space<vmem>>, vector<1x252xbf16>
    %156 = vector.shape_cast %155 : vector<1x252xbf16> to vector<252xbf16>
    %157 = vector.shape_cast %154 : vector<252xbf16> to vector<1x252xbf16>
    tpu.vector_store %arg11[%c0_41, %c4788], %157 {strides = array<i32>} : memref<2x8064xbf16, #tpu.memory_space<vmem>>, vector<1x252xbf16>,
    %158 = vector.extract_strided_slice %57 {offsets = [20, 0], sizes = [1, 252], strides = [1, 1]} : vector<32x252xbf16> to vector<1x252xbf16>
    %159 = vector.shape_cast %158 : vector<1x252xbf16> to vector<252xbf16>
    %c0_42 = arith.constant 0 : index
    %c5040 = arith.constant 5040 : index
    %160 = vector.load %arg11[%c0_42, %c5040] : memref<2x8064xbf16, #tpu.memory_space<vmem>>, vector<1x252xbf16>
    %161 = vector.shape_cast %160 : vector<1x252xbf16> to vector<252xbf16>
    %162 = vector.shape_cast %159 : vector<252xbf16> to vector<1x252xbf16>
    tpu.vector_store %arg11[%c0_42, %c5040], %162 {strides = array<i32>} : memref<2x8064xbf16, #tpu.memory_space<vmem>>, vector<1x252xbf16>,
    %163 = vector.extract_strided_slice %57 {offsets = [21, 0], sizes = [1, 252], strides = [1, 1]} : vector<32x252xbf16> to vector<1x252xbf16>
    %164 = vector.shape_cast %163 : vector<1x252xbf16> to vector<252xbf16>
    %c0_43 = arith.constant 0 : index
    %c5292 = arith.constant 5292 : index
    %165 = vector.load %arg11[%c0_43, %c5292] : memref<2x8064xbf16, #tpu.memory_space<vmem>>, vector<1x252xbf16>
    %166 = vector.shape_cast %165 : vector<1x252xbf16> to vector<252xbf16>
    %167 = vector.shape_cast %164 : vector<252xbf16> to vector<1x252xbf16>
    tpu.vector_store %arg11[%c0_43, %c5292], %167 {strides = array<i32>} : memref<2x8064xbf16, #tpu.memory_space<vmem>>, vector<1x252xbf16>,
    %168 = vector.extract_strided_slice %57 {offsets = [22, 0], sizes = [1, 252], strides = [1, 1]} : vector<32x252xbf16> to vector<1x252xbf16>
    %169 = vector.shape_cast %168 : vector<1x252xbf16> to vector<252xbf16>
    %c0_44 = arith.constant 0 : index
    %c5544 = arith.constant 5544 : index
    %170 = vector.load %arg11[%c0_44, %c5544] : memref<2x8064xbf16, #tpu.memory_space<vmem>>, vector<1x252xbf16>
    %171 = vector.shape_cast %170 : vector<1x252xbf16> to vector<252xbf16>
    %172 = vector.shape_cast %169 : vector<252xbf16> to vector<1x252xbf16>
    tpu.vector_store %arg11[%c0_44, %c5544], %172 {strides = array<i32>} : memref<2x8064xbf16, #tpu.memory_space<vmem>>, vector<1x252xbf16>,
    %173 = vector.extract_strided_slice %57 {offsets = [23, 0], sizes = [1, 252], strides = [1, 1]} : vector<32x252xbf16> to vector<1x252xbf16>
    %174 = vector.shape_cast %173 : vector<1x252xbf16> to vector<252xbf16>
    %c0_45 = arith.constant 0 : index
    %c5796 = arith.constant 5796 : index
    %175 = vector.load %arg11[%c0_45, %c5796] : memref<2x8064xbf16, #tpu.memory_space<vmem>>, vector<1x252xbf16>
    %176 = vector.shape_cast %175 : vector<1x252xbf16> to vector<252xbf16>
    %177 = vector.shape_cast %174 : vector<252xbf16> to vector<1x252xbf16>
    tpu.vector_store %arg11[%c0_45, %c5796], %177 {strides = array<i32>} : memref<2x8064xbf16, #tpu.memory_space<vmem>>, vector<1x252xbf16>,
    %178 = vector.extract_strided_slice %57 {offsets = [24, 0], sizes = [1, 252], strides = [1, 1]} : vector<32x252xbf16> to vector<1x252xbf16>
    %179 = vector.shape_cast %178 : vector<1x252xbf16> to vector<252xbf16>
    %c0_46 = arith.constant 0 : index
    %c6048 = arith.constant 6048 : index
    %180 = vector.load %arg11[%c0_46, %c6048] : memref<2x8064xbf16, #tpu.memory_space<vmem>>, vector<1x252xbf16>
    %181 = vector.shape_cast %180 : vector<1x252xbf16> to vector<252xbf16>
    %182 = vector.shape_cast %179 : vector<252xbf16> to vector<1x252xbf16>
    tpu.vector_store %arg11[%c0_46, %c6048], %182 {strides = array<i32>} : memref<2x8064xbf16, #tpu.memory_space<vmem>>, vector<1x252xbf16>,
    %183 = vector.extract_strided_slice %57 {offsets = [25, 0], sizes = [1, 252], strides = [1, 1]} : vector<32x252xbf16> to vector<1x252xbf16>
    %184 = vector.shape_cast %183 : vector<1x252xbf16> to vector<252xbf16>
    %c0_47 = arith.constant 0 : index
    %c6300 = arith.constant 6300 : index
    %185 = vector.load %arg11[%c0_47, %c6300] : memref<2x8064xbf16, #tpu.memory_space<vmem>>, vector<1x252xbf16>
    %186 = vector.shape_cast %185 : vector<1x252xbf16> to vector<252xbf16>
    %187 = vector.shape_cast %184 : vector<252xbf16> to vector<1x252xbf16>
    tpu.vector_store %arg11[%c0_47, %c6300], %187 {strides = array<i32>} : memref<2x8064xbf16, #tpu.memory_space<vmem>>, vector<1x252xbf16>,
    %188 = vector.extract_strided_slice %57 {offsets = [26, 0], sizes = [1, 252], strides = [1, 1]} : vector<32x252xbf16> to vector<1x252xbf16>
    %189 = vector.shape_cast %188 : vector<1x252xbf16> to vector<252xbf16>
    %c0_48 = arith.constant 0 : index
    %c6552 = arith.constant 6552 : index
    %190 = vector.load %arg11[%c0_48, %c6552] : memref<2x8064xbf16, #tpu.memory_space<vmem>>, vector<1x252xbf16>
    %191 = vector.shape_cast %190 : vector<1x252xbf16> to vector<252xbf16>
    %192 = vector.shape_cast %189 : vector<252xbf16> to vector<1x252xbf16>
    tpu.vector_store %arg11[%c0_48, %c6552], %192 {strides = array<i32>} : memref<2x8064xbf16, #tpu.memory_space<vmem>>, vector<1x252xbf16>,
    %193 = vector.extract_strided_slice %57 {offsets = [27, 0], sizes = [1, 252], strides = [1, 1]} : vector<32x252xbf16> to vector<1x252xbf16>
    %194 = vector.shape_cast %193 : vector<1x252xbf16> to vector<252xbf16>
    %c0_49 = arith.constant 0 : index
    %c6804 = arith.constant 6804 : index
    %195 = vector.load %arg11[%c0_49, %c6804] : memref<2x8064xbf16, #tpu.memory_space<vmem>>, vector<1x252xbf16>
    %196 = vector.shape_cast %195 : vector<1x252xbf16> to vector<252xbf16>
    %197 = vector.shape_cast %194 : vector<252xbf16> to vector<1x252xbf16>
    tpu.vector_store %arg11[%c0_49, %c6804], %197 {strides = array<i32>} : memref<2x8064xbf16, #tpu.memory_space<vmem>>, vector<1x252xbf16>,
    %198 = vector.extract_strided_slice %57 {offsets = [28, 0], sizes = [1, 252], strides = [1, 1]} : vector<32x252xbf16> to vector<1x252xbf16>
    %199 = vector.shape_cast %198 : vector<1x252xbf16> to vector<252xbf16>
    %c0_50 = arith.constant 0 : index
    %c7056 = arith.constant 7056 : index
    %200 = vector.load %arg11[%c0_50, %c7056] : memref<2x8064xbf16, #tpu.memory_space<vmem>>, vector<1x252xbf16>
    %201 = vector.shape_cast %200 : vector<1x252xbf16> to vector<252xbf16>
    %202 = vector.shape_cast %199 : vector<252xbf16> to vector<1x252xbf16>
    tpu.vector_store %arg11[%c0_50, %c7056], %202 {strides = array<i32>} : memref<2x8064xbf16, #tpu.memory_space<vmem>>, vector<1x252xbf16>,
    %203 = vector.extract_strided_slice %57 {offsets = [29, 0], sizes = [1, 252], strides = [1, 1]} : vector<32x252xbf16> to vector<1x252xbf16>
    %204 = vector.shape_cast %203 : vector<1x252xbf16> to vector<252xbf16>
    %c0_51 = arith.constant 0 : index
    %c7308 = arith.constant 7308 : index
    %205 = vector.load %arg11[%c0_51, %c7308] : memref<2x8064xbf16, #tpu.memory_space<vmem>>, vector<1x252xbf16>
    %206 = vector.shape_cast %205 : vector<1x252xbf16> to vector<252xbf16>
    %207 = vector.shape_cast %204 : vector<252xbf16> to vector<1x252xbf16>
    tpu.vector_store %arg11[%c0_51, %c7308], %207 {strides = array<i32>} : memref<2x8064xbf16, #tpu.memory_space<vmem>>, vector<1x252xbf16>,
    %208 = vector.extract_strided_slice %57 {offsets = [30, 0], sizes = [1, 252], strides = [1, 1]} : vector<32x252xbf16> to vector<1x252xbf16>
    %209 = vector.shape_cast %208 : vector<1x252xbf16> to vector<252xbf16>
    %c0_52 = arith.constant 0 : index
    %c7560 = arith.constant 7560 : index
    %210 = vector.load %arg11[%c0_52, %c7560] : memref<2x8064xbf16, #tpu.memory_space<vmem>>, vector<1x252xbf16>
    %211 = vector.shape_cast %210 : vector<1x252xbf16> to vector<252xbf16>
    %212 = vector.shape_cast %209 : vector<252xbf16> to vector<1x252xbf16>
    tpu.vector_store %arg11[%c0_52, %c7560], %212 {strides = array<i32>} : memref<2x8064xbf16, #tpu.memory_space<vmem>>, vector<1x252xbf16>,
    %213 = vector.extract_strided_slice %57 {offsets = [31, 0], sizes = [1, 252], strides = [1, 1]} : vector<32x252xbf16> to vector<1x252xbf16>
    %214 = vector.shape_cast %213 : vector<1x252xbf16> to vector<252xbf16>
    %c0_53 = arith.constant 0 : index
    %c7812 = arith.constant 7812 : index
    %215 = vector.load %arg11[%c0_53, %c7812] : memref<2x8064xbf16, #tpu.memory_space<vmem>>, vector<1x252xbf16>
    %216 = vector.shape_cast %215 : vector<1x252xbf16> to vector<252xbf16>
    %217 = vector.shape_cast %214 : vector<252xbf16> to vector<1x252xbf16>
    tpu.vector_store %arg11[%c0_53, %c7812], %217 {strides = array<i32>} : memref<2x8064xbf16, #tpu.memory_space<vmem>>, vector<1x252xbf16>,
    %c1_54 = arith.constant 1 : index
    %c0_55 = arith.constant 0 : index
    %c0_56 = arith.constant 0 : index
    %218 = vector.load %arg0[%c1_54, %c0_55, %c0_56] : memref<2x1x300xf32, #tpu.memory_space<vmem>>, vector<1x1x300xf32>
    %219 = vector.shape_cast %218 : vector<1x1x300xf32> to vector<1x300xf32>
    %c0_57 = arith.constant 0 : index
    %c0_58 = arith.constant 0 : index
    %c0_59 = arith.constant 0 : index
    %220 = vector.load %arg1[%c0_57, %c0_58, %c0_59] : memref<5x16x1xf32, #tpu.memory_space<vmem>>, vector<1x16x1xf32>
    %221 = vector.shape_cast %220 : vector<1x16x1xf32> to vector<16x1xf32>
    %222 = vector.extract_strided_slice %219 {offsets = [0, 0], sizes = [1, 276], strides = [1, 1]} : vector<1x300xf32> to vector<1x276xf32>
    %223 = vector.broadcast %221 : vector<16x1xf32> to vector<16x276xf32>
    %224 = vector.broadcast %222 : vector<1x276xf32> to vector<16x276xf32>
    %225 = arith.mulf %223, %224 : vector<16x276xf32>
    %226 = arith.addf %2, %225 : vector<16x276xf32>
    %c1_60 = arith.constant 1 : index
    %c0_61 = arith.constant 0 : index
    %c0_62 = arith.constant 0 : index
    %227 = vector.load %arg1[%c1_60, %c0_61, %c0_62] : memref<5x16x1xf32, #tpu.memory_space<vmem>>, vector<1x16x1xf32>
    %228 = vector.shape_cast %227 : vector<1x16x1xf32> to vector<16x1xf32>
    %229 = vector.extract_strided_slice %219 {offsets = [0, 6], sizes = [1, 276], strides = [1, 1]} : vector<1x300xf32> to vector<1x276xf32>
    %230 = vector.broadcast %228 : vector<16x1xf32> to vector<16x276xf32>
    %231 = vector.broadcast %229 : vector<1x276xf32> to vector<16x276xf32>
    %232 = arith.mulf %230, %231 : vector<16x276xf32>
    %233 = arith.addf %226, %232 : vector<16x276xf32>
    %c2_63 = arith.constant 2 : index
    %c0_64 = arith.constant 0 : index
    %c0_65 = arith.constant 0 : index
    %234 = vector.load %arg1[%c2_63, %c0_64, %c0_65] : memref<5x16x1xf32, #tpu.memory_space<vmem>>, vector<1x16x1xf32>
    %235 = vector.shape_cast %234 : vector<1x16x1xf32> to vector<16x1xf32>
    %236 = vector.extract_strided_slice %219 {offsets = [0, 12], sizes = [1, 276], strides = [1, 1]} : vector<1x300xf32> to vector<1x276xf32>
    %237 = vector.broadcast %235 : vector<16x1xf32> to vector<16x276xf32>
    %238 = vector.broadcast %236 : vector<1x276xf32> to vector<16x276xf32>
    %239 = arith.mulf %237, %238 : vector<16x276xf32>
    %240 = arith.addf %233, %239 : vector<16x276xf32>
    %c3_66 = arith.constant 3 : index
    %c0_67 = arith.constant 0 : index
    %c0_68 = arith.constant 0 : index
    %241 = vector.load %arg1[%c3_66, %c0_67, %c0_68] : memref<5x16x1xf32, #tpu.memory_space<vmem>>, vector<1x16x1xf32>
    %242 = vector.shape_cast %241 : vector<1x16x1xf32> to vector<16x1xf32>
    %243 = vector.extract_strided_slice %219 {offsets = [0, 18], sizes = [1, 276], strides = [1, 1]} : vector<1x300xf32> to vector<1x276xf32>
    %244 = vector.broadcast %242 : vector<16x1xf32> to vector<16x276xf32>
    %245 = vector.broadcast %243 : vector<1x276xf32> to vector<16x276xf32>
    %246 = arith.mulf %244, %245 : vector<16x276xf32>
    %247 = arith.addf %240, %246 : vector<16x276xf32>
    %c4_69 = arith.constant 4 : index
    %c0_70 = arith.constant 0 : index
    %c0_71 = arith.constant 0 : index
    %248 = vector.load %arg1[%c4_69, %c0_70, %c0_71] : memref<5x16x1xf32, #tpu.memory_space<vmem>>, vector<1x16x1xf32>
    %249 = vector.shape_cast %248 : vector<1x16x1xf32> to vector<16x1xf32>
    %250 = vector.extract_strided_slice %219 {offsets = [0, 24], sizes = [1, 276], strides = [1, 1]} : vector<1x300xf32> to vector<1x276xf32>
    %251 = vector.broadcast %249 : vector<16x1xf32> to vector<16x276xf32>
    %252 = vector.broadcast %250 : vector<1x276xf32> to vector<16x276xf32>
    %253 = arith.mulf %251, %252 : vector<16x276xf32>
    %254 = arith.addf %247, %253 : vector<16x276xf32>
    %cst_72 = arith.constant 0.000000e+00 : f32
    %255 = vector.broadcast %cst_72 : f32 to vector<16x276xf32>
    %256 = arith.maximumf %254, %255 : vector<16x276xf32>
    %257 = arith.truncf %256 : vector<16x276xf32> to vector<16x276xbf16>
    %258 = vector.extract_strided_slice %257 {offsets = [0, 0], sizes = [16, 252], strides = [1, 1]} : vector<16x276xbf16> to vector<16x252xbf16>
    %259 = vector.extract_strided_slice %257 {offsets = [0, 6], sizes = [16, 252], strides = [1, 1]} : vector<16x276xbf16> to vector<16x252xbf16>
    %260 = vector.extract_strided_slice %257 {offsets = [0, 12], sizes = [16, 252], strides = [1, 1]} : vector<16x276xbf16> to vector<16x252xbf16>
    %261 = vector.extract_strided_slice %257 {offsets = [0, 18], sizes = [16, 252], strides = [1, 1]} : vector<16x276xbf16> to vector<16x252xbf16>
    %262 = vector.extract_strided_slice %257 {offsets = [0, 24], sizes = [16, 252], strides = [1, 1]} : vector<16x276xbf16> to vector<16x252xbf16>
    %263 = tpu.concatenate %258, %259, %260, %261, %262 in 0 : vector<16x252xbf16>, vector<16x252xbf16>, vector<16x252xbf16>, vector<16x252xbf16>, vector<16x252xbf16> -> vector<80x252xbf16>
    %cst_73 = arith.constant dense<0.000000e+00> : vector<32x252xf32>
    %264 = tpu.matmul %6, %263, %cst_73 {dimension_numbers = #tpu.dot_dimension_numbers<[1], [0], [0], [1], [0, 0, 1, 1], [], []>} : vector<32x80xbf16>, vector<80x252xbf16>, vector<32x252xf32> -> vector<32x252xf32>
    %265 = arith.addf %264, %5 : vector<32x252xf32>
    %cst_74 = arith.constant 0.000000e+00 : f32
    %266 = vector.broadcast %cst_74 : f32 to vector<32x252xf32>
    %267 = arith.maximumf %265, %266 : vector<32x252xf32>
    %268 = arith.truncf %267 : vector<32x252xf32> to vector<32x252xbf16>
    %269 = vector.extract_strided_slice %268 {offsets = [0, 0], sizes = [1, 252], strides = [1, 1]} : vector<32x252xbf16> to vector<1x252xbf16>
    %270 = vector.shape_cast %269 : vector<1x252xbf16> to vector<252xbf16>
    %c1_75 = arith.constant 1 : index
    %c0_76 = arith.constant 0 : index
    %271 = vector.load %arg11[%c1_75, %c0_76] : memref<2x8064xbf16, #tpu.memory_space<vmem>>, vector<1x252xbf16>
    %272 = vector.shape_cast %271 : vector<1x252xbf16> to vector<252xbf16>
    %273 = vector.shape_cast %270 : vector<252xbf16> to vector<1x252xbf16>
    tpu.vector_store %arg11[%c1_75, %c0_76], %273 {strides = array<i32>} : memref<2x8064xbf16, #tpu.memory_space<vmem>>, vector<1x252xbf16>,
    %274 = vector.extract_strided_slice %268 {offsets = [1, 0], sizes = [1, 252], strides = [1, 1]} : vector<32x252xbf16> to vector<1x252xbf16>
    %275 = vector.shape_cast %274 : vector<1x252xbf16> to vector<252xbf16>
    %c1_77 = arith.constant 1 : index
    %c252_78 = arith.constant 252 : index
    %276 = vector.load %arg11[%c1_77, %c252_78] : memref<2x8064xbf16, #tpu.memory_space<vmem>>, vector<1x252xbf16>
    %277 = vector.shape_cast %276 : vector<1x252xbf16> to vector<252xbf16>
    %278 = vector.shape_cast %275 : vector<252xbf16> to vector<1x252xbf16>
    tpu.vector_store %arg11[%c1_77, %c252_78], %278 {strides = array<i32>} : memref<2x8064xbf16, #tpu.memory_space<vmem>>, vector<1x252xbf16>,
    %279 = vector.extract_strided_slice %268 {offsets = [2, 0], sizes = [1, 252], strides = [1, 1]} : vector<32x252xbf16> to vector<1x252xbf16>
    %280 = vector.shape_cast %279 : vector<1x252xbf16> to vector<252xbf16>
    %c1_79 = arith.constant 1 : index
    %c504_80 = arith.constant 504 : index
    %281 = vector.load %arg11[%c1_79, %c504_80] : memref<2x8064xbf16, #tpu.memory_space<vmem>>, vector<1x252xbf16>
    %282 = vector.shape_cast %281 : vector<1x252xbf16> to vector<252xbf16>
    %283 = vector.shape_cast %280 : vector<252xbf16> to vector<1x252xbf16>
    tpu.vector_store %arg11[%c1_79, %c504_80], %283 {strides = array<i32>} : memref<2x8064xbf16, #tpu.memory_space<vmem>>, vector<1x252xbf16>,
    %284 = vector.extract_strided_slice %268 {offsets = [3, 0], sizes = [1, 252], strides = [1, 1]} : vector<32x252xbf16> to vector<1x252xbf16>
    %285 = vector.shape_cast %284 : vector<1x252xbf16> to vector<252xbf16>
    %c1_81 = arith.constant 1 : index
    %c756_82 = arith.constant 756 : index
    %286 = vector.load %arg11[%c1_81, %c756_82] : memref<2x8064xbf16, #tpu.memory_space<vmem>>, vector<1x252xbf16>
    %287 = vector.shape_cast %286 : vector<1x252xbf16> to vector<252xbf16>
    %288 = vector.shape_cast %285 : vector<252xbf16> to vector<1x252xbf16>
    tpu.vector_store %arg11[%c1_81, %c756_82], %288 {strides = array<i32>} : memref<2x8064xbf16, #tpu.memory_space<vmem>>, vector<1x252xbf16>,
    %289 = vector.extract_strided_slice %268 {offsets = [4, 0], sizes = [1, 252], strides = [1, 1]} : vector<32x252xbf16> to vector<1x252xbf16>
    %290 = vector.shape_cast %289 : vector<1x252xbf16> to vector<252xbf16>
    %c1_83 = arith.constant 1 : index
    %c1008_84 = arith.constant 1008 : index
    %291 = vector.load %arg11[%c1_83, %c1008_84] : memref<2x8064xbf16, #tpu.memory_space<vmem>>, vector<1x252xbf16>
    %292 = vector.shape_cast %291 : vector<1x252xbf16> to vector<252xbf16>
    %293 = vector.shape_cast %290 : vector<252xbf16> to vector<1x252xbf16>
    tpu.vector_store %arg11[%c1_83, %c1008_84], %293 {strides = array<i32>} : memref<2x8064xbf16, #tpu.memory_space<vmem>>, vector<1x252xbf16>,
    %294 = vector.extract_strided_slice %268 {offsets = [5, 0], sizes = [1, 252], strides = [1, 1]} : vector<32x252xbf16> to vector<1x252xbf16>
    %295 = vector.shape_cast %294 : vector<1x252xbf16> to vector<252xbf16>
    %c1_85 = arith.constant 1 : index
    %c1260_86 = arith.constant 1260 : index
    %296 = vector.load %arg11[%c1_85, %c1260_86] : memref<2x8064xbf16, #tpu.memory_space<vmem>>, vector<1x252xbf16>
    %297 = vector.shape_cast %296 : vector<1x252xbf16> to vector<252xbf16>
    %298 = vector.shape_cast %295 : vector<252xbf16> to vector<1x252xbf16>
    tpu.vector_store %arg11[%c1_85, %c1260_86], %298 {strides = array<i32>} : memref<2x8064xbf16, #tpu.memory_space<vmem>>, vector<1x252xbf16>,
    %299 = vector.extract_strided_slice %268 {offsets = [6, 0], sizes = [1, 252], strides = [1, 1]} : vector<32x252xbf16> to vector<1x252xbf16>
    %300 = vector.shape_cast %299 : vector<1x252xbf16> to vector<252xbf16>
    %c1_87 = arith.constant 1 : index
    %c1512_88 = arith.constant 1512 : index
    %301 = vector.load %arg11[%c1_87, %c1512_88] : memref<2x8064xbf16, #tpu.memory_space<vmem>>, vector<1x252xbf16>
    %302 = vector.shape_cast %301 : vector<1x252xbf16> to vector<252xbf16>
    %303 = vector.shape_cast %300 : vector<252xbf16> to vector<1x252xbf16>
    tpu.vector_store %arg11[%c1_87, %c1512_88], %303 {strides = array<i32>} : memref<2x8064xbf16, #tpu.memory_space<vmem>>, vector<1x252xbf16>,
    %304 = vector.extract_strided_slice %268 {offsets = [7, 0], sizes = [1, 252], strides = [1, 1]} : vector<32x252xbf16> to vector<1x252xbf16>
    %305 = vector.shape_cast %304 : vector<1x252xbf16> to vector<252xbf16>
    %c1_89 = arith.constant 1 : index
    %c1764_90 = arith.constant 1764 : index
    %306 = vector.load %arg11[%c1_89, %c1764_90] : memref<2x8064xbf16, #tpu.memory_space<vmem>>, vector<1x252xbf16>
    %307 = vector.shape_cast %306 : vector<1x252xbf16> to vector<252xbf16>
    %308 = vector.shape_cast %305 : vector<252xbf16> to vector<1x252xbf16>
    tpu.vector_store %arg11[%c1_89, %c1764_90], %308 {strides = array<i32>} : memref<2x8064xbf16, #tpu.memory_space<vmem>>, vector<1x252xbf16>,
    %309 = vector.extract_strided_slice %268 {offsets = [8, 0], sizes = [1, 252], strides = [1, 1]} : vector<32x252xbf16> to vector<1x252xbf16>
    %310 = vector.shape_cast %309 : vector<1x252xbf16> to vector<252xbf16>
    %c1_91 = arith.constant 1 : index
    %c2016_92 = arith.constant 2016 : index
    %311 = vector.load %arg11[%c1_91, %c2016_92] : memref<2x8064xbf16, #tpu.memory_space<vmem>>, vector<1x252xbf16>
    %312 = vector.shape_cast %311 : vector<1x252xbf16> to vector<252xbf16>
    %313 = vector.shape_cast %310 : vector<252xbf16> to vector<1x252xbf16>
    tpu.vector_store %arg11[%c1_91, %c2016_92], %313 {strides = array<i32>} : memref<2x8064xbf16, #tpu.memory_space<vmem>>, vector<1x252xbf16>,
    %314 = vector.extract_strided_slice %268 {offsets = [9, 0], sizes = [1, 252], strides = [1, 1]} : vector<32x252xbf16> to vector<1x252xbf16>
    %315 = vector.shape_cast %314 : vector<1x252xbf16> to vector<252xbf16>
    %c1_93 = arith.constant 1 : index
    %c2268_94 = arith.constant 2268 : index
    %316 = vector.load %arg11[%c1_93, %c2268_94] : memref<2x8064xbf16, #tpu.memory_space<vmem>>, vector<1x252xbf16>
    %317 = vector.shape_cast %316 : vector<1x252xbf16> to vector<252xbf16>
    %318 = vector.shape_cast %315 : vector<252xbf16> to vector<1x252xbf16>
    tpu.vector_store %arg11[%c1_93, %c2268_94], %318 {strides = array<i32>} : memref<2x8064xbf16, #tpu.memory_space<vmem>>, vector<1x252xbf16>,
    %319 = vector.extract_strided_slice %268 {offsets = [10, 0], sizes = [1, 252], strides = [1, 1]} : vector<32x252xbf16> to vector<1x252xbf16>
    %320 = vector.shape_cast %319 : vector<1x252xbf16> to vector<252xbf16>
    %c1_95 = arith.constant 1 : index
    %c2520_96 = arith.constant 2520 : index
    %321 = vector.load %arg11[%c1_95, %c2520_96] : memref<2x8064xbf16, #tpu.memory_space<vmem>>, vector<1x252xbf16>
    %322 = vector.shape_cast %321 : vector<1x252xbf16> to vector<252xbf16>
    %323 = vector.shape_cast %320 : vector<252xbf16> to vector<1x252xbf16>
    tpu.vector_store %arg11[%c1_95, %c2520_96], %323 {strides = array<i32>} : memref<2x8064xbf16, #tpu.memory_space<vmem>>, vector<1x252xbf16>,
    %324 = vector.extract_strided_slice %268 {offsets = [11, 0], sizes = [1, 252], strides = [1, 1]} : vector<32x252xbf16> to vector<1x252xbf16>
    %325 = vector.shape_cast %324 : vector<1x252xbf16> to vector<252xbf16>
    %c1_97 = arith.constant 1 : index
    %c2772_98 = arith.constant 2772 : index
    %326 = vector.load %arg11[%c1_97, %c2772_98] : memref<2x8064xbf16, #tpu.memory_space<vmem>>, vector<1x252xbf16>
    %327 = vector.shape_cast %326 : vector<1x252xbf16> to vector<252xbf16>
    %328 = vector.shape_cast %325 : vector<252xbf16> to vector<1x252xbf16>
    tpu.vector_store %arg11[%c1_97, %c2772_98], %328 {strides = array<i32>} : memref<2x8064xbf16, #tpu.memory_space<vmem>>, vector<1x252xbf16>,
    %329 = vector.extract_strided_slice %268 {offsets = [12, 0], sizes = [1, 252], strides = [1, 1]} : vector<32x252xbf16> to vector<1x252xbf16>
    %330 = vector.shape_cast %329 : vector<1x252xbf16> to vector<252xbf16>
    %c1_99 = arith.constant 1 : index
    %c3024_100 = arith.constant 3024 : index
    %331 = vector.load %arg11[%c1_99, %c3024_100] : memref<2x8064xbf16, #tpu.memory_space<vmem>>, vector<1x252xbf16>
    %332 = vector.shape_cast %331 : vector<1x252xbf16> to vector<252xbf16>
    %333 = vector.shape_cast %330 : vector<252xbf16> to vector<1x252xbf16>
    tpu.vector_store %arg11[%c1_99, %c3024_100], %333 {strides = array<i32>} : memref<2x8064xbf16, #tpu.memory_space<vmem>>, vector<1x252xbf16>,
    %334 = vector.extract_strided_slice %268 {offsets = [13, 0], sizes = [1, 252], strides = [1, 1]} : vector<32x252xbf16> to vector<1x252xbf16>
    %335 = vector.shape_cast %334 : vector<1x252xbf16> to vector<252xbf16>
    %c1_101 = arith.constant 1 : index
    %c3276_102 = arith.constant 3276 : index
    %336 = vector.load %arg11[%c1_101, %c3276_102] : memref<2x8064xbf16, #tpu.memory_space<vmem>>, vector<1x252xbf16>
    %337 = vector.shape_cast %336 : vector<1x252xbf16> to vector<252xbf16>
    %338 = vector.shape_cast %335 : vector<252xbf16> to vector<1x252xbf16>
    tpu.vector_store %arg11[%c1_101, %c3276_102], %338 {strides = array<i32>} : memref<2x8064xbf16, #tpu.memory_space<vmem>>, vector<1x252xbf16>,
    %339 = vector.extract_strided_slice %268 {offsets = [14, 0], sizes = [1, 252], strides = [1, 1]} : vector<32x252xbf16> to vector<1x252xbf16>
    %340 = vector.shape_cast %339 : vector<1x252xbf16> to vector<252xbf16>
    %c1_103 = arith.constant 1 : index
    %c3528_104 = arith.constant 3528 : index
    %341 = vector.load %arg11[%c1_103, %c3528_104] : memref<2x8064xbf16, #tpu.memory_space<vmem>>, vector<1x252xbf16>
    %342 = vector.shape_cast %341 : vector<1x252xbf16> to vector<252xbf16>
    %343 = vector.shape_cast %340 : vector<252xbf16> to vector<1x252xbf16>
    tpu.vector_store %arg11[%c1_103, %c3528_104], %343 {strides = array<i32>} : memref<2x8064xbf16, #tpu.memory_space<vmem>>, vector<1x252xbf16>,
    %344 = vector.extract_strided_slice %268 {offsets = [15, 0], sizes = [1, 252], strides = [1, 1]} : vector<32x252xbf16> to vector<1x252xbf16>
    %345 = vector.shape_cast %344 : vector<1x252xbf16> to vector<252xbf16>
    %c1_105 = arith.constant 1 : index
    %c3780_106 = arith.constant 3780 : index
    %346 = vector.load %arg11[%c1_105, %c3780_106] : memref<2x8064xbf16, #tpu.memory_space<vmem>>, vector<1x252xbf16>
    %347 = vector.shape_cast %346 : vector<1x252xbf16> to vector<252xbf16>
    %348 = vector.shape_cast %345 : vector<252xbf16> to vector<1x252xbf16>
    tpu.vector_store %arg11[%c1_105, %c3780_106], %348 {strides = array<i32>} : memref<2x8064xbf16, #tpu.memory_space<vmem>>, vector<1x252xbf16>,
    %349 = vector.extract_strided_slice %268 {offsets = [16, 0], sizes = [1, 252], strides = [1, 1]} : vector<32x252xbf16> to vector<1x252xbf16>
    %350 = vector.shape_cast %349 : vector<1x252xbf16> to vector<252xbf16>
    %c1_107 = arith.constant 1 : index
    %c4032_108 = arith.constant 4032 : index
    %351 = vector.load %arg11[%c1_107, %c4032_108] : memref<2x8064xbf16, #tpu.memory_space<vmem>>, vector<1x252xbf16>
    %352 = vector.shape_cast %351 : vector<1x252xbf16> to vector<252xbf16>
    %353 = vector.shape_cast %350 : vector<252xbf16> to vector<1x252xbf16>
    tpu.vector_store %arg11[%c1_107, %c4032_108], %353 {strides = array<i32>} : memref<2x8064xbf16, #tpu.memory_space<vmem>>, vector<1x252xbf16>,
    %354 = vector.extract_strided_slice %268 {offsets = [17, 0], sizes = [1, 252], strides = [1, 1]} : vector<32x252xbf16> to vector<1x252xbf16>
    %355 = vector.shape_cast %354 : vector<1x252xbf16> to vector<252xbf16>
    %c1_109 = arith.constant 1 : index
    %c4284_110 = arith.constant 4284 : index
    %356 = vector.load %arg11[%c1_109, %c4284_110] : memref<2x8064xbf16, #tpu.memory_space<vmem>>, vector<1x252xbf16>
    %357 = vector.shape_cast %356 : vector<1x252xbf16> to vector<252xbf16>
    %358 = vector.shape_cast %355 : vector<252xbf16> to vector<1x252xbf16>
    tpu.vector_store %arg11[%c1_109, %c4284_110], %358 {strides = array<i32>} : memref<2x8064xbf16, #tpu.memory_space<vmem>>, vector<1x252xbf16>,
    %359 = vector.extract_strided_slice %268 {offsets = [18, 0], sizes = [1, 252], strides = [1, 1]} : vector<32x252xbf16> to vector<1x252xbf16>
    %360 = vector.shape_cast %359 : vector<1x252xbf16> to vector<252xbf16>
    %c1_111 = arith.constant 1 : index
    %c4536_112 = arith.constant 4536 : index
    %361 = vector.load %arg11[%c1_111, %c4536_112] : memref<2x8064xbf16, #tpu.memory_space<vmem>>, vector<1x252xbf16>
    %362 = vector.shape_cast %361 : vector<1x252xbf16> to vector<252xbf16>
    %363 = vector.shape_cast %360 : vector<252xbf16> to vector<1x252xbf16>
    tpu.vector_store %arg11[%c1_111, %c4536_112], %363 {strides = array<i32>} : memref<2x8064xbf16, #tpu.memory_space<vmem>>, vector<1x252xbf16>,
    %364 = vector.extract_strided_slice %268 {offsets = [19, 0], sizes = [1, 252], strides = [1, 1]} : vector<32x252xbf16> to vector<1x252xbf16>
    %365 = vector.shape_cast %364 : vector<1x252xbf16> to vector<252xbf16>
    %c1_113 = arith.constant 1 : index
    %c4788_114 = arith.constant 4788 : index
    %366 = vector.load %arg11[%c1_113, %c4788_114] : memref<2x8064xbf16, #tpu.memory_space<vmem>>, vector<1x252xbf16>
    %367 = vector.shape_cast %366 : vector<1x252xbf16> to vector<252xbf16>
    %368 = vector.shape_cast %365 : vector<252xbf16> to vector<1x252xbf16>
    tpu.vector_store %arg11[%c1_113, %c4788_114], %368 {strides = array<i32>} : memref<2x8064xbf16, #tpu.memory_space<vmem>>, vector<1x252xbf16>,
    %369 = vector.extract_strided_slice %268 {offsets = [20, 0], sizes = [1, 252], strides = [1, 1]} : vector<32x252xbf16> to vector<1x252xbf16>
    %370 = vector.shape_cast %369 : vector<1x252xbf16> to vector<252xbf16>
    %c1_115 = arith.constant 1 : index
    %c5040_116 = arith.constant 5040 : index
    %371 = vector.load %arg11[%c1_115, %c5040_116] : memref<2x8064xbf16, #tpu.memory_space<vmem>>, vector<1x252xbf16>
    %372 = vector.shape_cast %371 : vector<1x252xbf16> to vector<252xbf16>
    %373 = vector.shape_cast %370 : vector<252xbf16> to vector<1x252xbf16>
    tpu.vector_store %arg11[%c1_115, %c5040_116], %373 {strides = array<i32>} : memref<2x8064xbf16, #tpu.memory_space<vmem>>, vector<1x252xbf16>,
    %374 = vector.extract_strided_slice %268 {offsets = [21, 0], sizes = [1, 252], strides = [1, 1]} : vector<32x252xbf16> to vector<1x252xbf16>
    %375 = vector.shape_cast %374 : vector<1x252xbf16> to vector<252xbf16>
    %c1_117 = arith.constant 1 : index
    %c5292_118 = arith.constant 5292 : index
    %376 = vector.load %arg11[%c1_117, %c5292_118] : memref<2x8064xbf16, #tpu.memory_space<vmem>>, vector<1x252xbf16>
    %377 = vector.shape_cast %376 : vector<1x252xbf16> to vector<252xbf16>
    %378 = vector.shape_cast %375 : vector<252xbf16> to vector<1x252xbf16>
    tpu.vector_store %arg11[%c1_117, %c5292_118], %378 {strides = array<i32>} : memref<2x8064xbf16, #tpu.memory_space<vmem>>, vector<1x252xbf16>,
    %379 = vector.extract_strided_slice %268 {offsets = [22, 0], sizes = [1, 252], strides = [1, 1]} : vector<32x252xbf16> to vector<1x252xbf16>
    %380 = vector.shape_cast %379 : vector<1x252xbf16> to vector<252xbf16>
    %c1_119 = arith.constant 1 : index
    %c5544_120 = arith.constant 5544 : index
    %381 = vector.load %arg11[%c1_119, %c5544_120] : memref<2x8064xbf16, #tpu.memory_space<vmem>>, vector<1x252xbf16>
    %382 = vector.shape_cast %381 : vector<1x252xbf16> to vector<252xbf16>
    %383 = vector.shape_cast %380 : vector<252xbf16> to vector<1x252xbf16>
    tpu.vector_store %arg11[%c1_119, %c5544_120], %383 {strides = array<i32>} : memref<2x8064xbf16, #tpu.memory_space<vmem>>, vector<1x252xbf16>,
    %384 = vector.extract_strided_slice %268 {offsets = [23, 0], sizes = [1, 252], strides = [1, 1]} : vector<32x252xbf16> to vector<1x252xbf16>
    %385 = vector.shape_cast %384 : vector<1x252xbf16> to vector<252xbf16>
    %c1_121 = arith.constant 1 : index
    %c5796_122 = arith.constant 5796 : index
    %386 = vector.load %arg11[%c1_121, %c5796_122] : memref<2x8064xbf16, #tpu.memory_space<vmem>>, vector<1x252xbf16>
    %387 = vector.shape_cast %386 : vector<1x252xbf16> to vector<252xbf16>
    %388 = vector.shape_cast %385 : vector<252xbf16> to vector<1x252xbf16>
    tpu.vector_store %arg11[%c1_121, %c5796_122], %388 {strides = array<i32>} : memref<2x8064xbf16, #tpu.memory_space<vmem>>, vector<1x252xbf16>,
    %389 = vector.extract_strided_slice %268 {offsets = [24, 0], sizes = [1, 252], strides = [1, 1]} : vector<32x252xbf16> to vector<1x252xbf16>
    %390 = vector.shape_cast %389 : vector<1x252xbf16> to vector<252xbf16>
    %c1_123 = arith.constant 1 : index
    %c6048_124 = arith.constant 6048 : index
    %391 = vector.load %arg11[%c1_123, %c6048_124] : memref<2x8064xbf16, #tpu.memory_space<vmem>>, vector<1x252xbf16>
    %392 = vector.shape_cast %391 : vector<1x252xbf16> to vector<252xbf16>
    %393 = vector.shape_cast %390 : vector<252xbf16> to vector<1x252xbf16>
    tpu.vector_store %arg11[%c1_123, %c6048_124], %393 {strides = array<i32>} : memref<2x8064xbf16, #tpu.memory_space<vmem>>, vector<1x252xbf16>,
    %394 = vector.extract_strided_slice %268 {offsets = [25, 0], sizes = [1, 252], strides = [1, 1]} : vector<32x252xbf16> to vector<1x252xbf16>
    %395 = vector.shape_cast %394 : vector<1x252xbf16> to vector<252xbf16>
    %c1_125 = arith.constant 1 : index
    %c6300_126 = arith.constant 6300 : index
    %396 = vector.load %arg11[%c1_125, %c6300_126] : memref<2x8064xbf16, #tpu.memory_space<vmem>>, vector<1x252xbf16>
    %397 = vector.shape_cast %396 : vector<1x252xbf16> to vector<252xbf16>
    %398 = vector.shape_cast %395 : vector<252xbf16> to vector<1x252xbf16>
    tpu.vector_store %arg11[%c1_125, %c6300_126], %398 {strides = array<i32>} : memref<2x8064xbf16, #tpu.memory_space<vmem>>, vector<1x252xbf16>,
    %399 = vector.extract_strided_slice %268 {offsets = [26, 0], sizes = [1, 252], strides = [1, 1]} : vector<32x252xbf16> to vector<1x252xbf16>
    %400 = vector.shape_cast %399 : vector<1x252xbf16> to vector<252xbf16>
    %c1_127 = arith.constant 1 : index
    %c6552_128 = arith.constant 6552 : index
    %401 = vector.load %arg11[%c1_127, %c6552_128] : memref<2x8064xbf16, #tpu.memory_space<vmem>>, vector<1x252xbf16>
    %402 = vector.shape_cast %401 : vector<1x252xbf16> to vector<252xbf16>
    %403 = vector.shape_cast %400 : vector<252xbf16> to vector<1x252xbf16>
    tpu.vector_store %arg11[%c1_127, %c6552_128], %403 {strides = array<i32>} : memref<2x8064xbf16, #tpu.memory_space<vmem>>, vector<1x252xbf16>,
    %404 = vector.extract_strided_slice %268 {offsets = [27, 0], sizes = [1, 252], strides = [1, 1]} : vector<32x252xbf16> to vector<1x252xbf16>
    %405 = vector.shape_cast %404 : vector<1x252xbf16> to vector<252xbf16>
    %c1_129 = arith.constant 1 : index
    %c6804_130 = arith.constant 6804 : index
    %406 = vector.load %arg11[%c1_129, %c6804_130] : memref<2x8064xbf16, #tpu.memory_space<vmem>>, vector<1x252xbf16>
    %407 = vector.shape_cast %406 : vector<1x252xbf16> to vector<252xbf16>
    %408 = vector.shape_cast %405 : vector<252xbf16> to vector<1x252xbf16>
    tpu.vector_store %arg11[%c1_129, %c6804_130], %408 {strides = array<i32>} : memref<2x8064xbf16, #tpu.memory_space<vmem>>, vector<1x252xbf16>,
    %409 = vector.extract_strided_slice %268 {offsets = [28, 0], sizes = [1, 252], strides = [1, 1]} : vector<32x252xbf16> to vector<1x252xbf16>
    %410 = vector.shape_cast %409 : vector<1x252xbf16> to vector<252xbf16>
    %c1_131 = arith.constant 1 : index
    %c7056_132 = arith.constant 7056 : index
    %411 = vector.load %arg11[%c1_131, %c7056_132] : memref<2x8064xbf16, #tpu.memory_space<vmem>>, vector<1x252xbf16>
    %412 = vector.shape_cast %411 : vector<1x252xbf16> to vector<252xbf16>
    %413 = vector.shape_cast %410 : vector<252xbf16> to vector<1x252xbf16>
    tpu.vector_store %arg11[%c1_131, %c7056_132], %413 {strides = array<i32>} : memref<2x8064xbf16, #tpu.memory_space<vmem>>, vector<1x252xbf16>,
    %414 = vector.extract_strided_slice %268 {offsets = [29, 0], sizes = [1, 252], strides = [1, 1]} : vector<32x252xbf16> to vector<1x252xbf16>
    %415 = vector.shape_cast %414 : vector<1x252xbf16> to vector<252xbf16>
    %c1_133 = arith.constant 1 : index
    %c7308_134 = arith.constant 7308 : index
    %416 = vector.load %arg11[%c1_133, %c7308_134] : memref<2x8064xbf16, #tpu.memory_space<vmem>>, vector<1x252xbf16>
    %417 = vector.shape_cast %416 : vector<1x252xbf16> to vector<252xbf16>
    %418 = vector.shape_cast %415 : vector<252xbf16> to vector<1x252xbf16>
    tpu.vector_store %arg11[%c1_133, %c7308_134], %418 {strides = array<i32>} : memref<2x8064xbf16, #tpu.memory_space<vmem>>, vector<1x252xbf16>,
    %419 = vector.extract_strided_slice %268 {offsets = [30, 0], sizes = [1, 252], strides = [1, 1]} : vector<32x252xbf16> to vector<1x252xbf16>
    %420 = vector.shape_cast %419 : vector<1x252xbf16> to vector<252xbf16>
    %c1_135 = arith.constant 1 : index
    %c7560_136 = arith.constant 7560 : index
    %421 = vector.load %arg11[%c1_135, %c7560_136] : memref<2x8064xbf16, #tpu.memory_space<vmem>>, vector<1x252xbf16>
    %422 = vector.shape_cast %421 : vector<1x252xbf16> to vector<252xbf16>
    %423 = vector.shape_cast %420 : vector<252xbf16> to vector<1x252xbf16>
    tpu.vector_store %arg11[%c1_135, %c7560_136], %423 {strides = array<i32>} : memref<2x8064xbf16, #tpu.memory_space<vmem>>, vector<1x252xbf16>,
    %424 = vector.extract_strided_slice %268 {offsets = [31, 0], sizes = [1, 252], strides = [1, 1]} : vector<32x252xbf16> to vector<1x252xbf16>
    %425 = vector.shape_cast %424 : vector<1x252xbf16> to vector<252xbf16>
    %c1_137 = arith.constant 1 : index
    %c7812_138 = arith.constant 7812 : index
    %426 = vector.load %arg11[%c1_137, %c7812_138] : memref<2x8064xbf16, #tpu.memory_space<vmem>>, vector<1x252xbf16>
    %427 = vector.shape_cast %426 : vector<1x252xbf16> to vector<252xbf16>
    %428 = vector.shape_cast %425 : vector<252xbf16> to vector<1x252xbf16>
    tpu.vector_store %arg11[%c1_137, %c7812_138], %428 {strides = array<i32>} : memref<2x8064xbf16, #tpu.memory_space<vmem>>, vector<1x252xbf16>,
    %c0_139 = arith.constant 0 : index
    %c0_140 = arith.constant 0 : index
    %429 = vector.load %arg11[%c0_139, %c0_140] : memref<2x8064xbf16, #tpu.memory_space<vmem>>, vector<2x8064xbf16>
    %c0_141 = arith.constant 0 : index
    %c0_142 = arith.constant 0 : index
    %430 = vector.load %arg5[%c0_141, %c0_142] : memref<32x8064xbf16, #tpu.memory_space<vmem>>, vector<32x8064xbf16>
    %cst_143 = arith.constant dense<0.000000e+00> : vector<2x32xf32>
    %431 = tpu.matmul %429, %430, %cst_143 {dimension_numbers = #tpu.dot_dimension_numbers<[1], [1], [0], [0], [0, 0, 1, 0], [], []>} : vector<2x8064xbf16>, vector<32x8064xbf16>, vector<2x32xf32> -> vector<2x32xf32>
    %c0_144 = arith.constant 0 : index
    %c0_145 = arith.constant 0 : index
    %432 = vector.load %arg6[%c0_144, %c0_145] : memref<1x32xf32, #tpu.memory_space<vmem>>, vector<1x32xf32>
    %433 = vector.broadcast %432 : vector<1x32xf32> to vector<2x32xf32>
    %434 = arith.addf %431, %433 : vector<2x32xf32>
    %435 = arith.truncf %434 : vector<2x32xf32> to vector<2x32xbf16>
    %c0_146 = arith.constant 0 : index
    %c0_147 = arith.constant 0 : index
    %436 = vector.load %arg7[%c0_146, %c0_147] : memref<32x4xbf16, #tpu.memory_space<vmem>>, vector<32x4xbf16>
    %cst_148 = arith.constant dense<0.000000e+00> : vector<2x4xf32>
    %437 = tpu.matmul %435, %436, %cst_148 {dimension_numbers = #tpu.dot_dimension_numbers<[1], [0], [0], [1], [0, 0, 1, 1], [], []>} : vector<2x32xbf16>, vector<32x4xbf16>, vector<2x4xf32> -> vector<2x4xf32>
    %c0_149 = arith.constant 0 : index
    %c0_150 = arith.constant 0 : index
    %438 = vector.load %arg8[%c0_149, %c0_150] : memref<1x4xf32, #tpu.memory_space<vmem>>, vector<1x4xf32>
    %439 = vector.broadcast %438 : vector<1x4xf32> to vector<2x4xf32>
    %440 = arith.addf %437, %439 : vector<2x4xf32>
    %c0_151 = arith.constant 0 : index
    %c0_152 = arith.constant 0 : index
    %441 = vector.load %arg9[%c0_151, %c0_152] : memref<2x32xf32, #tpu.memory_space<vmem>>, vector<2x32xf32>
    tpu.vector_store %arg9[%c0_151, %c0_152], %434 {strides = array<i32>} : memref<2x32xf32, #tpu.memory_space<vmem>>, vector<2x32xf32>,
    %c0_153 = arith.constant 0 : index
    %c0_154 = arith.constant 0 : index
    %442 = vector.load %arg10[%c0_153, %c0_154] : memref<2x4xf32, #tpu.memory_space<vmem>>, vector<2x4xf32>
    tpu.vector_store %arg10[%c0_153, %c0_154], %440 {strides = array<i32>} : memref<2x4xf32, #tpu.memory_space<vmem>>, vector<2x4xf32>,
    return
  }
}

</mosaic_0001>

<bundles_post_ra>
// kernel: forward.1
= control target key start
LH: loop header
LB: loop body
LE: loop exit
PB: predicated region body
PF: predicated region fallthrough
CT: control target
= control target key end

     0   :  { %16 = vsyncpa [#allocation4], 0  ;;  %s7271_s0 = inlined_call_operand.vmem [shape: f32[2,1,300], index: 0, kind: input, shape index: {}]   ;;  %s7272_s1 = inlined_call_operand.vmem [shape: f32[5,16,1], index: 1, kind: input, shape index: {}]   ;;  %s7273_s2 = inlined_call_operand.vmem [shape: f32[16,1], index: 2, kind: input, shape index: {}]   ;;  %s7274_s3 = inlined_call_operand.vmem [shape: bf16[32,80], index: 3, kind: input, shape index: {}]   ;;  %s7275_s4 = inlined_call_operand.vmem [shape: f32[32,1], index: 4, kind: input, shape index: {}]   ;;  %s7276_s5 = inlined_call_operand.hbm [shape: bf16[32,8064], index: 5, kind: input, shape index: {}]   ;;  %s7277_s6 = inlined_call_operand.vmem [shape: f32[1,32], index: 6, kind: input, shape index: {}]   ;;  %s7278_s7 = inlined_call_operand.vmem [shape: bf16[32,4], index: 7, kind: input, shape index: {}]   ;;  %s7279_s8 = inlined_call_operand.vmem [shape: f32[1,4], index: 8, kind: input, shape index: {}]   ;;  %s7280_s9 = inlined_call_operand.hbm [shape: f32[2,32], index: 9, kind: output, shape index: {0}]   ;;  %s7281_s10 = inlined_call_operand.hbm [shape: f32[2,4], index: 10, kind: output, shape index: {1}]  }
   0x1   :  { %17 = vsyncpa [#allocation5], 0 }
   0x2   :  { %18 = vsyncpa [#allocation8], 0  ;;  %s5300_s13 = smov [#allocation3]   ;;  %s5228_s17 = scalar_lea.hbm %s7276_s5, 16128 }
   0x3   :  { %s34_s14 = sshll.u32 %s5300_s13, 4  ;;  %p5229_p0 = scmp.ne.s32.totalorder %s7276_s5, %s5228_s17  ;;  %s35_s14 = int_to_ptr.vmem [resolvable:$true] %s34_s14 }
   0x4   :  { %p5232_p1 = scmp.lt.u32.totalorder %s5228_s17, %s7276_s5 }
   0x6   :  { %p5234_p2 = pnand %p5232_p1, %p5229_p0 }
   0x8   :  { %5237 = shalt.err (!%p5234_p2)
}
   0x9   :  { %s5238_s22 = scalar_lea.vmem %s35_s14, 16128  ;;  %p5243_p4 = scmp.lt.s32.totalorder %s35_s14, %s35_s14 }
   0xa   :  { %p5239_p3 = scmp.ne.s32.totalorder %s35_s14, %s5238_s22  ;;  %p5244_p5 = scmp.lt.s32.totalorder %s5238_s22, %s5238_s22 }
   0xc   :  { %p5245_p6 = por %p5244_p5, %p5243_p4 }
   0xe   :  { %p5246_p7 = pnand %p5245_p6, %p5239_p3 }
  0x10   :  { %5249 = shalt.err (!%p5246_p7)
}
  0x11   :  { %s5301_s23 = smov 4032   ;;  %s5302_s24 = smov 252  }
  0x12   :  { %40 = dma.hbm_to_vmem [thread:$0]  %s7276_s5, 16128, %s35_s14, [#allocation4], %s5301_s23, %s5301_s23, %s5302_s24  }
  0x13   :  { %5294 = dma.done.wait [#allocation4], 16128  }
  0x14   :  { %5295 = vsyncadd [#allocation4], 4294951168  ;;  %v5303_v0 = vmov 0   ;;  %v4664_v1 = vld [vmem:[%s7272_s1 + $0x20] sm:$0xff]  ;;  %v4662_v2 = vld [vmem:[%s7272_s1 + $0x10] sm:$0xff]  ;;  %v105_v13 = vlaneseq  ;;  %s5305_s5 = smov 116  }
  0x15   :  { %5027 = vset.pattern.permute.xlu1 %v5303_v0  ;;  %5026 = vset.pattern.permute.xlu0 %v5303_v0  ;;  %v4665_v3 = vld [vmem:[%s7272_s1 + $0x28] sm:$0xff]  ;;  %v4663_v4 = vld [vmem:[%s7272_s1 + $0x18] sm:$0xff]  ;;  %v4666_v6 = vld [vmem:[%s7272_s1 + $0x30] sm:$0xff]  ;;  %s5306_s11 = smov 110   ;;  %s5307_s12 = smov 104   ;;  %vm169_vm0 = vcmask 998400  }
  0x16   :  { %453 = vmatprep.mubr.bf16.mxu1 %v5303_v0  ;;  %191 = vperm.xlu1 %5027, %v4664_v1   ;;  %v4667_v5 = vld [vmem:[%s7272_s1 + $0x38] sm:$0xff]  ;;  %v4669_v7 = vld [vmem:[%s7272_s1 + $0x48] sm:$0xff]  ;;  %v4668_v8 = vld [vmem:[%s7272_s1 + $0x40] sm:$0xff]  ;;  %v5448_v14 = vshrl.u32 %v105_v13, 7  ;;  %vm7284_vm1 = vcmask 949248   ;;  %vm277_vm2 = vcmask 900096  }
  0x17   :  { %137 = vperm.xlu0 %5026, %v4662_v2   ;;  %v93_v9 = vld [vmem:[%s7272_s1 + $0x8] sm:$0xff]  ;;  %v92_v10 = vld [vmem:[%s7272_s1] sm:$0xff]  ;;  %vm7283_vm3 = vcmask 850944   ;;  %vm7282_vm4 = vcmask 654336   ;;  %vm7285_vm5 = vsmask.f32 7938 }
  0x18   :  { %v52_v11 = vld [vmem:[%s7273_s2 + $0x8] sm:$0xff]  ;;  %v51_v12 = vld [vmem:[%s7273_s2] sm:$0xff]  ;;  %v115_v15 = vsub.s32 2, %v5448_v14  ;;  %v111_v16 = vsub.s32 1, %v5448_v14  ;;  %v107_v23 = vsub.s32 0, %v5448_v14  ;;  %s5304_s2 = smov 122  }
  0x19   :  { %v91_v17 = vld [vmem:[%s7271_s0] sm:$0x7]  ;;  %v4694_v52 = vld [vmem:[%s7271_s0 + $0x3] sm:$0x7]  ;;  %vm1534_vm6 = vsmask.f32 7942 }
  0x1a   :  { %196 = vperm.xlu1 %5027, %v4665_v3   ;;  %v5457_v18 = vrot.slane %v91_v17, %v115_v15  ;;  %v5461_v19 = vrot.slane %v91_v17, %v111_v16  ;;  %v5472_v27 = vrot.slane %v91_v17, %v107_v23  ;;  %v5517_v53 = vrot.slane %v4694_v52, %v111_v16  ;;  %s5310_s22 = smov 124   ;;  %s5311_s23 = smov 112  }
  0x1b   :  { %142 = vperm.xlu0 %5026, %v4663_v4   ;;  %v5521_v54 = vrot.slane %v4694_v52, %v115_v15  ;;  %v5533_v61 = vrot.slane %v4694_v52, %v107_v23  ;;  %vm504_vm7 = vcmask 1040384   ;;  %vm507_vm8 = vcmask 1008641   ;;  %s5312_s24 = smov 108   ;;  %s5313_s25 = smov 100  }
  0x1c   :  { %vm5724_vm9 = vmand %vm504_vm7, %vm7285_vm5  ;;  %vm7296_vm12 = vsmask.f32 256  ;;  %vm508_vm13 = vsmask.f32 1280  ;;  %s5314_s28 = smov 96   ;;  %s5315_s29 = smov 92  }
  0x1d   :  { %vm5730_vm10 = vmand %vm507_vm8, %vm1534_vm6  ;;  %s5316_s1 = smov 88   ;;  %s5317_s30 = smov 84   ;;  %vm7290_vm11 = vcmask 1041344  }
  0x1e   :  { %250 = vperm.xlu1 %5027, %v4667_v5   ;;  %vm5743_vm14 = vmand %vm504_vm7, %vm7296_vm12  ;;  %vm7286_vm7 = vcmask 1041376   ;;  %s5322_s13 = smov 64   ;;  %s5323_s14 = smov 60  }
  0x1f   :  { %245 = vperm.xlu0 %5026, %v4666_v6   ;;  %vm509_vm15 = vmand %vm507_vm8, %vm508_vm13  ;;  %s5324_s0 = smov 52   ;;  %s5325_s15 = smov 56  }
  0x20   :  { %s5327_s18 = smov 44   ;;  %s5328_s19 = smov 36  }
  0x21   :  { %s5329_s20 = smov 40   ;;  %s5330_s21 = smov 32  }
  0x22   :  { %304 = vperm.xlu1 %5027, %v4669_v7   ;;  %s5336_s26 = smov 12   ;;  %s5337_s27 = smov 4  }
  0x23   :  { %299 = vperm.xlu0 %5026, %v4668_v8  }
  0x26   :  { %1195 = vperm.xlu1 %5027, %v4663_v4  }
  0x27   :  { %1190 = vperm.xlu0 %5026, %v4662_v2  }
  0x2a   :  { %1247 = vperm.xlu1 %5027, %v4665_v3  }
  0x2b   :  { %1242 = vperm.xlu0 %5026, %v4664_v1  }
  0x2e   :  { %1299 = vperm.xlu1 %5027, %v4667_v5  }
  0x2f   :  { %1294 = vperm.xlu0 %5026, %v4666_v6  }
  0x32   :  { %1351 = vperm.xlu1 %5027, %v4669_v7  }
  0x33   :  { %1346 = vperm.xlu0 %5026, %v4668_v8  }
  0x36   :  { %101 = vperm.xlu1 %5027, %v93_v9  }
  0x37   :  { %96 = vperm.xlu0 %5026, %v92_v10  }
  0x3a   :  { %60 = vperm.xlu1 %5027, %v52_v11  }
  0x3b   :  { %55 = vperm.xlu0 %5026, %v51_v12  }
  0x3e   :  { %1155 = vperm.xlu1 %5027, %v93_v9  }
  0x3f   :  { %1150 = vperm.xlu0 %5026, %v92_v10  }
  0x95   :  { %v192_v30 = vpop.permute.xlu1 %191 }
  0x96   :  { %v138_v20 = vpop.permute.xlu0 %137  ;;  %v201_v31 = vmul.f32 %v192_v30, %v5457_v18  ;;  %v200_v32 = vmul.f32 %v192_v30, %v5461_v19  ;;  %v199_v37 = vmul.f32 %v192_v30, %v5472_v27 }
  0x97   :  { %v147_v21 = vmul.f32 %v138_v20, %v5457_v18  ;;  %v146_v22 = vmul.f32 %v138_v20, %v5461_v19  ;;  %v145_v29 = vmul.f32 %v138_v20, %v5472_v27 }
  0x99   :  { %161 = vrot.lane.b32.xlu1 %v147_v21, %s5304_s2  ;;  %159 = vrot.lane.b32.xlu0 %v146_v22, %s5304_s2  ;;  %v197_v33 = vpop.permute.xlu1 %196 }
  0x9a   :  { %v143_v24 = vpop.permute.xlu0 %142  ;;  %v204_v34 = vmul.f32 %v197_v33, %v5457_v18  ;;  %v203_v35 = vmul.f32 %v197_v33, %v5461_v19  ;;  %v202_v36 = vmul.f32 %v197_v33, %v5472_v27 }
  0x9b   :  { %v150_v25 = vmul.f32 %v143_v24, %v5457_v18  ;;  %v149_v26 = vmul.f32 %v143_v24, %v5461_v19  ;;  %v148_v28 = vmul.f32 %v143_v24, %v5472_v27 }
  0x9d   :  { %167 = vrot.lane.b32.xlu1 %v150_v25, %s5304_s2  ;;  %165 = vrot.lane.b32.xlu0 %v149_v26, %s5304_s2  ;;  %v251_v41 = vpop.permute.xlu1 %250 }
  0x9e   :  { %v246_v38 = vpop.permute.xlu0 %245  ;;  %v258_v42 = vmul.f32 %v251_v41, %v5457_v18  ;;  %v257_v43 = vmul.f32 %v251_v41, %v5461_v19  ;;  %v256_v44 = vmul.f32 %v251_v41, %v5472_v27 }
  0x9f   :  { %v255_v39 = vmul.f32 %v246_v38, %v5457_v18  ;;  %v254_v40 = vmul.f32 %v246_v38, %v5461_v19  ;;  %v253_v45 = vmul.f32 %v246_v38, %v5472_v27 }
  0xa1   :  { %163 = vrot.lane.b32.xlu1 %v148_v28, %s5304_s2  ;;  %157 = vrot.lane.b32.xlu0 %v145_v29, %s5304_s2  ;;  %v305_v49 = vpop.permute.xlu1 %304 }
  0xa2   :  { %v300_v46 = vpop.permute.xlu0 %299  ;;  %v312_v50 = vmul.f32 %v305_v49, %v5457_v18  ;;  %v311_v51 = vmul.f32 %v305_v49, %v5461_v19  ;;  %v310_v55 = vmul.f32 %v305_v49, %v5472_v27 }
  0xa3   :  { %v309_v47 = vmul.f32 %v300_v46, %v5457_v18  ;;  %v308_v48 = vmul.f32 %v300_v46, %v5461_v19  ;;  %v307_v56 = vmul.f32 %v300_v46, %v5472_v27 }
  0xa5   :  { %215 = vrot.lane.b32.xlu1 %v201_v31, %s5305_s5  ;;  %213 = vrot.lane.b32.xlu0 %v200_v32, %s5305_s5  ;;  %v1196_v60 = vpop.permute.xlu1 %1195 }
  0xa6   :  { %v1191_v57 = vpop.permute.xlu0 %1190  ;;  %v1203_v62 = vmul.f32 %v1196_v60, %v5521_v54  ;;  %v1202_v63 = vmul.f32 %v1196_v60, %v5517_v53  ;;  %v1201_v1 = vmul.f32 %v1196_v60, %v5533_v61 }
  0xa7   :  { %v1200_v58 = vmul.f32 %v1191_v57, %v5521_v54  ;;  %v1199_v59 = vmul.f32 %v1191_v57, %v5517_v53  ;;  %v1198_v2 = vmul.f32 %v1191_v57, %v5533_v61 }
  0xa9   :  { %221 = vrot.lane.b32.xlu1 %v204_v34, %s5305_s5  ;;  %219 = vrot.lane.b32.xlu0 %v203_v35, %s5305_s5  ;;  %v1248_v6 = vpop.permute.xlu1 %1247 }
  0xaa   :  { %v1243_v3 = vpop.permute.xlu0 %1242  ;;  %v1255_v7 = vmul.f32 %v1248_v6, %v5521_v54  ;;  %v1254_v8 = vmul.f32 %v1248_v6, %v5517_v53  ;;  %v1253_v9 = vmul.f32 %v1248_v6, %v5533_v61 }
  0xab   :  { %v1252_v4 = vmul.f32 %v1243_v3, %v5521_v54  ;;  %v1251_v5 = vmul.f32 %v1243_v3, %v5517_v53  ;;  %v1250_v10 = vmul.f32 %v1243_v3, %v5533_v61 }
  0xad   :  { %217 = vrot.lane.b32.xlu1 %v202_v36, %s5305_s5  ;;  %211 = vrot.lane.b32.xlu0 %v199_v37, %s5305_s5  ;;  %v1300_v15 = vpop.permute.xlu1 %1299 }
  0xae   :  { %v1295_v11 = vpop.permute.xlu0 %1294  ;;  %v1307_v16 = vmul.f32 %v1300_v15, %v5521_v54  ;;  %v1306_v17 = vmul.f32 %v1300_v15, %v5517_v53  ;;  %v1305_v20 = vmul.f32 %v1300_v15, %v5533_v61 }
  0xaf   :  { %v1304_v12 = vmul.f32 %v1295_v11, %v5521_v54  ;;  %v1303_v13 = vmul.f32 %v1295_v11, %v5517_v53  ;;  %v1302_v21 = vmul.f32 %v1295_v11, %v5533_v61 }
  0xb1   :  { %269 = vrot.lane.b32.xlu1 %v255_v39, %s5306_s11  ;;  %267 = vrot.lane.b32.xlu0 %v254_v40, %s5306_s11  ;;  %v1352_v25 = vpop.permute.xlu1 %1351 }
  0xb2   :  { %v1347_v22 = vpop.permute.xlu0 %1346  ;;  %v1359_v26 = vmul.f32 %v1352_v25, %v5521_v54  ;;  %v1358_v28 = vmul.f32 %v1352_v25, %v5517_v53  ;;  %v1357_v29 = vmul.f32 %v1352_v25, %v5533_v61 }
  0xb3   :  { %v1356_v23 = vmul.f32 %v1347_v22, %v5521_v54  ;;  %v1355_v24 = vmul.f32 %v1347_v22, %v5517_v53  ;;  %v1354_v30 = vmul.f32 %v1347_v22, %v5533_v61 }
  0xb5   :  { %275 = vrot.lane.b32.xlu1 %v258_v42, %s5306_s11  ;;  %273 = vrot.lane.b32.xlu0 %v257_v43, %s5306_s11  ;;  %v102_v31 = vpop.permute.xlu1 %101 }
  0xb6   :  { %v97_v32 = vpop.permute.xlu0 %96  ;;  %v125_v57 = vmul.f32 %v5457_v18, %v102_v31  ;;  %v124_v60 = vmul.f32 %v5461_v19, %v102_v31 }
  0xb7   :  { %v120_v6 = vmul.f32 %v5472_v27, %v97_v32 }
  0xb9   :  { %271 = vrot.lane.b32.xlu1 %v256_v44, %s5306_s11  ;;  %265 = vrot.lane.b32.xlu0 %v253_v45, %s5306_s11  ;;  %v5579_v33 = vpop.permute.xlu1 %60 }
  0xba   :  { %v5581_v34 = vpop.permute.xlu0 %55  ;;  %v131_v3 = vadd.f32 %v125_v57, %v5579_v33 }
  0xbb   :  { %v126_v25 = vadd.f32 %v120_v6, %v5581_v34 }
  0xbd   :  { %323 = vrot.lane.b32.xlu1 %v309_v47, %s5307_s12  ;;  %321 = vrot.lane.b32.xlu0 %v308_v48, %s5307_s12  ;;  %v5583_v35 = vpop.permute.xlu1 %1155 }
  0xbe   :  { %v5585_v36 = vpop.permute.xlu0 %1150 }
  0xc1   :  { %329 = vrot.lane.b32.xlu1 %v312_v50, %s5307_s12  ;;  %327 = vrot.lane.b32.xlu0 %v311_v51, %s5307_s12 }
  0xc5   :  { %325 = vrot.lane.b32.xlu1 %v310_v55, %s5307_s12  ;;  %319 = vrot.lane.b32.xlu0 %v307_v56, %s5307_s12  ;;  %v122_v55 = vmul.f32 %v5457_v18, %v97_v32  ;;  %v121_v56 = vmul.f32 %v5461_v19, %v97_v32  ;;  %v123_v18 = vmul.f32 %v5472_v27, %v102_v31 }
  0xc6   :  { %v130_v19 = vadd.f32 %v124_v60, %v5579_v33 }
  0xc9   :  { %1214 = vrot.lane.b32.xlu1 %v1200_v58, %s5304_s2  ;;  %1212 = vrot.lane.b32.xlu0 %v1199_v59, %s5304_s2  ;;  %v128_v58 = vadd.f32 %v122_v55, %v5581_v34 }
  0xcd   :  { %1220 = vrot.lane.b32.xlu1 %v1203_v62, %s5304_s2  ;;  %1218 = vrot.lane.b32.xlu0 %v1202_v63, %s5304_s2  ;;  %v127_v62 = vadd.f32 %v121_v56, %v5581_v34 }
  0xd1   :  { %1216 = vrot.lane.b32.xlu1 %v1201_v1, %s5304_s2  ;;  %1210 = vrot.lane.b32.xlu0 %v1198_v2, %s5304_s2 }
  0xd5   :  { %1266 = vrot.lane.b32.xlu1 %v1252_v4, %s5305_s5  ;;  %1264 = vrot.lane.b32.xlu0 %v1251_v5, %s5305_s5 }
  0xd9   :  { %1272 = vrot.lane.b32.xlu1 %v1255_v7, %s5305_s5  ;;  %1270 = vrot.lane.b32.xlu0 %v1254_v8, %s5305_s5 }
  0xdd   :  { %1268 = vrot.lane.b32.xlu1 %v1253_v9, %s5305_s5  ;;  %1262 = vrot.lane.b32.xlu0 %v1250_v10, %s5305_s5 }
  0xe1   :  { %1318 = vrot.lane.b32.xlu1 %v1304_v12, %s5306_s11  ;;  %1316 = vrot.lane.b32.xlu0 %v1303_v13, %s5306_s11 }
  0xe5   :  { %1324 = vrot.lane.b32.xlu1 %v1307_v16, %s5306_s11  ;;  %1322 = vrot.lane.b32.xlu0 %v1306_v17, %s5306_s11 }
  0xe9   :  { %1320 = vrot.lane.b32.xlu1 %v1305_v20, %s5306_s11  ;;  %1314 = vrot.lane.b32.xlu0 %v1302_v21, %s5306_s11 }
  0xed   :  { %1370 = vrot.lane.b32.xlu1 %v1356_v23, %s5307_s12  ;;  %1368 = vrot.lane.b32.xlu0 %v1355_v24, %s5307_s12  ;;  %v129_v24 = vadd.f32 %v123_v18, %v5579_v33 }
  0xf1   :  { %1376 = vrot.lane.b32.xlu1 %v1359_v26, %s5307_s12  ;;  %1374 = vrot.lane.b32.xlu0 %v1358_v28, %s5307_s12 }
  0xf5   :  { %1372 = vrot.lane.b32.xlu1 %v1357_v29, %s5307_s12  ;;  %1366 = vrot.lane.b32.xlu0 %v1354_v30, %s5307_s12 }
 0x10b   :  { %v162_v37 = vpop.permute.xlu1 %161  ;;  %v160_v38 = vpop.permute.xlu0 %159 }
 0x10c   :  { %v171_v59 = vsel %vm169_vm0, %v160_v38, %v162_v37  ;;  %v182_v2 = vadd.f32 %v162_v37, %v128_v58 }
 0x10d   :  { %v181_v7 = vadd.f32 %v171_v59, %v127_v62 }
 0x10f   :  { %v168_v39 = vpop.permute.xlu1 %167  ;;  %v166_v40 = vpop.permute.xlu0 %165 }
 0x110   :  { %v173_v4 = vsel %vm169_vm0, %v166_v40, %v168_v39  ;;  %v185_v8 = vadd.f32 %v168_v39, %v131_v3 }
 0x111   :  { %v184_v12 = vadd.f32 %v173_v4, %v130_v19 }
 0x113   :  { %v164_v41 = vpop.permute.xlu1 %163  ;;  %v158_v42 = vpop.permute.xlu0 %157 }
 0x114   :  { %v172_v13 = vsel %vm169_vm0, %v164_v41, %v166_v40  ;;  %v170_v15 = vsel %vm169_vm0, %v158_v42, %v160_v38 }
 0x115   :  { %v183_v37 = vadd.f32 %v172_v13, %v129_v24  ;;  %v180_v38 = vadd.f32 %v170_v15, %v126_v25  ;;  %v1178_v25 = vmul.f32 %v5517_v53, %v5583_v35 }
 0x117   :  { %v216_v43 = vpop.permute.xlu1 %215  ;;  %v214_v44 = vpop.permute.xlu0 %213 }
 0x118   :  { %v225_v5 = vsel %vm7284_vm1, %v214_v44, %v216_v43  ;;  %v236_v9 = vadd.f32 %v216_v43, %v182_v2 }
 0x119   :  { %v235_v16 = vadd.f32 %v225_v5, %v181_v7 }
 0x11b   :  { %v222_v45 = vpop.permute.xlu1 %221  ;;  %v220_v46 = vpop.permute.xlu0 %219 }
 0x11c   :  { %v227_v10 = vsel %vm7284_vm1, %v220_v46, %v222_v45  ;;  %v239_v21 = vadd.f32 %v222_v45, %v185_v8 }
 0x11d   :  { %v238_v26 = vadd.f32 %v227_v10, %v184_v12 }
 0x11f   :  { %v218_v47 = vpop.permute.xlu1 %217  ;;  %v212_v48 = vpop.permute.xlu0 %211 }
 0x120   :  { %v226_v29 = vsel %vm7284_vm1, %v218_v47, %v220_v46  ;;  %v224_v30 = vsel %vm7284_vm1, %v212_v48, %v214_v44 }
 0x121   :  { %v237_v56 = vadd.f32 %v226_v29, %v183_v37  ;;  %v234_v57 = vadd.f32 %v224_v30, %v180_v38  ;;  %v1177_v29 = vmul.f32 %v5533_v61, %v5583_v35 }
 0x123   :  { %v270_v49 = vpop.permute.xlu1 %269  ;;  %v268_v50 = vpop.permute.xlu0 %267 }
 0x124   :  { %v279_v11 = vsel %vm277_vm2, %v268_v50, %v270_v49  ;;  %v290_v22 = vadd.f32 %v270_v49, %v236_v9 }
 0x125   :  { %v289_v28 = vadd.f32 %v279_v11, %v235_v16 }
 0x127   :  { %v276_v51 = vpop.permute.xlu1 %275  ;;  %v274_v52 = vpop.permute.xlu0 %273 }
 0x128   :  { %v281_v27 = vsel %vm277_vm2, %v274_v52, %v276_v51  ;;  %v293_v31 = vadd.f32 %v276_v51, %v239_v21 }
 0x129   :  { %v292_v39 = vadd.f32 %v281_v27, %v238_v26  ;;  %v1179_v27 = vmul.f32 %v5521_v54, %v5583_v35  ;;  %v1175_v26 = vmul.f32 %v5517_v53, %v5585_v36 }
 0x12b   :  { %v272_v63 = vpop.permute.xlu1 %271  ;;  %v266_v1 = vpop.permute.xlu0 %265  ;;  %v1185_v30 = vadd.f32 %v1179_v27, %v5579_v33 }
 0x12c   :  { %v280_v43 = vsel %vm277_vm2, %v272_v63, %v274_v52  ;;  %v278_v45 = vsel %vm277_vm2, %v266_v1, %v268_v50 }
 0x12d   :  { %v291_v48 = vadd.f32 %v280_v43, %v237_v56  ;;  %v288_v51 = vadd.f32 %v278_v45, %v234_v57  ;;  %v1183_v56 = vadd.f32 %v1177_v29, %v5579_v33 }
 0x12f   :  { %v324_v17 = vpop.permute.xlu1 %323  ;;  %v322_v20 = vpop.permute.xlu0 %321 }
 0x130   :  { %v333_v23 = vsel %vm7283_vm3, %v322_v20, %v324_v17  ;;  %v344_v32 = vadd.f32 %v324_v17, %v290_v22  ;;  %v1176_v22 = vmul.f32 %v5521_v54, %v5585_v36 }
 0x131   :  { %v343_v40 = vadd.f32 %v333_v23, %v289_v28 }
 0x132   :  { %v350_v47 = vmax.f32 %v344_v32, 0.0  ;;  %v1182_v28 = vadd.f32 %v1176_v22, %v5581_v34 }
 0x133   :  { %v330_v41 = vpop.permute.xlu1 %329  ;;  %v328_v42 = vpop.permute.xlu0 %327  ;;  %v349_v58 = vmax.f32 %v343_v40, 0.0  ;;  %v1181_v40 = vadd.f32 %v1175_v26, %v5581_v34 }
 0x134   :  { %v347_v49 = vadd.f32 %v330_v41, %v293_v31  ;;  %v335_v55 = vsel %vm7283_vm3, %v328_v42, %v330_v41  ;;  %v1184_v41 = vadd.f32 %v1178_v25, %v5579_v33 }
 0x135   :  { %v346_v46 = vadd.f32 %v335_v55, %v292_v39  ;;  %v1174_v39 = vmul.f32 %v5533_v61, %v5585_v36 }
 0x136   :  { %v353_v44 = vmax.f32 %v347_v49, 0.0 }
 0x137   :  { %v352_v59 = vmax.f32 %v346_v46, 0.0  ;;  %v326_v60 = vpop.permute.xlu1 %325  ;;  %v320_v62 = vpop.permute.xlu0 %319 }
 0x138   :  { %v356_v2 = vpack.c.bf16 %v353_v44, %v350_v47  ;;  %v334_v3 = vsel %vm7283_vm3, %v326_v60, %v328_v42  ;;  %v332_v52 = vsel %vm7283_vm3, %v320_v62, %v322_v20 }
 0x139   :  { %v5615_v50 = vpack.c.bf16 %v352_v59, %v349_v58  ;;  %v345_v63 = vadd.f32 %v334_v3, %v291_v48  ;;  %v342_v1 = vadd.f32 %v332_v52, %v288_v51  ;;  %v1180_v58 = vadd.f32 %v1174_v39, %v5581_v34 }
 0x13a   :  { %375 = vrot.lane.b32.xlu0 %v356_v2, %s5305_s5  ;;  %364 = vrot.lane.b32.xlu1 %v356_v2, %s5304_s2 }
 0x13b   :  { %v351_v4 = vmax.f32 %v345_v63, 0.0  ;;  %v348_v5 = vmax.f32 %v342_v1, 0.0  ;;  %v1215_v18 = vpop.permute.xlu1 %1214  ;;  %421 = vmatprep.subr.bf16.mxu1 %v5615_v50  ;;  %v1213_v6 = vpop.permute.xlu0 %1212 }
 0x13c   :  { %v1234_v37 = vadd.f32 %v1215_v18, %v1182_v28  ;;  %v1223_v54 = vsel %vm169_vm0, %v1213_v6, %v1215_v18 }
 0x13d   :  { %v5620_v7 = vpack.c.bf16 %v351_v4, %v348_v5  ;;  %v1233_v49 = vadd.f32 %v1223_v54, %v1181_v40 }
 0x13e   :  { %397 = vrot.lane.b32.xlu0 %v356_v2, %s5307_s12  ;;  %386 = vrot.lane.b32.xlu1 %v356_v2, %s5306_s11 }
 0x13f   :  { %v1221_v19 = vpop.permute.xlu1 %1220  ;;  %422 = vmatpush1.bf16.msra.mxu1 %v5620_v7  ;;  %v1219_v8 = vpop.permute.xlu0 %1218 }
 0x140   :  { %v1225_v38 = vsel %vm169_vm0, %v1219_v8, %v1221_v19  ;;  %v1237_v53 = vadd.f32 %v1221_v19, %v1185_v30 }
 0x141   :  { %v1236_v55 = vadd.f32 %v1225_v38, %v1184_v41 }
 0x142   :  { %362 = vrot.lane.b32.xlu0 %v5615_v50, %s5304_s2 }
 0x143   :  { %v1217_v9 = vpop.permute.xlu1 %1216  ;;  %v1211_v10 = vpop.permute.xlu0 %1210 }
 0x144   :  { %v1224_v42 = vsel %vm169_vm0, %v1217_v9, %v1219_v8  ;;  %v1222_v57 = vsel %vm169_vm0, %v1211_v10, %v1213_v6 }
 0x145   :  { %v1235_v51 = vadd.f32 %v1224_v42, %v1183_v56  ;;  %v1232_v52 = vadd.f32 %v1222_v57, %v1180_v58 }
 0x146   :  { %360 = vrot.lane.b32.xlu0 %v5620_v7, %s5304_s2 }
 0x147   :  { %v1267_v11 = vpop.permute.xlu1 %1266  ;;  %v1265_v12 = vpop.permute.xlu0 %1264 }
 0x148   :  { %v1286_v35 = vadd.f32 %v1267_v11, %v1234_v37  ;;  %v1275_v43 = vsel %vm7284_vm1, %v1265_v12, %v1267_v11  ;;  %v63_v37 = vld [vmem:[%s7275_s4] sm:$0xff] }
 0x149   :  { %v1285_v59 = vadd.f32 %v1275_v43, %v1233_v49 }
 0x14a   :  { %384 = vrot.lane.b32.xlu0 %v5615_v50, %s5306_s11 }
 0x14b   :  { %v1273_v13 = vpop.permute.xlu1 %1272  ;;  %v1271_v15 = vpop.permute.xlu0 %1270 }
 0x14c   :  { %v1277_v45 = vsel %vm7284_vm1, %v1271_v15, %v1273_v13  ;;  %v1289_v36 = vadd.f32 %v1273_v13, %v1237_v53 }
 0x14d   :  { %v1288_v60 = vadd.f32 %v1277_v45, %v1236_v55 }
 0x14e   :  { %382 = vrot.lane.b32.xlu0 %v5620_v7, %s5306_s11 }
 0x14f   :  { %v1269_v16 = vpop.permute.xlu1 %1268  ;;  %v1263_v17 = vpop.permute.xlu0 %1262 }
 0x150   :  { %v1276_v62 = vsel %vm7284_vm1, %v1269_v16, %v1271_v15  ;;  %v1274_v2 = vsel %vm7284_vm1, %v1263_v17, %v1265_v12 }
 0x151   :  { %v1287_v9 = vadd.f32 %v1276_v62, %v1235_v51  ;;  %v1284_v10 = vadd.f32 %v1274_v2, %v1232_v52 }
 0x153   :  { %v1319_v20 = vpop.permute.xlu1 %1318  ;;  %v1317_v21 = vpop.permute.xlu0 %1316 }
 0x154   :  { %v1338_v47 = vadd.f32 %v1319_v20, %v1286_v35  ;;  %v1327_v44 = vsel %vm277_vm2, %v1317_v21, %v1319_v20 }
 0x155   :  { %v1337_v63 = vadd.f32 %v1327_v44, %v1285_v59 }
 0x157   :  { %v1325_v23 = vpop.permute.xlu1 %1324  ;;  %v1323_v24 = vpop.permute.xlu0 %1322 }
 0x158   :  { %v1329_v48 = vsel %vm277_vm2, %v1323_v24, %v1325_v23  ;;  %v1341_v33 = vadd.f32 %v1325_v23, %v1289_v36 }
 0x159   :  { %v1340_v1 = vadd.f32 %v1329_v48, %v1288_v60  ;;  %v5028_v60 = vld [vmem:[%s7274_s3] sm:$0xff]  }
 0x15b   :  { %v1321_v31 = vpop.permute.xlu1 %1320  ;;  %v1315_v32 = vpop.permute.xlu0 %1314 }
 0x15c   :  { %v1328_v6 = vsel %vm277_vm2, %v1321_v31, %v1323_v24  ;;  %v1326_v19 = vsel %vm277_vm2, %v1315_v32, %v1317_v21 }
 0x15d   :  { %v1339_v16 = vadd.f32 %v1328_v6, %v1287_v9  ;;  %v1336_v17 = vadd.f32 %v1326_v19, %v1284_v10 }
 0x15f   :  { %v1371_v46 = vpop.permute.xlu1 %1370  ;;  %v1369_v61 = vpop.permute.xlu0 %1368 }
 0x160   :  { %v1390_v3 = vadd.f32 %v1371_v46, %v1338_v47  ;;  %v1379_v4 = vsel %vm7283_vm3, %v1369_v61, %v1371_v46 }
 0x161   :  { %v1389_v13 = vadd.f32 %v1379_v4, %v1337_v63 }
 0x162   :  { %v1396_v12 = vmax.f32 %v1390_v3, 0.0 }
 0x163   :  { %v1377_v5 = vpop.permute.xlu1 %1376  ;;  %v1375_v18 = vpop.permute.xlu0 %1374  ;;  %v1395_v28 = vmax.f32 %v1389_v13, 0.0 }
 0x164   :  { %v1393_v34 = vadd.f32 %v1377_v5, %v1341_v33  ;;  %v1381_v8 = vsel %vm7283_vm3, %v1375_v18, %v1377_v5 }
 0x165   :  { %v1392_v11 = vadd.f32 %v1381_v8, %v1340_v1  ;;  %v5029_v1 = vld [vmem:[%s7274_s3 + $0x8] sm:$0xff]   ;;  %s5309_s3 = smov 120  }
 0x166   :  { %v1399_v15 = vmax.f32 %v1393_v34, 0.0 }
 0x167   :  { %v1373_v20 = vpop.permute.xlu1 %1372  ;;  %v1367_v22 = vpop.permute.xlu0 %1366  ;;  %v1398_v23 = vmax.f32 %v1392_v11, 0.0 }
 0x168   :  { %v1402_v27 = vpack.c.bf16 %v1399_v15, %v1396_v12  ;;  %v1380_v25 = vsel %vm7283_vm3, %v1373_v20, %v1375_v18  ;;  %v1378_v24 = vsel %vm7283_vm3, %v1367_v22, %v1369_v61  ;;  %v7353_v12 = vmov 0 }
 0x169   :  { %v1391_v21 = vadd.f32 %v1380_v25, %v1339_v16  ;;  %v1388_v26 = vadd.f32 %v1378_v24, %v1336_v17  ;;  %v1401_v29 = vpack.c.bf16 %v1398_v23, %v1395_v28  ;;  %v7354_v12 = vsel %vm5724_vm9, 4294967295, %v7353_v12 }
 0x16a   :  { %1410 = vrot.lane.b32.xlu1 %v1402_v27, %s5304_s2  ;;  %1420 = vrot.lane.b32.xlu0 %v1402_v27, %s5305_s5 }
 0x16b   :  { %v1397_v30 = vmax.f32 %v1391_v21, 0.0  ;;  %v1394_v31 = vmax.f32 %v1388_v26, 0.0 }
 0x16d   :  { %v1400_v32 = vpack.c.bf16 %v1397_v30, %v1394_v31 }
 0x16e   :  { %373 = vrot.lane.b32.xlu1 %v5615_v50, %s5305_s5  ;;  %1408 = vrot.lane.b32.xlu0 %v1401_v29, %s5304_s2 }
 0x172   :  { %371 = vrot.lane.b32.xlu1 %v5620_v7, %s5305_s5  ;;  %1406 = vrot.lane.b32.xlu0 %v1400_v32, %s5304_s2  ;;  %s5318_s2 = smov 80  }
 0x176   :  { %395 = vrot.lane.b32.xlu1 %v5615_v50, %s5307_s12  ;;  %1428 = vrot.lane.b32.xlu0 %v1401_v29, %s5306_s11  ;;  %v64_v50 = vld [vmem:[%s7275_s4 + $0x8] sm:$0xff] }
 0x17a   :  { %393 = vrot.lane.b32.xlu1 %v5620_v7, %s5307_s12  ;;  %1426 = vrot.lane.b32.xlu0 %v1400_v32, %s5306_s11 }
 0x17e   :  { %1430 = vrot.lane.b32.xlu1 %v1402_v27, %s5306_s11  ;;  %1440 = vrot.lane.b32.xlu0 %v1402_v27, %s5307_s12  ;;  %s5320_s11 = smov 72  }
 0x182   :  { %1418 = vrot.lane.b32.xlu1 %v1401_v29, %s5305_s5  ;;  %69 = vperm.xlu0 %5026, %v63_v37  }
 0x186   :  { %1416 = vrot.lane.b32.xlu1 %v1400_v32, %s5305_s5 }
 0x18a   :  { %1438 = vrot.lane.b32.xlu1 %v1401_v29, %s5307_s12 }
 0x18e   :  { %1436 = vrot.lane.b32.xlu1 %v1400_v32, %s5307_s12 }
 0x192   :  { %74 = vperm.xlu1 %5027, %v64_v50  }
 0x1ac   :  { %v376_v7 = vpop.permute.xlu0 %375  ;;  %v365_v38 = vpop.permute.xlu1 %364 }
 0x1b0   :  { %v398_v54 = vpop.permute.xlu0 %397  ;;  %v387_v35 = vpop.permute.xlu1 %386 }
 0x1b4   :  { %v363_v39 = vpop.permute.xlu0 %362 }
 0x1b5   :  { %v368_v40 = vsel %vm169_vm0, %v363_v39, %v365_v38 }
 0x1b6   :  { %423 = vmatprep.subr.bf16.mxu1 %v368_v40 }
 0x1b8   :  { %v361_v53 = vpop.permute.xlu0 %360 }
 0x1b9   :  { %v367_v41 = vsel %vm169_vm0, %v361_v53, %v363_v39  ;;  %v511_v39 = vld [vmem:[#allocation2] sm:$0x3] }
 0x1ba   :  { %424 = vmatpush1.bf16.msra.mxu1 %v367_v41 }
 0x1bc   :  { %v385_v42 = vpop.permute.xlu0 %384 }
 0x1bd   :  { %v390_v36 = vsel %vm277_vm2, %v385_v42, %v387_v35 }
 0x1c0   :  { %v383_v43 = vpop.permute.xlu0 %382 }
 0x1c1   :  { %v389_v44 = vsel %vm277_vm2, %v383_v43, %v385_v42 }
 0x1dc   :  { %v1411_v45 = vpop.permute.xlu1 %1410  ;;  %v1421_v49 = vpop.permute.xlu0 %1420 }
 0x1e0   :  { %v374_v55 = vpop.permute.xlu1 %373  ;;  %v1409_v57 = vpop.permute.xlu0 %1408 }
 0x1e1   :  { %v379_v56 = vsel %vm7284_vm1, %v374_v55, %v376_v7  ;;  %v1413_v33 = vsel %vm169_vm0, %v1409_v57, %v1411_v45 }
 0x1e2   :  { %425 = vmatprep.subr.bf16.mxu1 %v379_v56 }
 0x1e4   :  { %v372_v46 = vpop.permute.xlu1 %371  ;;  %v1407_v51 = vpop.permute.xlu0 %1406 }
 0x1e5   :  { %v378_v61 = vsel %vm7284_vm1, %v372_v46, %v374_v55  ;;  %v1412_v52 = vsel %vm169_vm0, %v1407_v51, %v1409_v57  ;;  %vm510_vm0 = vmor %vm509_vm15, %vm5743_vm14  ;;  %vm7288_vm15 = vcmask 976898  }
 0x1e6   :  { %426 = vmatpush1.bf16.msra.mxu1 %v378_v61  ;;  %vm526_vm14 = vmand %vm7286_vm7, %vm7296_vm12  ;;  %vm7291_vm7 = vcmask 944130  }
 0x1e7   :  { %427 = vmatprep.subr.bf16.mxu1 %v390_v36 }
 0x1e8   :  { %v396_v47 = vpop.permute.xlu1 %395  ;;  %v1429_v62 = vpop.permute.xlu0 %1428 }
 0x1e9   :  { %v401_v48 = vsel %vm7283_vm3, %v396_v47, %v398_v54 }
 0x1ea   :  { %428 = vmatpush1.bf16.msra.mxu1 %v389_v44 }
 0x1eb   :  { %429 = vmatprep.subr.bf16.mxu1 %v401_v48 }
 0x1ec   :  { %v394_v58 = vpop.permute.xlu1 %393  ;;  %v1427_v4 = vpop.permute.xlu0 %1426 }
 0x1ed   :  { %v400_v59 = vsel %vm7283_vm3, %v394_v58, %v396_v47  ;;  %v1432_v8 = vsel %vm277_vm2, %v1427_v4, %v1429_v62 }
 0x1ee   :  { %430 = vmatpush1.bf16.msra.mxu1 %v400_v59 }
 0x1ef   :  { %1446 = vmatprep.subr.bf16.mxu1 %v1401_v29 }
 0x1f0   :  { %v1431_v2 = vpop.permute.xlu1 %1430  ;;  %v1441_v19 = vpop.permute.xlu0 %1440 }
 0x1f1   :  { %4672 = vmatmul.mubr.msk.bf16.vlgmr.msra.gmra.mrb[0].mxu1 %vm7282_vm4, %v5028_v60  ;;  %v1433_v6 = vsel %vm277_vm2, %v1429_v62, %v1431_v2  ;;  %vm7287_vm2 = vcmask 1041409  }
 0x1f2   :  { %1447 = vmatpush1.bf16.msra.mxu1 %v1400_v32  ;;  %463 = vmatprep.mubr.bf16.mxu1 %v5303_v0  ;;  %vm5802_vm8 = vmand %vm7287_vm2, %vm508_vm13  ;;  %vm7295_vm2 = vcmask 1041312  }
 0x1f3   :  { %1448 = vmatprep.subr.bf16.mxu1 %v1413_v33  ;;  %vm552_vm13 = vmand %vm7290_vm11, %vm7296_vm12  ;;  %vm7301_vm11 = vcmask 911362  }
 0x1f4   :  { %v1419_v3 = vpop.permute.xlu1 %1418 }
 0x1f5   :  { %v1423_v63 = vsel %vm7284_vm1, %v1419_v3, %v1421_v49 }
 0x1f6   :  { %1449 = vmatpush1.bf16.msra.mxu1 %v1412_v52 }
 0x1f7   :  { %1450 = vmatprep.subr.bf16.mxu1 %v1423_v63 }
 0x1f8   :  { %v1417_v5 = vpop.permute.xlu1 %1416 }
 0x1f9   :  { %v1422_v18 = vsel %vm7284_vm1, %v1417_v5, %v1419_v3  ;;  %4673 = vmatmul.mubr.msk.bf16.gmra.mrb[4].mxu1 %vm7282_vm4, %v5029_v1  ;;  %vm7289_vm1 = vcmask 1014784  }
 0x1fa   :  { %1451 = vmatpush1.bf16.msra.mxu1 %v1422_v18  ;;  %1478 = vmatprep.mubr.bf16.mxu1 %v5303_v0 }
 0x1fb   :  { %1452 = vmatprep.subr.bf16.mxu1 %v1433_v6 }
 0x1fc   :  { %v1439_v34 = vpop.permute.xlu1 %1438 }
 0x1fd   :  { %v1443_v9 = vsel %vm7283_vm3, %v1439_v34, %v1441_v19  ;;  %v65_v19 = vld [vmem:[%s7275_s4 + $0x10] sm:$0xff] }
 0x1fe   :  { %1453 = vmatpush1.bf16.msra.mxu1 %v1432_v8 }
 0x1ff   :  { %1454 = vmatprep.subr.bf16.mxu1 %v1443_v9 }
 0x200   :  { %v1437_v10 = vpop.permute.xlu1 %1436 }
 0x201   :  { %v1442_v11 = vsel %vm7283_vm3, %v1437_v10, %v1439_v34  ;;  %v70_v17 = vpop.permute.xlu0 %69 }
 0x202   :  { %1455 = vmatpush1.bf16.msra.mxu1 %v1442_v11 }
 0x205   :  { %4703 = vmatmul.mubr.msk.bf16.vlgmr.msra.gmra.mrb[8].mxu1 %vm7282_vm4, %v5028_v60 }
 0x206   :  { %1488 = vmatprep.mubr.bf16.mxu1 %v5303_v0  ;;  %v5308_v0 = vmov 1966171168  }
 0x207   :  { %v490_v15 = vunpack.c.l.s4 %v5308_v0 }
 0x209   :  { %v491_v16 = vunpack.c.0.s8 %v490_v15 }
 0x20b   :  { %v5739_v29 = vsub.s32 %v491_v16, %v5448_v14 }
 0x20d   :  { %4704 = vmatmul.mubr.msk.bf16.gmra.mrb[12].mxu1 %vm7282_vm4, %v5029_v1  ;;  %vm529_vm4 = vmor %vm5802_vm8, %vm526_vm14 }
 0x20e   :  { %vm553_vm14 = vmor %vm5802_vm8, %vm552_vm13 }
 0x211   :  { %v75_v23 = vpop.permute.xlu1 %74 }
 0x2c4   :  { %v455_v20 = vpop.f32.mrb[0].mxu1 }
 0x2c5   :  { %v456_v22 = vadd.f32 %v455_v20, %v70_v17  ;;  %v457_v27 = vpop.f32.mrb[1].mxu1  ;;  %v5032_v20 = vld [vmem:[#allocation3 + $0x4] ss:$252 sps:$4 sm:$0xff]  }
 0x2c6   :  { %v458_v25 = vadd.f32 %v457_v27, %v70_v17  ;;  %v459_v24 = vpop.f32.mrb[2].mxu1  ;;  %3281 = vmatprep.subr.bf16.mxu1 %v5032_v20 }
 0x2c7   :  { %v474_v21 = vmax.f32 %v456_v22, 0.0  ;;  %v460_v26 = vadd.f32 %v459_v24, %v75_v23  ;;  %v461_v28 = vpop.f32.mrb[3].mxu1 }
 0x2c8   :  { %v475_v30 = vmax.f32 %v458_v25, 0.0  ;;  %v462_v31 = vadd.f32 %v461_v28, %v75_v23  ;;  %v5035_v28 = vld [vmem:[#allocation3 + $0x1fc] ss:$252 sps:$4 sm:$0xff]  }
 0x2c9   :  { %v476_v37 = vmax.f32 %v460_v26, 0.0 }
 0x2ca   :  { %v4674_v50 = vpack.c.bf16 %v475_v30, %v474_v21  ;;  %v477_v7 = vmax.f32 %v462_v31, 0.0  ;;  %v5033_v31 = vld [vmem:[#allocation3 + $0x1f8] ss:$252 sps:$4 sm:$0xff]  }
 0x2cc   :  { %v495_v54 = vrot.slane %v4674_v50, %v5739_v29  ;;  %v5750_v38 = vpack.c.bf16 %v477_v7, %v476_v37  ;;  %v5752_v14 = vpop.f32.mrb[4].mxu1  ;;  %v5038_v7 = vld [vmem:[#allocation3 + $0xc] ss:$252 sps:$4 sm:$0xff]  }
 0x2cd   :  { %v5756_v40 = vpop.f32.mrb[5].mxu1 }
 0x2ce   :  { %v502_v53 = vrot.slane %v495_v54, %v5739_v29  ;;  %v537_v41 = vcombine.high %v495_v54, %v495_v54  ;;  %v5759_v42 = vpop.f32.mrb[6].mxu1 }
 0x2cf   :  { %v5761_v35 = vpop.f32.mrb[7].mxu1 }
 0x2d0   :  { %v512_v43 = vsel %vm510_vm0, %v502_v53, %v511_v39  ;;  %v544_v45 = vrot.slane %v537_v41, %v5739_v29  ;;  %v515_v49 = vshrl.u32 %v502_v53, 16  ;;  %v579_v61 = vcombine.high %v502_v53, %v502_v53 }
 0x2d1   :  { %513 = vst [vmem:[#allocation2] sm:$0x3] %v512_v43  ;;  %vm7292_vm0 = vsmask.f32 2304 }
 0x2d2   :  { %545 = vrot.lane.b32.xlu1 %v544_v45, %s5309_s3  ;;  %519 = vrot.lane.b32.xlu0 %v515_v49, %s5310_s22  ;;  %v561_v55 = vshrl.u32 %v544_v45, 16  ;;  %v596_v62 = vshrl.u32 %v579_v61, 16  ;;  %v615_v63 = vcombine.high %v544_v45, %v544_v45  ;;  %vm532_vm3 = vmand %vm7288_vm15, %vm7292_vm0 }
 0x2d3   :  { %vm533_vm5 = vmor %vm532_vm3, %vm529_vm4  ;;  %vm7361_vm3 = vcmask 1041409  }
 0x2d4   :  { %v631_v18 = vshrl.u32 %v615_v63, 16  ;;  %vm555_vm15 = vmand %vm7291_vm7, %vm7292_vm0  ;;  %vm7366_vm7 = vsmask.f32 7938  ;;  %vm7367_vm0 = vcmask 1041376  }
 0x2d5   :  { %vm5821_vm4 = vmand %vm7361_vm3, %vm1534_vm6  ;;  %vm7317_vm3 = vsmask.f32 7946 }
 0x2d6   :  { %565 = vrot.lane.b32.xlu0 %v561_v55, %s5305_s5  ;;  %vm556_vm13 = vmor %vm555_vm15, %vm553_vm14  ;;  %vm7370_vm15 = vnez %v7354_v12 }
 0x2d7   :  { %vm5834_vm9 = vmand %vm7367_vm0, %vm7366_vm7  ;;  %vm7372_vm7 = vsmask.f32 2304 }
 0x2d8   :  { %v1480_v56 = vpop.f32.mrb[8].mxu1  ;;  %vm7371_vm14 = vmor %vm5730_vm10, %vm7370_vm15 }
 0x2d9   :  { %v1481_v57 = vadd.f32 %v1480_v56, %v70_v17  ;;  %v1482_v46 = vpop.f32.mrb[9].mxu1  ;;  %v7359_v56 = vmov 0  ;;  %vm574_vm0 = vmand %vm7301_vm11, %vm7372_vm7  ;;  %vm7383_vm7 = vsmask.f32 7938  ;;  %vm7395_vm11 = vsmask.f32 7938 }
 0x2da   :  { %v1483_v36 = vadd.f32 %v1482_v46, %v70_v17  ;;  %v1484_v47 = vpop.f32.mrb[10].mxu1  ;;  %580 = vrot.lane.b32.xlu0 %v579_v61, %s5311_s23  ;;  %v657_v17 = vrot.slane %v5750_v38, %v5739_v29  ;;  %v7360_v56 = vsel %vm5802_vm8, 4294967295, %v7359_v56 }
 0x2db   :  { %v1499_v44 = vmax.f32 %v1481_v57, 0.0  ;;  %v1485_v48 = vadd.f32 %v1484_v47, %v75_v23  ;;  %v1486_v51 = vpop.f32.mrb[11].mxu1 }
 0x2dc   :  { %v1500_v58 = vmax.f32 %v1483_v36, 0.0  ;;  %v1487_v59 = vadd.f32 %v1486_v51, %v75_v23  ;;  %v5030_v23 = vld [vmem:[#allocation3] ss:$252 sps:$4 sm:$0xff]   ;;  %v664_v25 = vrot.slane %v657_v17, %v5739_v29  ;;  %v700_v21 = vcombine.high %v657_v17, %v657_v17 }
 0x2dd   :  { %v1501_v60 = vmax.f32 %v1485_v48, 0.0  ;;  %3282 = vmatpush1.bf16.xpose.msra.mxu1 %v5030_v23  ;;  %v534_v36 = vld [vmem:[#allocation2 + $0x1] sm:$0x7]  ;;  %v7362_v48 = vmov 0 }
 0x2de   :  { %v4705_v2 = vpack.c.bf16 %v1500_v58, %v1499_v44  ;;  %v1502_v33 = vmax.f32 %v1487_v59, 0.0  ;;  %600 = vrot.lane.b32.xlu0 %v596_v62, %s5312_s24  ;;  %v681_v26 = vshrl.u32 %v664_v25, 16  ;;  %v707_v32 = vrot.slane %v700_v21, %v5739_v29  ;;  %3283 = vmatprep.subr.bf16.mxu1 %v5035_v28 }
 0x2df   :  { %v743_v38 = vcombine.high %v664_v25, %v664_v25  ;;  %v7363_v48 = vsel %vm5821_vm4, 4294967295, %v7362_v48 }
 0x2e0   :  { %v1520_v3 = vrot.slane %v4705_v2, %v5739_v29  ;;  %v4706_v52 = vpack.c.bf16 %v1502_v33, %v1501_v60  ;;  %v5779_v8 = vpop.f32.mrb[12].mxu1  ;;  %v724_v50 = vshrl.u32 %v707_v32, 16  ;;  %v779_v43 = vcombine.high %v707_v32, %v707_v32 }
 0x2e1   :  { %v5783_v10 = vpop.f32.mrb[13].mxu1  ;;  %v760_v53 = vshrl.u32 %v743_v38, 16 }
 0x2e2   :  { %v5770_v1 = vrot.slane %v1520_v3, %v5739_v29  ;;  %v1554_v4 = vcombine.high %v1520_v3, %v1520_v3  ;;  %616 = vrot.lane.b32.xlu0 %v615_v63, %s5307_s12  ;;  %v1652_v11 = vrot.slane %v4706_v52, %v5739_v29  ;;  %v796_v45 = vshrl.u32 %v779_v43, 16  ;;  %v5796_v49 = vpop.f32.mrb[14].mxu1 }
 0x2e3   :  { %v5798_v55 = vpop.f32.mrb[15].mxu1 }
 0x2e4   :  { %v1561_v5 = vrot.slane %v1554_v4, %v5739_v29  ;;  %1540 = vrot.lane.b32.xlu1 %v5770_v1, %s5310_s22  ;;  %v1589_v9 = vcombine.high %v5770_v1, %v5770_v1  ;;  %v1659_v16 = vrot.slane %v1652_v11, %v5739_v29  ;;  %v1687_v22 = vcombine.high %v1652_v11, %v1652_v11  ;;  %s5332_s22 = smov 28  }
 0x2e5   :  { %3284 = vmatpush1.bf16.xpose.msra.mxu1 %v5033_v31  ;;  %v1529_v60 = vshll.u32 %v5770_v1, 16 }
 0x2e6   :  { %v1563_v6 = vshll.u32 %v1561_v5, 16  ;;  %635 = vrot.lane.b32.xlu0 %v631_v18, %s5313_s25  ;;  %v1617_v34 = vcombine.high %v1561_v5, %v1561_v5  ;;  %v1591_v15 = vshll.u32 %v1589_v9, 16  ;;  %v1661_v27 = vshll.u32 %v1659_v16, 16  ;;  %3321 = vmatprep.subr.bf16.mxu1 %v5038_v7 }
 0x2e7   :  { %v1694_v24 = vrot.slane %v1687_v22, %v5739_v29  ;;  %v1722_v37 = vcombine.high %v1659_v16, %v1659_v16 }
 0x2e8   :  { %1565 = vrot.lane.b32.xlu1 %v1563_v6, %s5309_s3  ;;  %v1619_v0 = vshll.u32 %v1617_v34, 16  ;;  %s5331_s3 = smov 24  }
 0x2e9   :  { %v1696_v30 = vshll.u32 %v1694_v24, 16  ;;  %v1724_v54 = vshll.u32 %v1722_v37, 16  ;;  %v1750_v39 = vcombine.high %v1694_v24, %v1694_v24 }
 0x2ea   :  { %79 = vperm.xlu0 %5026, %v65_v19  }
 0x2eb   :  { %v1752_v41 = vshll.u32 %v1750_v39, 16 }
 0x2ec   :  { %1577 = vrot.lane.b32.xlu1 %v1561_v5, %s5305_s5  ;;  %s5319_s5 = smov 76  }
 0x2ee   :  { %1621 = vrot.lane.b32.xlu0 %v1619_v0, %s5307_s12  ;;  %s5321_s12 = smov 68  }
 0x2f0   :  { %1593 = vrot.lane.b32.xlu1 %v1591_v15, %s5311_s23  ;;  %s5333_s23 = smov 20  }
 0x2f2   :  { %1633 = vrot.lane.b32.xlu0 %v1617_v34, %s5313_s25  ;;  %s5335_s25 = smov 8  }
 0x2f4   :  { %1605 = vrot.lane.b32.xlu1 %v1589_v9, %s5312_s24  ;;  %s5334_s24 = smov 16  }
 0x2f6   :  { %1663 = vrot.lane.b32.xlu0 %v1661_v27, %s5314_s28 }
 0x2f8   :  { %665 = vrot.lane.b32.xlu1 %v664_v25, %s5314_s28  ;;  %v5044_v25 = vld [vmem:[#allocation3 + $0x14] ss:$252 sps:$4 sm:$0xff]  }
 0x2fa   :  { %1675 = vrot.lane.b32.xlu0 %v1659_v16, %s5315_s29 }
 0x2fc   :  { %685 = vrot.lane.b32.xlu1 %v681_v26, %s5315_s29 }
 0x2fe   :  { %1698 = vrot.lane.b32.xlu0 %v1696_v30, %s5316_s1 }
 0x300   :  { %708 = vrot.lane.b32.xlu1 %v707_v32, %s5316_s1 }
 0x302   :  { %1710 = vrot.lane.b32.xlu0 %v1694_v24, %s5317_s30 }
 0x304   :  { %728 = vrot.lane.b32.xlu1 %v724_v50, %s5317_s30 }
 0x306   :  { %1726 = vrot.lane.b32.xlu0 %v1724_v54, %s5318_s2 }
 0x308   :  { %744 = vrot.lane.b32.xlu1 %v743_v38, %s5318_s2 }
 0x30a   :  { %1738 = vrot.lane.b32.xlu0 %v1722_v37, %s5319_s5 }
 0x30c   :  { %764 = vrot.lane.b32.xlu1 %v760_v53, %s5319_s5 }
 0x30e   :  { %1754 = vrot.lane.b32.xlu0 %v1752_v41, %s5320_s11 }
 0x310   :  { %780 = vrot.lane.b32.xlu1 %v779_v43, %s5320_s11  ;;  %s5340_s11 = smov [#allocation6]  }
 0x312   :  { %1766 = vrot.lane.b32.xlu0 %v1750_v39, %s5321_s12 }
 0x314   :  { %800 = vrot.lane.b32.xlu1 %v796_v45, %s5321_s12  ;;  %s4639_s12 = sshll.u32 %s5340_s11, 4  ;;  %s4640_s12 = int_to_ptr.vmem [resolvable:$true] %s4639_s12 }
 0x315   :  { %p5255_p9 = scmp.lt.s32.totalorder %s4640_s12, %s4640_s12 }
 0x344   :  { %v520_v57 = vpop.permute.xlu0 %519  ;;  %v546_v44 = vpop.permute.xlu1 %545 }
 0x345   :  { %v521_v46 = vrot.slane %v520_v57, 7  ;;  %v547_v51 = vrot.slane %v546_v44, 7 }
 0x347   :  { %v523_v61 = vsel %vm7289_vm1, %v521_v46, %v520_v57  ;;  %vm7294_vm1 = vcmask 982016  }
 0x348   :  { %v535_v47 = vsel %vm533_vm5, %v523_v61, %v534_v36  ;;  %vm5827_vm5 = vmand %vm7295_vm2, %vm7296_vm12  ;;  %v566_v59 = vpop.permute.xlu0 %565  ;;  %v549_v2 = vsel %vm7294_vm1, %v547_v51, %v546_v44  ;;  %vm7299_vm12 = vcmask 1041280  }
 0x349   :  { %536 = vst [vmem:[#allocation2 + $0x1] sm:$0x7] %v535_v47  ;;  %vm572_vm6 = vmor %vm5802_vm8, %vm5827_vm5  ;;  %vm7373_vm5 = vcmask 976898   ;;  %v567_v13 = vrot.slane %v566_v59, 7 }
 0x34a   :  { %vm1547_vm1 = vmor %vm5821_vm4, %vm5834_vm9  ;;  %vm7300_vm9 = vcmask 878594  }
 0x34b   :  { %vm1549_vm2 = vmand %vm7373_vm5, %vm7317_vm3 }
 0x34c   :  { %v581_v1 = vpop.permute.xlu0 %580  ;;  %vm5856_vm8 = vmor %vm574_vm0, %vm572_vm6  ;;  %vm7382_vm6 = vcmask 949248   ;;  %vm7387_vm0 = vnez %v7360_v56 }
 0x34d   :  { %vm5860_vm10 = vmor %vm1549_vm2, %vm1547_vm1  ;;  %v568_v34 = vsel %vm7382_vm6, %v567_v13, %v566_v59  ;;  %vm7384_vm1 = vcmask 1041344   ;;  %vm606_vm6 = vcmask 1041248   ;;  %v582_v27 = vrot.slane %v581_v1, 7 }
 0x34e   :  { %vm5874_vm2 = vmand %vm7384_vm1, %vm7383_vm7  ;;  %vm7389_vm7 = vcmask 944130  }
 0x34f   :  { %vm1572_vm1 = vmand %vm7389_vm7, %vm7317_vm3 }
 0x350   :  { %v1537_v33 = vld [vmem:[#allocation2] sm:$0x3]  ;;  %v557_v3 = vld [vmem:[#allocation2 + $0x3] sm:$0x7]  ;;  %v601_v11 = vpop.permute.xlu0 %600 }
 0x351   :  { %v1538_v52 = vsel %vm7371_vm14, %v1529_v60, %v1537_v33  ;;  %v558_v63 = vsel %vm556_vm13, %v549_v2, %v557_v3  ;;  %vm7378_vm13 = vsmask.f32 256  ;;  %vm7381_vm14 = vcmask 1014784  }
 0x352   :  { %1539 = vst [vmem:[#allocation2] sm:$0x3] %v1538_v52  ;;  %559 = vst [vmem:[#allocation2 + $0x3] sm:$0x7] %v558_v63  ;;  %v602_v38 = vrot.slane %v601_v11, 7 }
 0x353   :  { %vm5866_vm15 = vmand %vm7299_vm12, %vm7378_vm13  ;;  %vm7388_vm13 = vsmask.f32 2304 }
 0x354   :  { %vm588_vm5 = vmor %vm7387_vm0, %vm5866_vm15  ;;  %vm7392_vm15 = vsmask.f32 256  ;;  %v5904_v24 = vpop.permute.xlu0 %616 }
 0x355   :  { %v618_v52 = vrot.slane %v5904_v24, 7 }
 0x356   :  { %v1541_v4 = vpop.permute.xlu1 %1540 }
 0x357   :  { %v1542_v18 = vrot.slane %v1541_v4, 7 }
 0x358   :  { %v5926_v7 = vpop.permute.xlu0 %635 }
 0x359   :  { %v1543_v19 = vsel %vm7381_vm14, %v1542_v18, %v1541_v4  ;;  %v576_v9 = vld [vmem:[#allocation2 + $0x5] sm:$0x7]  ;;  %v1551_v0 = vld [vmem:[#allocation2 + $0x1] sm:$0x7]  ;;  %vm590_vm14 = vmand %vm7300_vm9, %vm7388_vm13  ;;  %vm7305_vm9 = vcmask 845826  }
 0x35a   :  { %v577_v16 = vsel %vm5856_vm8, %v568_v34, %v576_v9  ;;  %v1552_v17 = vsel %vm5860_vm10, %v1543_v19, %v1551_v0  ;;  %v1566_v20 = vpop.permute.xlu1 %1565  ;;  %vm1571_vm8 = vmor %vm5821_vm4, %vm5874_vm2  ;;  %vm7304_vm10 = vcmask 916480   ;;  %vm7396_vm4 = vcmask 1041312  }
 0x35b   :  { %578 = vst [vmem:[#allocation2 + $0x5] sm:$0x7] %v577_v16  ;;  %1553 = vst [vmem:[#allocation2 + $0x1] sm:$0x7] %v1552_v17  ;;  %v1567_v23 = vrot.slane %v1566_v20, 7  ;;  %v584_v26 = vsel %vm7304_vm10, %v582_v27, %v581_v1 }
 0x35c   :  { %vm5894_vm12 = vmor %vm590_vm14, %vm588_vm5  ;;  %vm7399_vm14 = vcmask 982016  }
 0x35d   :  { %vm5900_vm13 = vmand %vm606_vm6, %vm7392_vm15  ;;  %v1568_v30 = vsel %vm7399_vm14, %v1567_v23, %v1566_v20  ;;  %vm7402_vm15 = vcmask 911362   ;;  %vm621_vm14 = vcmask 1041216  }
 0x35e   :  { %vm1573_vm2 = vmor %vm1572_vm1, %vm1571_vm8  ;;  %vm7400_vm8 = vsmask.f32 2304  ;;  %v1578_v50 = vpop.permute.xlu1 %1577 }
 0x35f   :  { %vm5908_vm7 = vmand %vm7396_vm4, %vm7395_vm11  ;;  %vm7401_vm4 = vnez %v7363_v48  ;;  %v1579_v39 = vrot.slane %v1578_v50, 7 }
 0x360   :  { %vm608_vm5 = vmor %vm7387_vm0, %vm5900_vm13 }
 0x361   :  { %vm610_vm11 = vmand %vm7305_vm9, %vm7400_vm8  ;;  %vm7407_vm8 = vsmask.f32 256  ;;  %vm7306_vm9 = vcmask 813058  }
 0x362   :  { %v592_v28 = vld [vmem:[#allocation2 + $0x7] sm:$0x7]  ;;  %v1574_v31 = vld [vmem:[#allocation2 + $0x3] sm:$0x7]  ;;  %vm1583_vm1 = vmor %vm7401_vm4, %vm5908_vm7  ;;  %v1594_v59 = vpop.permute.xlu1 %1593 }
 0x363   :  { %v593_v32 = vsel %vm5894_vm12, %v584_v26, %v592_v28  ;;  %v1575_v37 = vsel %vm1573_vm2, %v1568_v30, %v1574_v31  ;;  %vm1584_vm13 = vmand %vm7402_vm15, %vm7317_vm3  ;;  %vm603_vm12 = vcmask 883712   ;;  %v1595_v63 = vrot.slane %v1594_v59, 7  ;;  %v66_v31 = vld [vmem:[%s7275_s4 + $0x18] sm:$0xff]  ;;  %s5326_s4 = smov 48  }
 0x364   :  { %594 = vst [vmem:[#allocation2 + $0x7] sm:$0x7] %v593_v32  ;;  %1576 = vst [vmem:[#allocation2 + $0x3] sm:$0x7] %v1575_v37  ;;  %v604_v36 = vsel %vm603_vm12, %v602_v38, %v601_v11  ;;  %v5101_v28 = vld [vmem:[#allocation3 + $0x7c] ss:$252 sps:$4 sm:$0xff]  }
 0x365   :  { %vm5930_vm10 = vmor %vm610_vm11, %vm608_vm5  ;;  %vm7410_vm5 = vcmask 949248   ;;  %vm7411_vm11 = vsmask.f32 7938 }
 0x366   :  { %vm5934_vm2 = vmor %vm1584_vm13, %vm1583_vm1  ;;  %v1580_v44 = vsel %vm7410_vm5, %v1579_v39, %v1578_v50  ;;  %vm7412_vm1 = vcmask 1041280   ;;  %v1606_v22 = vpop.permute.xlu1 %1605 }
 0x367   :  { %vm5940_vm7 = vmand %vm621_vm14, %vm7407_vm8  ;;  %vm7415_vm8 = vsmask.f32 2304  ;;  %v1607_v21 = vrot.slane %v1606_v22, 7 }
 0x368   :  { %vm5952_vm15 = vmand %vm7412_vm1, %vm7411_vm11  ;;  %vm7307_vm11 = vcmask 1041184   ;;  %vm7416_vm1 = vcmask 878594  }
 0x369   :  { %v80_v43 = vpop.permute.xlu0 %79  ;;  %vm623_vm13 = vmor %vm7387_vm0, %vm5940_vm7  ;;  %v1608_v50 = vsel %vm603_vm12, %v1607_v21, %v1606_v22 }
 0x36a   :  { %v466_v45 = vadd.f32 %v5752_v14, %v80_v43  ;;  %v468_v57 = vadd.f32 %v5756_v40, %v80_v43  ;;  %v1491_v46 = vadd.f32 %v5779_v8, %v80_v43  ;;  %v1493_v61 = vadd.f32 %v5783_v10, %v80_v43  ;;  %vm625_vm5 = vmand %vm7306_vm9, %vm7415_vm8 }
 0x36b   :  { %v612_v47 = vld [vmem:[#allocation2 + $0x9] sm:$0x7]  ;;  %v1586_v51 = vld [vmem:[#allocation2 + $0x5] sm:$0x7]  ;;  %vm5977_vm8 = vmor %vm625_vm5, %vm623_vm13  ;;  %vm7424_vm13 = vsmask.f32 7938 }
 0x36c   :  { %v613_v14 = vsel %vm5930_vm10, %v604_v36, %v612_v47  ;;  %v1587_v40 = vsel %vm5934_vm2, %v1580_v44, %v1586_v51  ;;  %v478_v8 = vmax.f32 %v466_v45, 0.0  ;;  %v479_v10 = vmax.f32 %v468_v57, 0.0  ;;  %vm1599_vm10 = vmor %vm7401_vm4, %vm5952_vm15  ;;  %v666_v45 = vpop.permute.xlu1 %665  ;;  %v5088_v36 = vld [vmem:[#allocation3 + $0x70] ss:$252 sps:$4 sm:$0xff]  }
 0x36d   :  { %614 = vst [vmem:[#allocation2 + $0x9] sm:$0x7] %v613_v14  ;;  %1588 = vst [vmem:[#allocation2 + $0x5] sm:$0x7] %v1587_v40  ;;  %v1503_v60 = vmax.f32 %v1491_v46, 0.0  ;;  %v1504_v62 = vmax.f32 %v1493_v61, 0.0  ;;  %v1622_v57 = vpop.permute.xlu0 %1621 }
 0x36e   :  { %v4684_v2 = vpack.c.bf16 %v479_v10, %v478_v8  ;;  %vm1600_vm2 = vmand %vm7416_vm1, %vm7317_vm3  ;;  %vm7419_vm15 = vsmask.f32 256  ;;  %vm644_vm1 = vcmask 780290   ;;  %v5086_v61 = vld [vmem:[#allocation3 + $0x74] ss:$252 sps:$4 sm:$0xff]   ;;  %v667_v14 = vrot.slane %v666_v45, 7 }
 0x36f   :  { %v4707_v33 = vpack.c.bf16 %v1504_v62, %v1503_v60  ;;  %vm5985_vm9 = vmand %vm7307_vm11, %vm7419_vm15  ;;  %vm7427_vm15 = vcmask 850944   ;;  %3841 = vmatprep.subr.bf16.mxu0 %v5086_v61  ;;  %v1623_v40 = vrot.slane %v1622_v57, 7 }
 0x370   :  { %v824_v1 = vrot.slane %v4684_v2, %v5739_v29  ;;  %vm5992_vm7 = vmor %vm1600_vm2, %vm1599_vm10  ;;  %v619_v34 = vsel %vm7427_vm15, %v618_v52, %v5904_v24  ;;  %vm7428_vm2 = vcmask 916480   ;;  %v637_v24 = vrot.slane %v5926_v7, 7  ;;  %3842 = vmatpush1.bf16.xpose.msra.mxu0 %v5088_v36  ;;  %v5048_v36 = vld [vmem:[#allocation3 + $0x20c] ss:$252 sps:$4 sm:$0xff]  }
 0x371   :  { %v5990_v13 = vrot.slane %v4707_v33, %v5739_v29  ;;  %vm5999_vm5 = vmand %vm606_vm6, %vm7424_vm13  ;;  %v1596_v11 = vsel %vm7428_vm2, %v1595_v63, %v1594_v59  ;;  %vm7308_vm6 = vcmask 1041152   ;;  %vm7429_vm13 = vsmask.f32 2304  ;;  %v5036_v59 = vld [vmem:[#allocation3 + $0x8] ss:$252 sps:$4 sm:$0xff]  }
 0x372   :  { %v831_v5 = vrot.slane %v824_v1, %v5739_v29  ;;  %v867_v18 = vcombine.high %v824_v1, %v824_v1  ;;  %vm643_vm10 = vmor %vm7387_vm0, %vm5985_vm9  ;;  %vm674_vm9 = vcmask 747522   ;;  %v5041_v63 = vld [vmem:[#allocation3 + $0x204] ss:$252 sps:$4 sm:$0xff]  }
 0x373   :  { %v6005_v19 = vrot.slane %v5990_v13, %v5739_v29  ;;  %vm645_vm11 = vmand %vm644_vm1, %vm7429_vm13  ;;  %vm7431_vm13 = vsmask.f32 256  ;;  %v1822_v43 = vcombine.high %v5990_v13, %v5990_v13 }
 0x374   :  { %v627_v9 = vld [vmem:[#allocation2 + $0xb] sm:$0x7]  ;;  %v1602_v0 = vld [vmem:[#allocation2 + $0x7] sm:$0x7]  ;;  %832 = vrot.lane.b32.xlu1 %v831_v5, %s5322_s13  ;;  %v6022_v20 = vrot.slane %v867_v18, %v5739_v29  ;;  %vm1611_vm15 = vmor %vm7401_vm4, %vm5999_vm5  ;;  %v848_v27 = vshrl.u32 %v831_v5, 16  ;;  %v910_v38 = vcombine.high %v831_v5, %v831_v5 }
 0x375   :  { %v628_v15 = vsel %vm5977_vm8, %v619_v34, %v627_v9  ;;  %v1603_v16 = vsel %vm5992_vm7, %v1596_v11, %v1602_v0  ;;  %v1796_v17 = vshll.u32 %v6005_v19, 16  ;;  %vm7430_vm8 = vcmask 845826   ;;  %vm6032_vm7 = vmand %vm7308_vm6, %vm7431_vm13  ;;  %v5092_v34 = vld [vmem:[#allocation3 + $0x26c] ss:$252 sps:$4 sm:$0xff]   ;;  %v686_v9 = vpop.permute.xlu1 %685  ;;  %v1634_v11 = vpop.permute.xlu0 %1633 }
 0x376   :  { %629 = vst [vmem:[#allocation2 + $0xb] sm:$0x7] %v628_v15  ;;  %1604 = vst [vmem:[#allocation2 + $0x7] sm:$0x7] %v1603_v16  ;;  %v891_v26 = vshrl.u32 %v6022_v20, 16  ;;  %v927_v47 = vshrl.u32 %v910_v38, 16  ;;  %v6096_v51 = vcombine.high %v6005_v19, %v6005_v19  ;;  %v6110_v8 = vrot.slane %v1822_v43, %v5739_v29  ;;  %3843 = vmatprep.subr.bf16.mxu0 %v5092_v34 }
 0x377   :  { %vm1612_vm2 = vmand %vm7430_vm8, %vm7317_vm3  ;;  %1798 = vrot.lane.b32.xlu0 %v1796_v17, %s5322_s13  ;;  %vm638_vm8 = vcmask 818176   ;;  %v946_v52 = vcombine.high %v6022_v20, %v6022_v20  ;;  %v5094_v0 = vld [vmem:[#allocation3 + $0x268] ss:$252 sps:$4 sm:$0xff]   ;;  %v1635_v22 = vrot.slane %v1634_v11, 7  ;;  %v5054_v17 = vld [vmem:[#allocation3 + $0x214] ss:$252 sps:$4 sm:$0xff]  }
 0x378   :  { %852 = vrot.lane.b32.xlu1 %v848_v27, %s5323_s14  ;;  %vm6042_vm5 = vmor %vm645_vm11, %vm643_vm10  ;;  %vm7438_vm11 = vsmask.f32 7938  ;;  %v639_v32 = vsel %vm638_vm8, %v637_v24, %v5926_v7  ;;  %v1859_v33 = vshll.u32 %v6096_v51, 16  ;;  %v1831_v18 = vshll.u32 %v6110_v8, 16  ;;  %3844 = vmatpush1.bf16.xpose.msra.mxu0 %v5094_v0  ;;  %v5039_v27 = vld [vmem:[#allocation3 + $0x200] ss:$252 sps:$4 sm:$0xff]  }
 0x379   :  { %vm6048_vm13 = vmor %vm1612_vm2, %vm1611_vm15  ;;  %vm7444_vm2 = vcmask 813058   ;;  %v963_v15 = vshrl.u32 %v946_v52, 16  ;;  %3881 = vmatprep.subr.bf16.mxu0 %v5101_v28  ;;  %v1885_v43 = vcombine.high %v6110_v8, %v6110_v8  ;;  %v5042_v7 = vld [vmem:[#allocation3 + $0x10] ss:$252 sps:$4 sm:$0xff]  }
 0x37a   :  { %vm673_vm6 = vmor %vm7387_vm0, %vm6032_vm7 }
 0x37b   :  { %895 = vrot.lane.b32.xlu0 %v891_v26, %s5324_s0  ;;  %vm6059_vm10 = vmand %vm621_vm14, %vm7438_vm11  ;;  %vm7441_vm14 = vsmask.f32 2304  ;;  %v1887_v58 = vshll.u32 %v1885_v43, 16 }
 0x37c   :  { %875 = vrot.lane.b32.xlu1 %v6022_v20, %s5325_s15  ;;  %vm6081_vm15 = vmand %vm674_vm9, %vm7441_vm14  ;;  %vm7311_vm14 = vcmask 785408   ;;  %v687_v20 = vrot.slane %v686_v9, 7 }
 0x37d   :  { %v647_v37 = vld [vmem:[#allocation2 + $0xd] sm:$0x7]  ;;  %v1614_v54 = vld [vmem:[#allocation2 + $0x9] sm:$0x7]  ;;  %v6071_v39 = vld [vmem:[#allocation2] sm:$0xff]  ;;  %v669_v1 = vsel %vm7311_vm14, %v667_v14, %v666_v45 }
 0x37e   :  { %v648_v53 = vsel %vm6042_vm5, %v639_v32, %v647_v37  ;;  %v1615_v41 = vsel %vm6048_vm13, %v1608_v50, %v1614_v54  ;;  %vm1627_vm12 = vmor %vm7401_vm4, %vm6059_vm10  ;;  %v2202_v46 = vrot.slane %v6071_v39, %v5739_v29  ;;  %vm7310_vm13 = vcmask 1041120  }
 0x37f   :  { %649 = vst [vmem:[#allocation2 + $0xd] sm:$0x7] %v648_v53  ;;  %1616 = vst [vmem:[#allocation2 + $0x9] sm:$0x7] %v1615_v41  ;;  %911 = vrot.lane.b32.xlu0 %v910_v38, %s5326_s4  ;;  %vm7309_vm10 = vcmask 714754   ;;  %v2195_v16 = vcombine.high %v6071_v39, %v6071_v39  ;;  %v1636_v32 = vsel %vm638_vm8, %v1635_v22, %v1634_v11  ;;  %v709_v39 = vpop.permute.xlu1 %708  ;;  %v1664_v53 = vpop.permute.xlu0 %1663 }
 0x380   :  { %vm1628_vm5 = vmand %vm7444_vm2, %vm7317_vm3  ;;  %84 = vperm.xlu1 %5027, %v66_v31   ;;  %v2210_v44 = vcombine.high %v2202_v46, %v2202_v46  ;;  %v6132_v2 = vrot.slane %v2202_v46, %v5739_v29  ;;  %vm7460_vm14 = vsmask.f32 256  ;;  %v1665_v46 = vrot.slane %v1664_v53, 7 }
 0x381   :  { %vm6105_vm11 = vmor %vm6081_vm15, %vm673_vm6  ;;  %vm7449_vm6 = vsmask.f32 256  ;;  %vm7452_vm15 = vcmask 850944   ;;  %v6195_v21 = vrot.slane %v2195_v16, %v5739_v29 }
 0x382   :  { %vm6117_vm2 = vmor %vm1628_vm5, %vm1627_vm12  ;;  %v2232_v60 = vrot.slane %v2210_v44, %v5739_v29  ;;  %v1624_v13 = vsel %vm7452_vm15, %v1623_v40, %v1622_v57  ;;  %vm7453_vm12 = vsmask.f32 7938  ;;  %vm7454_vm5 = vcmask 1041184  }
 0x383   :  { %931 = vrot.lane.b32.xlu0 %v927_v47, %s5327_s18  ;;  %vm6125_vm7 = vmand %vm7310_vm13, %vm7449_vm6  ;;  %vm7318_vm13 = vcmask 752640   ;;  %v2211_v41 = vcombine.high %v6195_v21, %v6195_v21  ;;  %v710_v57 = vrot.slane %v709_v39, 7  ;;  %v2240_v61 = vcombine.high %v6132_v2, %v6132_v2  ;;  %v5055_v47 = vld [vmem:[#allocation3 + $0x20] ss:$252 sps:$4 sm:$0xff]  }
 0x384   :  { %1810 = vrot.lane.b32.xlu1 %v6005_v19, %s5323_s14  ;;  %3313 = vmatprep.mubr.bf16.mxu1 %v2232_v60  ;;  %v2242_v3 = vcombine.high %v2232_v60, %v2232_v60  ;;  %vm6141_vm6 = vmand %vm7454_vm5, %vm7453_vm12  ;;  %vm7457_vm12 = vsmask.f32 2304  ;;  %v689_v30 = vsel %vm7318_vm13, %v687_v20, %v686_v9  ;;  %v6324_v16 = vrot.slane %v6195_v21, %v5739_v29 }
 0x385   :  { %3314 = vmatmul.mubr.bf16.vlgmr.msra.gmra.mrb[16].mxu1 %v6132_v2  ;;  %vm693_vm15 = vmor %vm7387_vm0, %vm6125_vm7  ;;  %v6255_v44 = vrot.slane %v2211_v41, %v5739_v29  ;;  %v729_v2 = vpop.permute.xlu1 %728 }
 0x386   :  { %v677_v12 = vld [vmem:[#allocation2 + $0xf] sm:$0x7]  ;;  %v1630_v4 = vld [vmem:[#allocation2 + $0xb] sm:$0x7]  ;;  %3322 = vmatpush1.bf16.xpose.msra.mxu1 %v5036_v59  ;;  %vm695_vm5 = vmand %vm7309_vm10, %vm7457_vm12  ;;  %3353 = vmatprep.mubr.bf16.mxu1 %v2242_v3 }
 0x387   :  { %v678_v6 = vsel %vm6105_vm11, %v669_v1, %v677_v12  ;;  %v1631_v19 = vsel %vm6117_vm2, %v1624_v13, %v1630_v4  ;;  %1861 = vrot.lane.b32.xlu0 %v1859_v33, %s5326_s4  ;;  %vm1639_vm11 = vmor %vm7401_vm4, %vm6141_vm6  ;;  %vm7312_vm2 = vcmask 1041088   ;;  %3323 = vmatprep.subr.bf16.mxu1 %v5041_v63  ;;  %v1676_v33 = vpop.permute.xlu0 %1675  ;;  %v5046_v3 = vld [vmem:[#allocation3 + $0x208] ss:$252 sps:$4 sm:$0xff]   ;;  %v730_v1 = vrot.slane %v729_v2, 7  ;;  %v5060_v59 = vld [vmem:[#allocation3 + $0x21c] ss:$252 sps:$4 sm:$0xff]  }
 0x388   :  { %679 = vst [vmem:[#allocation2 + $0xf] sm:$0x7] %v678_v6  ;;  %1632 = vst [vmem:[#allocation2 + $0xb] sm:$0x7] %v1631_v19  ;;  %1833 = vrot.lane.b32.xlu1 %v1831_v18, %s5325_s15  ;;  %v1677_v12 = vrot.slane %v1676_v33, 7  ;;  %v2243_v20 = vcombine.high %v6255_v44, %v6255_v44 }
 0x389   :  { %vm1640_vm12 = vmand %vm644_vm1, %vm7317_vm3  ;;  %v745_v11 = vpop.permute.xlu1 %744  ;;  %v5082_v63 = vld [vmem:[#allocation3 + $0x44] ss:$252 sps:$4 sm:$0xff]  }
 0x38a   :  { %vm6172_vm10 = vmor %vm695_vm5, %vm693_vm15  ;;  %vm7316_vm15 = vcmask 681986   ;;  %vm7466_vm5 = vcmask 1041152  }
 0x38b   :  { %967 = vrot.lane.b32.xlu0 %v963_v15, %s5328_s19  ;;  %vm6179_vm1 = vmand %vm7312_vm2, %vm7460_vm14  ;;  %vm7465_vm14 = vsmask.f32 7938  ;;  %v1699_v0 = vpop.permute.xlu0 %1698  ;;  %v5049_v15 = vld [vmem:[#allocation3 + $0x18] ss:$252 sps:$4 sm:$0xff]  }
 0x38c   :  { %1845 = vrot.lane.b32.xlu1 %v6110_v8, %s5324_s0  ;;  %vm6190_vm7 = vmor %vm1640_vm12, %vm1639_vm11  ;;  %vm7469_vm11 = vsmask.f32 2304  ;;  %v1700_v23 = vrot.slane %v1699_v0, 7 }
 0x38d   :  { %vm6199_vm2 = vmand %vm7466_vm5, %vm7465_vm14  ;;  %vm7476_vm5 = vsmask.f32 256  ;;  %v765_v38 = vpop.permute.xlu1 %764 }
 0x38e   :  { %vm716_vm6 = vmor %vm7387_vm0, %vm6179_vm1  ;;  %3324 = vmatpush1.bf16.xpose.msra.mxu1 %v5039_v27  ;;  %v746_v27 = vrot.slane %v745_v11, 7 }
 0x38f   :  { %v697_v31 = vld [vmem:[#allocation2 + $0x11] sm:$0x7]  ;;  %v1642_v37 = vld [vmem:[#allocation2 + $0xd] sm:$0x7]  ;;  %vm6215_vm12 = vmand %vm7316_vm15, %vm7469_vm11  ;;  %3361 = vmatprep.subr.bf16.mxu1 %v5044_v25  ;;  %vm7314_vm11 = vcmask 649218   ;;  %vm7321_vm15 = vcmask 616450  }
 0x390   :  { %v698_v50 = vsel %vm6172_vm10, %v689_v30, %v697_v31  ;;  %v1643_v54 = vsel %vm6190_vm7, %v1636_v32, %v1642_v37  ;;  %947 = vrot.lane.b32.xlu1 %v946_v52, %s5329_s20  ;;  %vm1669_vm8 = vmor %vm7401_vm4, %vm6199_vm2  ;;  %vm7315_vm7 = vcmask 1041056   ;;  %vm7479_vm2 = vcmask 785408   ;;  %v5051_v52 = vld [vmem:[#allocation3 + $0x1c] ss:$252 sps:$4 sm:$0xff]  }
 0x391   :  { %699 = vst [vmem:[#allocation2 + $0x11] sm:$0x7] %v698_v50  ;;  %1644 = vst [vmem:[#allocation2 + $0xd] sm:$0x7] %v1643_v54  ;;  %v1666_v8 = vsel %vm7479_vm2, %v1665_v46, %v1664_v53  ;;  %vm7484_vm2 = vsmask.f32 2304 }
 0x392   :  { %vm1670_vm10 = vmand %vm674_vm9, %vm7317_vm3  ;;  %vm7313_vm9 = vcmask 719872   ;;  %v5052_v54 = vld [vmem:[#allocation3 + $0x210] ss:$252 sps:$4 sm:$0xff]   ;;  %v5057_v53 = vld [vmem:[#allocation3 + $0x24] ss:$252 sps:$4 sm:$0xff]  }
 0x393   :  { %vm6237_vm14 = vmor %vm6215_vm12, %vm716_vm6  ;;  %v712_v14 = vsel %vm7313_vm9, %v710_v57, %v709_v39  ;;  %vm7480_vm12 = vsmask.f32 7938  ;;  %v1711_v39 = vpop.permute.xlu0 %1710  ;;  %v5073_v57 = vld [vmem:[#allocation3 + $0x22c] ss:$252 sps:$4 sm:$0xff]  }
 0x394   :  { %1873 = vrot.lane.b32.xlu1 %v6096_v51, %s5327_s18  ;;  %vm6250_vm1 = vmor %vm1670_vm10, %vm1669_vm8  ;;  %vm7481_vm8 = vcmask 1041120   ;;  %v1712_v45 = vrot.slane %v1711_v39, 7 }
 0x395   :  { %vm6259_vm6 = vmand %vm7315_vm7, %vm7476_vm5  ;;  %3354 = vmatmul.mubr.bf16.vlgmr.msra.gmra.mrb[16].mxu1 %v2240_v61 }
 0x396   :  { %3362 = vmatpush1.bf16.xpose.msra.mxu1 %v5042_v7  ;;  %3393 = vmatprep.mubr.bf16.mxu1 %v6255_v44  ;;  %vm6268_vm10 = vmand %vm7481_vm8, %vm7480_vm12  ;;  %vm750_vm8 = vcmask 1041024   ;;  %v766_v7 = vrot.slane %v765_v38, 7 }
 0x397   :  { %3363 = vmatprep.subr.bf16.mxu1 %v5048_v36  ;;  %vm736_vm5 = vmor %vm7387_vm0, %vm6259_vm6 }
 0x398   :  { %v720_v40 = vld [vmem:[#allocation2 + $0x13] sm:$0x7]  ;;  %v1672_v10 = vld [vmem:[#allocation2 + $0xf] sm:$0x7]  ;;  %1889 = vrot.lane.b32.xlu1 %v1887_v58, %s5329_s20  ;;  %vm738_vm12 = vmand %vm7314_vm11, %vm7484_vm2  ;;  %vm731_vm2 = vcmask 687104  }
 0x399   :  { %v721_v60 = vsel %vm6237_vm14, %v712_v14, %v720_v40  ;;  %v1673_v62 = vsel %vm6250_vm1, %v1666_v8, %v1672_v10  ;;  %vm1681_vm14 = vmor %vm7401_vm4, %vm6268_vm10  ;;  %vm7485_vm1 = vcmask 714754   ;;  %vm7488_vm11 = vsmask.f32 256 }
 0x39a   :  { %722 = vst [vmem:[#allocation2 + $0x13] sm:$0x7] %v721_v60  ;;  %1674 = vst [vmem:[#allocation2 + $0xf] sm:$0x7] %v1673_v62  ;;  %v732_v5 = vsel %vm731_vm2, %v730_v1, %v729_v2  ;;  %v1713_v58 = vsel %vm731_vm2, %v1712_v45, %v1711_v39  ;;  %v2241_v10 = vcombine.high %v6324_v16, %v6324_v16  ;;  %v781_v60 = vpop.permute.xlu1 %780  ;;  %v1727_v62 = vpop.permute.xlu0 %1726  ;;  %v5058_v1 = vld [vmem:[#allocation3 + $0x218] ss:$252 sps:$4 sm:$0xff]  }
 0x39b   :  { %vm1682_vm9 = vmand %vm7485_vm1, %vm7317_vm3  ;;  %vm7491_vm1 = vsmask.f32 7938  ;;  %vm7492_vm3 = vcmask 1041088  }
 0x39c   :  { %1901 = vrot.lane.b32.xlu1 %v1885_v43, %s5328_s19  ;;  %vm6290_vm6 = vmor %vm738_vm12, %vm736_vm5  ;;  %vm7495_vm5 = vcmask 752640  }
 0x39d   :  { %vm6296_vm7 = vmand %vm750_vm8, %vm7488_vm11  ;;  %v1678_v6 = vsel %vm7495_vm5, %v1677_v12, %v1676_v33  ;;  %v5063_v12 = vld [vmem:[#allocation3 + $0x2c] ss:$252 sps:$4 sm:$0xff]  }
 0x39e   :  { %vm1683_vm10 = vmor %vm1682_vm9, %vm1681_vm14  ;;  %3364 = vmatpush1.bf16.xpose.msra.mxu1 %v5046_v3  ;;  %vm7497_vm14 = vsmask.f32 7946  ;;  %v782_v3 = vrot.slane %v781_v60, 7 }
 0x39f   :  { %vm6302_vm13 = vmand %vm7492_vm3, %vm7491_vm1  ;;  %3401 = vmatprep.subr.bf16.mxu1 %v5051_v52  ;;  %vm7496_vm3 = vsmask.f32 2304  ;;  %vm7498_vm1 = vcmask 681986   ;;  %v1728_v52 = vrot.slane %v1727_v62, 7 }
 0x3a0   :  { %vm752_vm9 = vmor %vm7387_vm0, %vm6296_vm7  ;;  %vm7320_vm7 = vcmask 583682  }
 0x3a1   :  { %v740_v18 = vld [vmem:[#allocation2 + $0x15] sm:$0x7]  ;;  %v1684_v19 = vld [vmem:[#allocation2 + $0x11] sm:$0x7]  ;;  %vm754_vm11 = vmand %vm7321_vm15, %vm7496_vm3  ;;  %vm7503_vm3 = vsmask.f32 256 }
 0x3a2   :  { %v741_v34 = vsel %vm6290_vm6, %v732_v5, %v740_v18  ;;  %v1685_v9 = vsel %vm1683_vm10, %v1678_v6, %v1684_v19  ;;  %vm1704_vm12 = vmor %vm7401_vm4, %vm6302_vm13  ;;  %vm7319_vm6 = vcmask 1040992   ;;  %v6356_v32 = vld [vmem:[#allocation2 + $0x8] sm:$0xff] }
 0x3a3   :  { %742 = vst [vmem:[#allocation2 + $0x15] sm:$0x7] %v741_v34  ;;  %1686 = vst [vmem:[#allocation2 + $0x11] sm:$0x7] %v1685_v9  ;;  %v6374_v41 = vrot.slane %v6356_v32, %v5739_v29  ;;  %v801_v9 = vpop.permute.xlu1 %800 }
 0x3a4   :  { %vm1705_vm5 = vmand %vm7498_vm1, %vm7497_vm14 }
 0x3a5   :  { %vm6333_vm13 = vmor %vm754_vm11, %vm752_vm9  ;;  %3394 = vmatmul.mubr.bf16.vlgmr.msra.gmra.mrb[16].mxu1 %v6324_v16  ;;  %vm7506_vm9 = vsmask.f32 7938  ;;  %vm7507_vm11 = vcmask 1041056   ;;  %v2259_v61 = vcombine.high %v6374_v41, %v6374_v41  ;;  %v5061_v16 = vld [vmem:[#allocation3 + $0x28] ss:$252 sps:$4 sm:$0xff]  }
 0x3a6   :  { %vm6338_vm10 = vmor %vm1705_vm5, %vm1704_vm12  ;;  %3402 = vmatpush1.bf16.xpose.msra.mxu1 %v5049_v15  ;;  %3433 = vmatprep.mubr.bf16.mxu1 %v2243_v20  ;;  %vm7510_vm12 = vcmask 654336   ;;  %vm7511_vm5 = vcmask 719872   ;;  %v5066_v20 = vld [vmem:[#allocation3 + $0x224] ss:$252 sps:$4 sm:$0xff]  }
 0x3a7   :  { %vm6344_vm14 = vmand %vm7319_vm6, %vm7503_vm3  ;;  %3403 = vmatprep.subr.bf16.mxu1 %v5054_v17  ;;  %v748_v26 = vsel %vm7510_vm12, %v746_v27, %v745_v11  ;;  %v1701_v30 = vsel %vm7511_vm5, %v1700_v23, %v1699_v0  ;;  %vm7514_vm12 = vcmask 649218   ;;  %v2281_v2 = vrot.slane %v2259_v61, %v5739_v29  ;;  %v1739_v11 = vpop.permute.xlu0 %1738  ;;  %v5076_v61 = vld [vmem:[#allocation3 + $0x3c] ss:$252 sps:$4 sm:$0xff]  }
 0x3a8   :  { %vm6350_vm1 = vmand %vm7507_vm11, %vm7506_vm9  ;;  %vm7512_vm9 = vsmask.f32 2304  ;;  %v802_v0 = vrot.slane %v801_v9, 7  ;;  %v1740_v15 = vrot.slane %v1739_v11, 7  ;;  %v2267_v17 = vrot.slane %v6374_v41, %v5739_v29 }
 0x3a9   :  { %vm772_vm3 = vmor %vm7387_vm0, %vm6344_vm14  ;;  %vm7513_vm14 = vsmask.f32 7946  ;;  %v2291_v21 = vcombine.high %v2281_v2, %v2281_v2 }
 0x3aa   :  { %v756_v28 = vld [vmem:[#allocation2 + $0x17] sm:$0x7]  ;;  %v1707_v31 = vld [vmem:[#allocation2 + $0x13] sm:$0x7]  ;;  %vm774_vm11 = vmand %vm7320_vm7, %vm7512_vm9  ;;  %vm767_vm9 = vcmask 621568   ;;  %v2289_v45 = vcombine.high %v2267_v17, %v2267_v17 }
 0x3ab   :  { %v757_v37 = vsel %vm6333_vm13, %v748_v26, %v756_v28  ;;  %v1708_v50 = vsel %vm6338_vm10, %v1701_v30, %v1707_v31  ;;  %vm1716_vm13 = vmor %vm7401_vm4, %vm6350_vm1  ;;  %vm7323_vm10 = vcmask 1040960   ;;  %vm7517_vm7 = vsmask.f32 256  ;;  %v1755_v30 = vpop.permute.xlu0 %1754 }
 0x3ac   :  { %758 = vst [vmem:[#allocation2 + $0x17] sm:$0x7] %v757_v37  ;;  %1709 = vst [vmem:[#allocation2 + $0x13] sm:$0x7] %v1708_v50  ;;  %v768_v44 = vsel %vm767_vm9, %v766_v7, %v765_v38  ;;  %v1741_v23 = vsel %vm767_vm9, %v1740_v15, %v1739_v11  ;;  %v2244_v31 = vcombine.high %v6356_v32, %v6356_v32  ;;  %v1756_v37 = vrot.slane %v1755_v30, 7 }
 0x3ad   :  { %vm1717_vm5 = vmand %vm7514_vm12, %vm7513_vm14  ;;  %vm7322_vm14 = vcmask 550914   ;;  %vm7527_vm12 = vcmask 616450   ;;  %v5064_v50 = vld [vmem:[#allocation3 + $0x220] ss:$252 sps:$4 sm:$0xff]   ;;  %v5067_v7 = vld [vmem:[#allocation3 + $0x30] ss:$252 sps:$4 sm:$0xff]  }
 0x3ae   :  { %vm6378_vm6 = vmor %vm774_vm11, %vm772_vm3  ;;  %3404 = vmatpush1.bf16.xpose.msra.mxu1 %v5052_v54  ;;  %vm7522_vm3 = vsmask.f32 7938  ;;  %v5069_v54 = vld [vmem:[#allocation3 + $0x34] ss:$252 sps:$4 sm:$0xff]   ;;  %v2258_v38 = vrot.slane %v2244_v31, %v5739_v29  ;;  %v5071_v32 = vld [vmem:[#allocation3 + $0x228] ss:$252 sps:$4 sm:$0xff]  }
 0x3af   :  { %vm6384_vm15 = vmand %vm7323_vm10, %vm7517_vm7  ;;  %3441 = vmatprep.subr.bf16.mxu1 %v5057_v53  ;;  %v1767_v33 = vpop.permute.xlu0 %1766 }
 0x3b0   :  { %vm6388_vm1 = vmor %vm1717_vm5, %vm1716_vm13  ;;  %v2260_v43 = vcombine.high %v2258_v38, %v2258_v38 }
 0x3b1   :  { %vm6396_vm11 = vmand %vm750_vm8, %vm7522_vm3  ;;  %vm7525_vm8 = vsmask.f32 2304 }
 0x3b2   :  { %vm788_vm7 = vmor %vm7387_vm0, %vm6384_vm15  ;;  %vm7533_vm15 = vcmask 654336   ;;  %v2288_v46 = vrot.slane %v2260_v43, %v5739_v29 }
 0x3b3   :  { %v776_v51 = vld [vmem:[#allocation2 + $0x19] sm:$0x7]  ;;  %v1719_v14 = vld [vmem:[#allocation2 + $0x15] sm:$0x7]  ;;  %vm790_vm13 = vmand %vm7322_vm14, %vm7525_vm8  ;;  %vm7530_vm14 = vsmask.f32 256  ;;  %v1729_v5 = vsel %vm7533_vm15, %v1728_v52, %v1727_v62 }
 0x3b4   :  { %v777_v40 = vsel %vm6378_vm6, %v768_v44, %v776_v51  ;;  %v1720_v8 = vsel %vm6388_vm1, %v1713_v58, %v1719_v14  ;;  %vm1732_vm2 = vmor %vm7401_vm4, %vm6396_vm11  ;;  %vm7526_vm6 = vsmask.f32 7946  ;;  %vm7324_vm1 = vcmask 1040928   ;;  %v5079_v51 = vld [vmem:[#allocation3 + $0x234] ss:$252 sps:$4 sm:$0xff]  }
 0x3b5   :  { %778 = vst [vmem:[#allocation2 + $0x19] sm:$0x7] %v777_v40  ;;  %1721 = vst [vmem:[#allocation2 + $0x15] sm:$0x7] %v1720_v8  ;;  %3434 = vmatmul.mubr.bf16.vlgmr.msra.gmra.mrb[16].mxu1 %v2241_v10  ;;  %vm783_vm11 = vcmask 588800   ;;  %v2274_v44 = vrot.slane %v2258_v38, %v5739_v29  ;;  %v2292_v58 = vcombine.high %v2288_v46, %v2288_v46 }
 0x3b6   :  { %vm1733_vm5 = vmand %vm7527_vm12, %vm7526_vm6  ;;  %3442 = vmatpush1.bf16.xpose.msra.mxu1 %v5055_v47  ;;  %3473 = vmatprep.mubr.bf16.mxu1 %v2281_v2  ;;  %vm809_vm12 = vcmask 518146   ;;  %v784_v13 = vsel %vm783_vm11, %v782_v3, %v781_v60  ;;  %v1757_v39 = vsel %vm783_vm11, %v1756_v37, %v1755_v30  ;;  %vm7547_vm11 = vsmask.f32 256  ;;  %v5074_v47 = vld [vmem:[#allocation3 + $0x38] ss:$252 sps:$4 sm:$0xff]  }
 0x3b7   :  { %vm6426_vm3 = vmor %vm790_vm13, %vm788_vm7  ;;  %3443 = vmatprep.subr.bf16.mxu1 %v5060_v59  ;;  %vm7534_vm7 = vsmask.f32 7938  ;;  %vm7535_vm13 = vcmask 1040992   ;;  %v5077_v52 = vld [vmem:[#allocation3 + $0x230] ss:$252 sps:$4 sm:$0xff]  }
 0x3b8   :  { %vm1734_vm8 = vmor %vm1733_vm5, %vm1732_vm2  ;;  %vm7538_vm2 = vsmask.f32 2304 }
 0x3b9   :  { %vm6432_vm6 = vmand %vm7324_vm1, %vm7530_vm14 }
 0x3ba   :  { %vm6440_vm10 = vmand %vm7535_vm13, %vm7534_vm7 }
 0x3bb   :  { %vm808_vm14 = vmor %vm7387_vm0, %vm6432_vm6  ;;  %vm803_vm6 = vcmask 556032  }
 0x3bc   :  { %v792_v4 = vld [vmem:[#allocation2 + $0x1b] sm:$0x7]  ;;  %v1735_v18 = vld [vmem:[#allocation2 + $0x17] sm:$0x7]  ;;  %vm810_vm5 = vmand %vm809_vm12, %vm7538_vm2  ;;  %v804_v22 = vsel %vm803_vm6, %v802_v0, %v801_v9  ;;  %vm7542_vm2 = vcmask 1040960  }
 0x3bd   :  { %v793_v19 = vsel %vm6426_vm3, %v784_v13, %v792_v4  ;;  %v1736_v34 = vsel %vm1734_vm8, %v1729_v5, %v1735_v18  ;;  %vm1744_vm15 = vmor %vm7401_vm4, %vm6440_vm10  ;;  %vm7539_vm3 = vsmask.f32 7946  ;;  %vm7540_vm8 = vcmask 583682  }
 0x3be   :  { %794 = vst [vmem:[#allocation2 + $0x1b] sm:$0x7] %v793_v19  ;;  %1737 = vst [vmem:[#allocation2 + $0x17] sm:$0x7] %v1736_v34  ;;  %3444 = vmatpush1.bf16.xpose.msra.mxu1 %v5058_v1  ;;  %vm7541_vm10 = vsmask.f32 7938 }
 0x3bf   :  { %vm1745_vm7 = vmand %vm7540_vm8, %vm7539_vm3  ;;  %3481 = vmatprep.subr.bf16.mxu1 %v5063_v12  ;;  %vm838_vm8 = vcmask 1040896   ;;  %v1768_v13 = vrot.slane %v1767_v33, 7 }
 0x3c0   :  { %vm811_vm13 = vmor %vm810_vm5, %vm808_vm14  ;;  %vm7545_vm14 = vsmask.f32 7946  ;;  %vm7546_vm5 = vcmask 550914  }
 0x3c1   :  { %vm1746_vm1 = vmor %vm1745_vm7, %vm1744_vm15  ;;  %v1769_v19 = vsel %vm803_vm6, %v1768_v13, %v1767_v33  ;;  %vm7327_vm6 = vcmask 419842  }
 0x3c2   :  { %vm6464_vm3 = vmand %vm7542_vm2, %vm7541_vm10  ;;  %vm7550_vm2 = vsmask.f32 2304 }
 0x3c3   :  { %vm1760_vm9 = vmor %vm7401_vm4, %vm6464_vm3 }
 0x3c4   :  { %vm1761_vm15 = vmand %vm7546_vm5, %vm7545_vm14  ;;  %vm7552_vm14 = vcmask 1040928  }
 0x3c5   :  { %v812_v27 = vld [vmem:[#allocation2 + $0x1d] sm:$0x7]  ;;  %v1747_v25 = vld [vmem:[#allocation2 + $0x19] sm:$0x7]  ;;  %3474 = vmatmul.mubr.bf16.vlgmr.msra.gmra.mrb[16].mxu1 %v2267_v17  ;;  %vm6481_vm7 = vmand %vm838_vm8, %vm7547_vm11 }
 0x3c6   :  { %v813_v26 = vsel %vm811_vm13, %v804_v22, %v812_v27  ;;  %v1748_v28 = vsel %vm1746_vm1, %v1741_v23, %v1747_v25  ;;  %3482 = vmatpush1.bf16.xpose.msra.mxu1 %v5061_v16  ;;  %3513 = vmatprep.mubr.bf16.mxu1 %v2291_v21  ;;  %vm1762_vm1 = vmor %vm1761_vm15, %vm1760_vm9  ;;  %vm841_vm13 = vcmask 485378   ;;  %vm7551_vm9 = vsmask.f32 7938  ;;  %v6509_v2 = vld [vmem:[#allocation2 + $0x10] sm:$0xff]  ;;  %v5080_v17 = vld [vmem:[#allocation3 + $0x40] ss:$252 sps:$4 sm:$0xff]  }
 0x3c7   :  { %814 = vst [vmem:[#allocation2 + $0x1d] sm:$0x7] %v813_v26  ;;  %1749 = vst [vmem:[#allocation2 + $0x19] sm:$0x7] %v1748_v28  ;;  %3483 = vmatprep.subr.bf16.mxu1 %v5066_v20  ;;  %vm7326_vm15 = vcmask 523264   ;;  %v6521_v1 = vrot.slane %v6509_v2, %v5739_v29  ;;  %v2290_v23 = vcombine.high %v2274_v44, %v2274_v44 }
 0x3c8   :  { %vm840_vm10 = vmor %vm7387_vm0, %vm6481_vm7  ;;  %vm7555_vm7 = vsmask.f32 256  ;;  %v5085_v25 = vld [vmem:[#allocation3 + $0x23c] ss:$252 sps:$4 sm:$0xff]  }
 0x3c9   :  { %vm842_vm3 = vmand %vm841_vm13, %vm7550_vm2  ;;  %v2308_v6 = vcombine.high %v6521_v1, %v6521_v1  ;;  %v5083_v28 = vld [vmem:[#allocation3 + $0x238] ss:$252 sps:$4 sm:$0xff]   ;;  %v6630_v60 = vrot.slane %v6521_v1, %v5739_v29  ;;  %v5112_v20 = vld [vmem:[#allocation3 + $0x80] ss:$252 sps:$4 sm:$0xff]  }
 0x3ca   :  { %vm6494_vm5 = vmand %vm7552_vm14, %vm7551_vm9  ;;  %vm861_vm14 = vcmask 452610  }
 0x3cb   :  { %vm843_vm11 = vmor %vm842_vm3, %vm840_vm10  ;;  %vm7558_vm10 = vsmask.f32 7946  ;;  %v6566_v24 = vrot.slane %v2308_v6, %v5739_v29 }
 0x3cc   :  { %vm1772_vm9 = vmor %vm7401_vm4, %vm6494_vm5 }
 0x3cd   :  { %vm1773_vm3 = vmand %vm809_vm12, %vm7558_vm10  ;;  %vm7562_vm12 = vsmask.f32 7938 }
 0x3ce   :  { %v1763_v53 = vld [vmem:[#allocation2 + $0x1b] sm:$0x7]  ;;  %3484 = vmatpush1.bf16.xpose.msra.mxu1 %v5064_v50  ;;  %v844_v59 = vld [vmem:[#allocation2 + $0x1f] sm:$0x7]  ;;  %vm6529_vm10 = vmand %vm838_vm8, %vm7562_vm12  ;;  %vm7567_vm8 = vsmask.f32 256 }
 0x3cf   :  { %v1764_v41 = vsel %vm1762_vm1, %v1757_v39, %v1763_v53  ;;  %3521 = vmatprep.subr.bf16.mxu1 %v5069_v54  ;;  %vm7325_vm1 = vcmask 1040864   ;;  %vm7573_vm12 = vsmask.f32 2304  ;;  %v5091_v53 = vld [vmem:[#allocation3 + $0x4c] ss:$252 sps:$4 sm:$0xff]  }
 0x3d0   :  { %1765 = vst [vmem:[#allocation2 + $0x1b] sm:$0x7] %v1764_v41  ;;  %vm6501_vm2 = vmand %vm7325_vm1, %vm7555_vm7  ;;  %vm7559_vm1 = vsmask.f32 2304 }
 0x3d1   :  { %vm860_vm7 = vmor %vm7387_vm0, %vm6501_vm2  ;;  %vm855_vm2 = vcmask 490496  }
 0x3d2   :  { %vm862_vm5 = vmand %vm861_vm14, %vm7559_vm1 }
 0x3d3   :  { %vm6533_vm1 = vmor %vm862_vm5, %vm860_vm7  ;;  %vm7570_vm7 = vsmask.f32 7946 }
 0x3d4   :  { %vm6557_vm5 = vmand %vm841_vm13, %vm7570_vm7 }
 0x3d5   :  { %3514 = vmatmul.mubr.bf16.vlgmr.msra.gmra.mrb[16].mxu1 %v2289_v45  ;;  %vm885_vm13 = vmand %vm7327_vm6, %vm7573_vm12  ;;  %vm7574_vm12 = vcmask 523264   ;;  %vm7575_vm6 = vsmask.f32 256 }
 0x3d6   :  { %3522 = vmatpush1.bf16.xpose.msra.mxu1 %v5067_v7  ;;  %3553 = vmatprep.mubr.bf16.mxu1 %v2288_v46 }
 0x3d7   :  { %3523 = vmatprep.subr.bf16.mxu1 %v5073_v57 }
 0x3de   :  { %3524 = vmatpush1.bf16.xpose.msra.mxu1 %v5071_v32 }
 0x3df   :  { %3561 = vmatprep.subr.bf16.mxu1 %v5076_v61 }
 0x3e5   :  { %3554 = vmatmul.mubr.bf16.vlgmr.msra.gmra.mrb[16].mxu1 %v2274_v44 }
 0x3e6   :  { %v833_v40 = vpop.permute.xlu1 %832  ;;  %3562 = vmatpush1.bf16.xpose.msra.mxu1 %v5074_v47  ;;  %3593 = vmatprep.mubr.bf16.mxu1 %v2292_v58  ;;  %v5097_v58 = vld [vmem:[#allocation3 + $0x244] ss:$252 sps:$4 sm:$0xff]  }
 0x3e7   :  { %v834_v8 = vrot.slane %v833_v40, 7  ;;  %3563 = vmatprep.subr.bf16.mxu1 %v5079_v51 }
 0x3e9   :  { %v836_v10 = vsel %vm7326_vm15, %v834_v8, %v833_v40  ;;  %vm7328_vm15 = vcmask 1040832   ;;  %v1799_v22 = vpop.permute.xlu0 %1798 }
 0x3ea   :  { %v845_v62 = vsel %vm843_vm11, %v836_v10, %v844_v59  ;;  %v853_v3 = vpop.permute.xlu1 %852  ;;  %vm6523_vm11 = vmor %vm1773_vm3, %vm1772_vm9  ;;  %v1800_v21 = vrot.slane %v1799_v22, 7 }
 0x3eb   :  { %846 = vst [vmem:[#allocation2 + $0x1f] sm:$0x7] %v845_v62  ;;  %v854_v4 = vrot.slane %v853_v3, 7  ;;  %vm6543_vm9 = vmand %vm7328_vm15, %vm7567_vm8  ;;  %vm7330_vm8 = vcmask 457728  }
 0x3ec   :  { %vm1804_vm3 = vmor %vm7401_vm4, %vm6529_vm10  ;;  %v1801_v30 = vsel %vm7574_vm12, %v1800_v21, %v1799_v22  ;;  %vm7329_vm10 = vcmask 387074   ;;  %v5099_v21 = vld [vmem:[#allocation3 + $0x78] ss:$252 sps:$4 sm:$0xff]  }
 0x3ed   :  { %v856_v9 = vsel %vm855_vm2, %v854_v4, %v853_v3  ;;  %v896_v41 = vpop.permute.xlu0 %895 }
 0x3ee   :  { %3564 = vmatpush1.bf16.xpose.msra.mxu1 %v5077_v52  ;;  %v876_v27 = vpop.permute.xlu1 %875  ;;  %v897_v45 = vrot.slane %v896_v41, 7  ;;  %v2340_v52 = vcombine.high %v6566_v24, %v6566_v24 }
 0x3ef   :  { %3601 = vmatprep.subr.bf16.mxu1 %v5082_v63  ;;  %v877_v26 = vrot.slane %v876_v27, 7 }
 0x3f1   :  { %v879_v37 = vsel %vm7330_vm8, %v877_v26, %v876_v27  ;;  %v912_v12 = vpop.permute.xlu0 %911 }
 0x3f2   :  { %v1775_v34 = vld [vmem:[#allocation2 + $0x1d] sm:$0x7]  ;;  %v864_v11 = vld [vmem:[#allocation2 + $0x21] sm:$0x7] }
 0x3f3   :  { %v1776_v15 = vsel %vm6523_vm11, %v1769_v19, %v1775_v34  ;;  %v865_v16 = vsel %vm6533_vm1, %v856_v9, %v864_v11  ;;  %vm883_vm11 = vmor %vm7387_vm0, %vm6543_vm9  ;;  %vm7331_vm9 = vcmask 1040800  }
 0x3f4   :  { %1777 = vst [vmem:[#allocation2 + $0x1d] sm:$0x7] %v1776_v15  ;;  %866 = vst [vmem:[#allocation2 + $0x21] sm:$0x7] %v865_v16  ;;  %v913_v15 = vrot.slane %v912_v12, 7 }
 0x3f5   :  { %3594 = vmatmul.mubr.bf16.vlgmr.msra.gmra.mrb[16].mxu1 %v2290_v23  ;;  %vm1806_vm1 = vmor %vm6557_vm5, %vm1804_vm3  ;;  %vm7578_vm3 = vsmask.f32 7938  ;;  %vm7579_vm5 = vcmask 1040864  }
 0x3f6   :  { %3602 = vmatpush1.bf16.xpose.msra.mxu1 %v5080_v17  ;;  %3633 = vmatprep.mubr.bf16.mxu1 %v6566_v24  ;;  %vm886_vm7 = vmor %vm885_vm13, %vm883_vm11  ;;  %vm7582_vm13 = vsmask.f32 2304  ;;  %v2293_v17 = vcombine.high %v6509_v2, %v6509_v2 }
 0x3f7   :  { %3603 = vmatprep.subr.bf16.mxu1 %v5085_v25  ;;  %vm6582_vm15 = vmand %vm7331_vm9, %vm7575_vm6  ;;  %vm7335_vm9 = vcmask 354306   ;;  %v5095_v25 = vld [vmem:[#allocation3 + $0x240] ss:$252 sps:$4 sm:$0xff]  }
 0x3f8   :  { %vm6588_vm11 = vmand %vm7579_vm5, %vm7578_vm3  ;;  %vm7583_vm3 = vsmask.f32 7946 }
 0x3f9   :  { %vm903_vm6 = vmor %vm7387_vm0, %vm6582_vm15  ;;  %vm898_vm15 = vcmask 424960  }
 0x3fa   :  { %vm1816_vm12 = vmor %vm7401_vm4, %vm6588_vm11  ;;  %v899_v14 = vsel %vm898_vm15, %v897_v45, %v896_v41  ;;  %vm7592_vm11 = vcmask 1040832   ;;  %v5108_v41 = vld [vmem:[#allocation3 + $0x274] ss:$252 sps:$4 sm:$0xff]  }
 0x3fb   :  { %v1807_v31 = vld [vmem:[#allocation2 + $0x1f] sm:$0x7]  ;;  %v887_v50 = vld [vmem:[#allocation2 + $0x23] sm:$0x7]  ;;  %vm1817_vm5 = vmand %vm861_vm14, %vm7583_vm3  ;;  %vm7332_vm3 = vcmask 1040736  }
 0x3fc   :  { %v1808_v38 = vsel %vm1806_vm1, %v1801_v30, %v1807_v31  ;;  %v888_v39 = vsel %vm886_vm7, %v879_v37, %v887_v50  ;;  %vm905_vm1 = vmand %vm7329_vm10, %vm7582_vm13  ;;  %vm917_vm7 = vcmask 1040768   ;;  %vm7586_vm10 = vsmask.f32 256  ;;  %v5104_v37 = vld [vmem:[#allocation3 + $0x54] ss:$252 sps:$4 sm:$0xff]  }
 0x3fd   :  { %1809 = vst [vmem:[#allocation2 + $0x1f] sm:$0x7] %v1808_v38  ;;  %889 = vst [vmem:[#allocation2 + $0x23] sm:$0x7] %v888_v39  ;;  %v5149_v38 = vld [vmem:[#allocation3 + $0x98] ss:$252 sps:$4 sm:$0xff]  }
 0x3fe   :  { %3604 = vmatpush1.bf16.xpose.msra.mxu1 %v5083_v28  ;;  %vm6608_vm13 = vmor %vm905_vm1, %vm903_vm6 }
 0x3ff   :  { %v85_v7 = vpop.permute.xlu1 %84  ;;  %3641 = vmatprep.subr.bf16.mxu1 %v5091_v53  ;;  %vm6614_vm8 = vmand %vm917_vm7, %vm7586_vm10  ;;  %vm7591_vm10 = vsmask.f32 7938  ;;  %v6723_v53 = vrot.slane %v2293_v17, %v5739_v29 }
 0x400   :  { %v470_v57 = vadd.f32 %v5759_v42, %v85_v7  ;;  %v472_v46 = vadd.f32 %v5761_v35, %v85_v7  ;;  %v1495_v32 = vadd.f32 %v5796_v49, %v85_v7  ;;  %v1497_v61 = vadd.f32 %v5798_v55, %v85_v7  ;;  %v5089_v55 = vld [vmem:[#allocation3 + $0x48] ss:$252 sps:$4 sm:$0xff]   ;;  %vm6624_vm14 = vmor %vm1817_vm5, %vm1816_vm12 }
 0x401   :  { %vm6644_vm6 = vmand %vm7592_vm11, %vm7591_vm10  ;;  %vm7599_vm10 = vcmask 419842  }
 0x402   :  { %v480_v42 = vmax.f32 %v470_v57, 0.0  ;;  %v481_v35 = vmax.f32 %v472_v46, 0.0  ;;  %v1505_v47 = vmax.f32 %v1495_v32, 0.0  ;;  %v1506_v44 = vmax.f32 %v1497_v61, 0.0  ;;  %vm919_vm1 = vmor %vm7387_vm0, %vm6614_vm8  ;;  %v932_v57 = vpop.permute.xlu0 %931  ;;  %v5118_v61 = vld [vmem:[#allocation3 + $0x278] ss:$252 sps:$4 sm:$0xff]  }
 0x403   :  { %v1811_v51 = vpop.permute.xlu1 %1810  ;;  %vm1839_vm5 = vmor %vm7401_vm4, %vm6644_vm6  ;;  %vm7333_vm8 = vcmask 321538   ;;  %v933_v49 = vrot.slane %v932_v57, 7 }
 0x404   :  { %v907_v40 = vld [vmem:[#allocation2 + $0x25] sm:$0x7]  ;;  %v4689_v8 = vpack.c.bf16 %v481_v35, %v480_v42  ;;  %v1812_v59 = vrot.slane %v1811_v51, 7  ;;  %v6632_v62 = vld [vmem:[#allocation2 + $0x18] sm:$0xff]  ;;  %v4708_v3 = vpack.c.bf16 %v1506_v44, %v1505_v47  ;;  %v1819_v4 = vld [vmem:[#allocation2 + $0x21] sm:$0x7]  ;;  %v2309_v47 = vcombine.high %v6723_v53, %v6723_v53 }
 0x405   :  { %v908_v33 = vsel %vm6608_vm13, %v899_v14, %v907_v40  ;;  %v2342_v63 = vcombine.high %v6632_v62, %v6632_v62  ;;  %3634 = vmatmul.mubr.bf16.vlgmr.msra.gmra.mrb[16].mxu1 %v6630_v60  ;;  %vm7334_vm13 = vcmask 392192   ;;  %v2338_v40 = vcombine.high %v6630_v60, %v6630_v60 }
 0x406   :  { %909 = vst [vmem:[#allocation2 + $0x25] sm:$0x7] %v908_v33  ;;  %v1813_v13 = vsel %vm855_vm2, %v1812_v59, %v1811_v51  ;;  %v989_v5 = vrot.slane %v4689_v8, %v5739_v29  ;;  %3642 = vmatpush1.bf16.xpose.msra.mxu1 %v5089_v55  ;;  %3673 = vmatprep.mubr.bf16.mxu1 %v2340_v52  ;;  %vm7595_vm2 = vsmask.f32 2304  ;;  %v5102_v55 = vld [vmem:[#allocation3 + $0x50] ss:$252 sps:$4 sm:$0xff]  }
 0x407   :  { %v1820_v18 = vsel %vm6624_vm14, %v1813_v13, %v1819_v4  ;;  %v2356_v6 = vrot.slane %v2342_v63, %v5739_v29  ;;  %v1920_v19 = vrot.slane %v4708_v3, %v5739_v29  ;;  %vm6659_vm12 = vmand %vm7335_vm9, %vm7595_vm2  ;;  %v1834_v9 = vpop.permute.xlu1 %1833  ;;  %3643 = vmatprep.subr.bf16.mxu1 %v5097_v58  ;;  %vm7598_vm14 = vsmask.f32 7946  ;;  %v5106_v8 = vld [vmem:[#allocation3 + $0x270] ss:$252 sps:$4 sm:$0xff]   ;;  %v5114_v52 = vld [vmem:[#allocation3 + $0x84] ss:$252 sps:$4 sm:$0xff]  }
 0x408   :  { %1821 = vst [vmem:[#allocation2 + $0x21] sm:$0x7] %v1820_v18  ;;  %v6664_v11 = vrot.slane %v989_v5, %v5739_v29  ;;  %v1032_v0 = vcombine.high %v989_v5, %v989_v5  ;;  %vm6674_vm11 = vmand %vm7599_vm10, %vm7598_vm14  ;;  %v1835_v23 = vrot.slane %v1834_v9, 7  ;;  %vm7604_vm14 = vsmask.f32 256 }
 0x409   :  { %v2358_v16 = vcombine.high %v2356_v6, %v2356_v6  ;;  %v1955_v27 = vcombine.high %v1920_v19, %v1920_v19  ;;  %vm6690_vm2 = vmor %vm6659_vm12, %vm919_vm1  ;;  %v6705_v30 = vrot.slane %v2356_v6, %v5739_v29  ;;  %v6708_v31 = vrot.slane %v1920_v19, %v5739_v29  ;;  %v5111_v3 = vld [vmem:[#allocation3 + $0x24c] ss:$252 sps:$4 sm:$0xff]   ;;  %v1862_v19 = vpop.permute.xlu0 %1861 }
 0x40a   :  { %997 = vrot.lane.b32.xlu0 %v6664_v11, %s5330_s21  ;;  %v6681_v22 = vrot.slane %v1032_v0, %v5739_v29  ;;  %vm6697_vm10 = vmand %vm7332_vm3, %vm7604_vm14  ;;  %v1013_v28 = vshrl.u32 %v6664_v11, 16  ;;  %v915_v50 = vsel %vm7334_vm13, %v913_v15, %v912_v12  ;;  %vm7609_vm12 = vsmask.f32 7938  ;;  %v5109_v15 = vld [vmem:[#allocation3 + $0x248] ss:$252 sps:$4 sm:$0xff]  }
 0x40b   :  { %v2386_v24 = vrot.slane %v2358_v16, %v5739_v29  ;;  %vm6718_vm1 = vmor %vm6674_vm11, %vm1839_vm5  ;;  %vm7610_vm14 = vcmask 1040800   ;;  %v6735_v45 = vrot.slane %v1955_v27, %v5739_v29  ;;  %vm7613_vm5 = vcmask 457728   ;;  %v1846_v35 = vpop.permute.xlu1 %1845 }
 0x40c   :  { %1040 = vrot.lane.b32.xlu1 %v6681_v22, %s5331_s3  ;;  %vm6729_vm3 = vmand %vm7610_vm14, %vm7609_vm12  ;;  %v1836_v46 = vsel %vm7613_vm5, %v1835_v23, %v1834_v9  ;;  %vm7614_vm11 = vsmask.f32 2304  ;;  %v1929_v42 = vshll.u32 %v6708_v31, 16  ;;  %vm7617_vm14 = vsmask.f32 7946 }
 0x40d   :  { %v923_v54 = vld [vmem:[#allocation2 + $0x27] sm:$0x7]  ;;  %v2390_v39 = vcombine.high %v2386_v24, %v2386_v24  ;;  %3873 = vmatprep.mubr.bf16.mxu0 %v2386_v24  ;;  %vm939_vm6 = vmor %vm7387_vm0, %vm6697_vm10  ;;  %v1964_v44 = vshll.u32 %v6735_v45, 16  ;;  %vm934_vm13 = vcmask 359424   ;;  %vm953_vm9 = vcmask 1040704  }
 0x40e   :  { %v924_v43 = vsel %vm6690_vm2, %v915_v50, %v923_v54  ;;  %1017 = vrot.lane.b32.xlu0 %v1013_v28, %s5332_s22  ;;  %3874 = vmatmul.mubr.bf16.vlgmr.msra.gmra.mrb[0].mxu0 %v6705_v30  ;;  %vm6744_vm2 = vmand %vm7333_vm8, %vm7614_vm11  ;;  %vm7619_vm11 = vsmask.f32 7938  ;;  %v1847_v14 = vrot.slane %v1846_v35, 7  ;;  %v1056_v10 = vshrl.u32 %v6681_v22, 16  ;;  %v5117_v23 = vld [vmem:[#allocation3 + $0x5c] ss:$252 sps:$4 sm:$0xff]   ;;  %v968_v50 = vpop.permute.xlu0 %967 }
 0x40f   :  { %925 = vst [vmem:[#allocation2 + $0x27] sm:$0x7] %v924_v43  ;;  %v1842_v32 = vld [vmem:[#allocation2 + $0x23] sm:$0x7]  ;;  %3644 = vmatpush1.bf16.xpose.msra.mxu1 %v5095_v25  ;;  %3882 = vmatpush1.bf16.xpose.msra.mxu0 %v5099_v21  ;;  %vm1851_vm12 = vmor %vm7401_vm4, %vm6729_vm3  ;;  %v6793_v33 = vrot.slane %v2309_v47, %v5739_v29  ;;  %v935_v63 = vsel %vm934_vm13, %v933_v49, %v932_v57  ;;  %vm7626_vm10 = vsmask.f32 256  ;;  %v948_v5 = vpop.permute.xlu1 %947 }
 0x410   :  { %v1843_v36 = vsel %vm6718_vm1, %v1836_v46, %v1842_v32  ;;  %3913 = vmatprep.mubr.bf16.mxu0 %v2390_v39  ;;  %1943 = vrot.lane.b32.xlu1 %v6708_v31, %s5332_s22  ;;  %vm7618_vm1 = vcmask 387074   ;;  %vm6764_vm8 = vmand %vm917_vm7, %vm7619_vm11  ;;  %vm956_vm3 = vcmask 288770   ;;  %v1848_v4 = vsel %vm898_vm15, %v1847_v14, %v1846_v35  ;;  %v5120_v25 = vld [vmem:[#allocation3 + $0x27c] ss:$252 sps:$4 sm:$0xff]   ;;  %v5126_v35 = vld [vmem:[#allocation3 + $0x8c] ss:$252 sps:$4 sm:$0xff]  }
 0x411   :  { %1844 = vst [vmem:[#allocation2 + $0x23] sm:$0x7] %v1843_v36  ;;  %3681 = vmatprep.subr.bf16.mxu1 %v5104_v37  ;;  %3883 = vmatprep.subr.bf16.mxu0 %v5108_v41  ;;  %vm1852_vm5 = vmand %vm7618_vm1, %vm7617_vm14  ;;  %v1075_v18 = vcombine.high %v6664_v11, %v6664_v11  ;;  %vm7629_vm15 = vsmask.f32 2304  ;;  %v1111_v9 = vcombine.high %v6681_v22, %v6681_v22  ;;  %vm7633_vm11 = vcmask 354306  }
 0x412   :  { %1931 = vrot.lane.b32.xlu0 %v1929_v42, %s5330_s21  ;;  %vm6775_vm14 = vmor %vm6744_vm2, %vm939_vm6  ;;  %v949_v0 = vrot.slane %v948_v5, 7  ;;  %v1990_v17 = vcombine.high %v6708_v31, %v6708_v31  ;;  %v1863_v27 = vrot.slane %v1862_v19, 7  ;;  %v2388_v22 = vcombine.high %v6705_v30, %v6705_v30  ;;  %v5115_v57 = vld [vmem:[#allocation3 + $0x58] ss:$252 sps:$4 sm:$0xff]   ;;  %v5145_v24 = vld [vmem:[#allocation3 + $0x28c] ss:$252 sps:$4 sm:$0xff]  }
 0x413   :  { %vm6788_vm7 = vmor %vm1852_vm5, %vm1851_vm12  ;;  %vm7632_vm5 = vsmask.f32 7946  ;;  %v1092_v16 = vshrl.u32 %v1075_v18, 16  ;;  %v2018_v41 = vcombine.high %v6735_v45, %v6735_v45  ;;  %v1874_v7 = vpop.permute.xlu1 %1873  ;;  %v969_v46 = vrot.slane %v968_v50, 7  ;;  %v5123_v36 = vld [vmem:[#allocation3 + $0x254] ss:$252 sps:$4 sm:$0xff]  }
 0x414   :  { %1966 = vrot.lane.b32.xlu1 %v1964_v44, %s5331_s3  ;;  %vm6798_vm6 = vmand %vm953_vm9, %vm7626_vm10  ;;  %vm7337_vm10 = vcmask 1040672   ;;  %v1992_v31 = vshll.u32 %v1990_v17, 16  ;;  %v1128_v32 = vshrl.u32 %v1111_v9, 16  ;;  %v2341_v42 = vcombine.high %v6793_v33, %v6793_v33  ;;  %v5135_v11 = vld [vmem:[#allocation3 + $0x25c] ss:$252 sps:$4 sm:$0xff]  }
 0x415   :  { %vm1867_vm2 = vmor %vm7401_vm4, %vm6764_vm8  ;;  %vm7336_vm8 = vcmask 256002   ;;  %v2020_v44 = vshll.u32 %v2018_v41, 16 }
 0x416   :  { %v943_v60 = vld [vmem:[#allocation2 + $0x29] sm:$0x7]  ;;  %3674 = vmatmul.mubr.bf16.vlgmr.msra.gmra.mrb[16].mxu1 %v2338_v40  ;;  %1060 = vrot.lane.b32.xlu0 %v1056_v10, %s5333_s23  ;;  %vm955_vm12 = vmor %vm7387_vm0, %vm6798_vm6  ;;  %vm7640_vm6 = vsmask.f32 256 }
 0x417   :  { %v944_v13 = vsel %vm6775_vm14, %v935_v63, %v943_v60  ;;  %3682 = vmatpush1.bf16.xpose.msra.mxu1 %v5102_v55  ;;  %3713 = vmatprep.mubr.bf16.mxu1 %v6793_v33  ;;  %vm6821_vm1 = vmand %vm956_vm3, %vm7629_vm15  ;;  %v5121_v10 = vld [vmem:[#allocation3 + $0x250] ss:$252 sps:$4 sm:$0xff]   ;;  %v1890_v33 = vpop.permute.xlu1 %1889  ;;  %v2349_v63 = vrot.slane %v6632_v62, %v5739_v29 }
 0x418   :  { %945 = vst [vmem:[#allocation2 + $0x29] sm:$0x7] %v944_v13  ;;  %v1854_v1 = vld [vmem:[#allocation2 + $0x25] sm:$0x7]  ;;  %3884 = vmatpush1.bf16.xpose.msra.mxu0 %v5106_v8  ;;  %1978 = vrot.lane.b32.xlu1 %v6735_v45, %s5333_s23  ;;  %vm6830_vm14 = vmand %vm7633_vm11, %vm7632_vm5  ;;  %vm7645_vm11 = vcmask 1040736   ;;  %v2323_v45 = vrot.slane %v6723_v53, %v5739_v29  ;;  %v1875_v53 = vrot.slane %v1874_v7, 7 }
 0x419   :  { %v1855_v6 = vsel %vm6788_vm7, %v1848_v4, %v1854_v1  ;;  %3683 = vmatprep.subr.bf16.mxu1 %v5111_v3  ;;  %3921 = vmatprep.subr.bf16.mxu0 %v5114_v52  ;;  %vm950_vm7 = vcmask 326656   ;;  %vm6846_vm15 = vmor %vm6821_vm1, %vm955_vm12  ;;  %vm7644_vm1 = vsmask.f32 7938  ;;  %v5129_v3 = vld [vmem:[#allocation3 + $0x64] ss:$252 sps:$4 sm:$0xff]   ;;  %v1891_v60 = vrot.slane %v1890_v33, 7 }
 0x41a   :  { %1856 = vst [vmem:[#allocation2 + $0x25] sm:$0x7] %v1855_v6  ;;  %1076 = vrot.lane.b32.xlu0 %v1075_v18, %s5334_s24  ;;  %vm6857_vm5 = vmor %vm6830_vm14, %vm1867_vm2  ;;  %v951_v26 = vsel %vm950_vm7, %v949_v0, %v948_v5  ;;  %vm7643_vm2 = vcmask 392192   ;;  %v1876_v55 = vsel %vm934_vm13, %v1875_v53, %v1874_v7  ;;  %v5124_v13 = vld [vmem:[#allocation3 + $0x88] ss:$252 sps:$4 sm:$0xff]   ;;  %v2357_v18 = vcombine.high %v2349_v63, %v2349_v63 }
 0x41b   :  { %vm6863_vm12 = vmand %vm7337_vm10, %vm7640_vm6  ;;  %v1864_v37 = vsel %vm7643_vm2, %v1863_v27, %v1862_v19  ;;  %vm7648_vm6 = vsmask.f32 2304  ;;  %v5132_v1 = vld [vmem:[#allocation3 + $0x284] ss:$252 sps:$4 sm:$0xff]   ;;  %v1892_v6 = vsel %vm950_vm7, %v1891_v60, %v1890_v33  ;;  %v5133_v27 = vld [vmem:[#allocation3 + $0x258] ss:$252 sps:$4 sm:$0xff]  }
 0x41c   :  { %1112 = vrot.lane.b32.xlu1 %v1111_v9, %s5335_s25  ;;  %vm6873_vm14 = vmand %vm7645_vm11, %vm7644_vm1  ;;  %vm7341_vm1 = vcmask 293888   ;;  %vm7651_vm11 = vsmask.f32 7946  ;;  %v5127_v19 = vld [vmem:[#allocation3 + $0x60] ss:$252 sps:$4 sm:$0xff]   ;;  %v2339_v9 = vcombine.high %v2323_v45, %v2323_v45  ;;  %v2379_v0 = vrot.slane %v2357_v18, %v5739_v29 }
 0x41d   :  { %vm6888_vm2 = vmand %vm7336_vm8, %vm7648_vm6  ;;  %vm7652_vm6 = vcmask 321538   ;;  %v971_v47 = vsel %vm7341_vm1, %v969_v46, %v968_v50  ;;  %v5151_v50 = vld [vmem:[#allocation3 + $0x9c] ss:$252 sps:$4 sm:$0xff]   ;;  %v5157_v46 = vld [vmem:[#allocation3 + $0xa4] ss:$252 sps:$4 sm:$0xff]  }
 0x41e   :  { %1096 = vrot.lane.b32.xlu0 %v1092_v16, %s5336_s26  ;;  %vm1880_vm8 = vmand %vm7652_vm6, %vm7651_vm11  ;;  %v5130_v16 = vld [vmem:[#allocation3 + $0x280] ss:$252 sps:$4 sm:$0xff]   ;;  %vm7657_vm7 = vsmask.f32 256  ;;  %vm7658_vm6 = vsmask.f32 2304 }
 0x41f   :  { %v959_v28 = vld [vmem:[#allocation2 + $0x2b] sm:$0x7]  ;;  %3684 = vmatpush1.bf16.xpose.msra.mxu1 %v5109_v15  ;;  %3914 = vmatmul.mubr.bf16.vlgmr.msra.gmra.mrb[0].mxu0 %v2388_v22  ;;  %vm7670_vm1 = vsmask.f32 7938 }
 0x420   :  { %v960_v30 = vsel %vm6846_vm15, %v951_v26, %v959_v28  ;;  %2006 = vrot.lane.b32.xlu1 %v1990_v17, %s5336_s26  ;;  %3922 = vmatpush1.bf16.xpose.msra.mxu0 %v5112_v20  ;;  %vm975_vm15 = vmor %vm7387_vm0, %vm6863_vm12  ;;  %vm7653_vm12 = vsmask.f32 7938  ;;  %v5138_v17 = vld [vmem:[#allocation3 + $0x94] ss:$252 sps:$4 sm:$0xff]   ;;  %v5142_v22 = vld [vmem:[#allocation3 + $0x6c] ss:$252 sps:$4 sm:$0xff]   ;;  %v2365_v28 = vrot.slane %v2349_v63, %v5739_v29 }
 0x421   :  { %v1870_v54 = vld [vmem:[#allocation2 + $0x27] sm:$0x7]  ;;  %961 = vst [vmem:[#allocation2 + $0x2b] sm:$0x7] %v960_v30  ;;  %3721 = vmatprep.subr.bf16.mxu1 %v5117_v23  ;;  %3923 = vmatprep.subr.bf16.mxu0 %v5120_v25  ;;  %vm978_vm10 = vmor %vm6888_vm2, %vm975_vm15  ;;  %v5136_v23 = vld [vmem:[#allocation3 + $0x90] ss:$252 sps:$4 sm:$0xff]  }
 0x422   :  { %v1871_v39 = vsel %vm6857_vm5, %v1864_v37, %v1870_v54  ;;  %1994 = vrot.lane.b32.xlu0 %v1992_v31, %s5334_s24  ;;  %vm1879_vm5 = vmor %vm7401_vm4, %vm6873_vm14  ;;  %v5140_v26 = vld [vmem:[#allocation3 + $0x68] ss:$252 sps:$4 sm:$0xff]   ;;  %v2389_v31 = vcombine.high %v2379_v0, %v2379_v0  ;;  %v5146_v54 = vld [vmem:[#allocation3 + $0x260] ss:$252 sps:$4 sm:$0xff]   ;;  %v2387_v7 = vcombine.high %v2365_v28, %v2365_v28  ;;  %vm7340_vm2 = vcmask 223234  }
 0x423   :  { %1872 = vst [vmem:[#allocation2 + $0x27] sm:$0x7] %v1871_v39  ;;  %vm1881_vm11 = vmor %vm1880_vm8, %vm1879_vm5  ;;  %v5148_v30 = vld [vmem:[#allocation3 + $0x264] ss:$252 sps:$4 sm:$0xff]  }
 0x424   :  { %2034 = vrot.lane.b32.xlu1 %v2018_v41, %s5337_s27  ;;  %vm6918_vm15 = vmand %vm953_vm9, %vm7653_vm12  ;;  %vm7656_vm9 = vsmask.f32 7946  ;;  %v5143_v37 = vld [vmem:[#allocation3 + $0x288] ss:$252 sps:$4 sm:$0xff]   ;;  %v5154_v41 = vld [vmem:[#allocation3 + $0x294] ss:$252 sps:$4 sm:$0xff]  }
 0x425   :  { %vm1895_vm13 = vmor %vm7401_vm4, %vm6918_vm15  ;;  %vm7338_vm12 = vcmask 261120   ;;  %vm7659_vm15 = vsmask.f32 7938 }
 0x426   :  { %3714 = vmatmul.mubr.bf16.vlgmr.msra.gmra.mrb[16].mxu1 %v2323_v45  ;;  %1132 = vrot.lane.b32.xlu0 %v1128_v32, %s5337_s27  ;;  %v5155_v45 = vld [vmem:[#allocation3 + $0xa0] ss:$252 sps:$4 sm:$0xff]  }
 0x427   :  { %3722 = vmatpush1.bf16.xpose.msra.mxu1 %v5115_v57  ;;  %3753 = vmatprep.mubr.bf16.mxu1 %v2341_v42  ;;  %v5152_v57 = vld [vmem:[#allocation3 + $0x290] ss:$252 sps:$4 sm:$0xff]  }
 0x428   :  { %v979_v49 = vld [vmem:[#allocation2 + $0x2d] sm:$0x7]  ;;  %3924 = vmatpush1.bf16.xpose.msra.mxu0 %v5118_v61  ;;  %3723 = vmatprep.subr.bf16.mxu1 %v5123_v36  ;;  %v5160_v61 = vld [vmem:[#allocation3 + $0x29c] ss:$252 sps:$4 sm:$0xff]  }
 0x429   :  { %v980_v51 = vsel %vm978_vm10, %v971_v47, %v979_v49  ;;  %3961 = vmatprep.subr.bf16.mxu0 %v5126_v35  ;;  %vm1896_vm10 = vmand %vm956_vm3, %vm7656_vm9  ;;  %v5158_v36 = vld [vmem:[#allocation3 + $0x298] ss:$252 sps:$4 sm:$0xff]   ;;  %v5163_v42 = vld [vmem:[#allocation3 + $0xac] ss:$252 sps:$4 sm:$0xff]   ;;  %vm1003_vm3 = vcmask 1040640  }
 0x42a   :  { %981 = vst [vmem:[#allocation2 + $0x2d] sm:$0x7] %v980_v51  ;;  %v1882_v58 = vld [vmem:[#allocation2 + $0x29] sm:$0x7]  ;;  %2022 = vrot.lane.b32.xlu0 %v2020_v44, %s5335_s25  ;;  %v2048_v40 = vld [vmem:[#allocation2 + $0x20] sm:$0xff]  ;;  %vm1897_vm8 = vmor %vm1896_vm10, %vm1895_vm13  ;;  %vm7660_vm13 = vcmask 1040672  }
 0x42b   :  { %v1883_v8 = vsel %vm1881_vm11, %v1876_v55, %v1882_v58  ;;  %v2398_v59 = vrot.slane %v2048_v40, %v5739_v29  ;;  %v2391_v15 = vcombine.high %v2048_v40, %v2048_v40  ;;  %vm1004_vm14 = vmand %vm1003_vm3, %vm7657_vm7  ;;  %vm7339_vm10 = vcmask 1040608   ;;  %v1902_v58 = vpop.permute.xlu1 %1901 }
 0x42c   :  { %1884 = vst [vmem:[#allocation2 + $0x29] sm:$0x7] %v1883_v8  ;;  %vm1005_vm5 = vmor %vm7387_vm0, %vm1004_vm14  ;;  %v1903_v40 = vrot.slane %v1902_v58, 7 }
 0x42d   :  { %v2406_v52 = vcombine.high %v2398_v59, %v2398_v59  ;;  %v2414_v4 = vrot.slane %v2398_v59, %v5739_v29  ;;  %v2405_v20 = vrot.slane %v2391_v15, %v5739_v29  ;;  %vm1007_vm11 = vmand %vm7340_vm2, %vm7658_vm6 }
 0x42e   :  { %vm6948_vm9 = vmand %vm7660_vm13, %vm7659_vm15  ;;  %vm7345_vm15 = vcmask 190466   ;;  %vm7665_vm13 = vsmask.f32 7946 }
 0x42f   :  { %3724 = vmatpush1.bf16.xpose.msra.mxu1 %v5121_v10  ;;  %v2428_v12 = vrot.slane %v2406_v52, %v5739_v29  ;;  %v2407_v2 = vcombine.high %v2405_v20, %v2405_v20  ;;  %v2436_v25 = vcombine.high %v2414_v4, %v2414_v4  ;;  %v2421_v39 = vrot.slane %v2405_v20, %v5739_v29  ;;  %vm6955_vm14 = vmand %vm7339_vm10, %vm7657_vm7 }
 0x430   :  { %3761 = vmatprep.subr.bf16.mxu1 %v5129_v3  ;;  %vm1907_vm6 = vmor %vm7401_vm4, %vm6948_vm9  ;;  %vm7343_vm9 = vcmask 228352   ;;  %vm7673_vm4 = vcmask 293888  }
 0x431   :  { %3953 = vmatprep.mubr.bf16.mxu0 %v2428_v12  ;;  %v2438_v5 = vcombine.high %v2428_v12, %v2428_v12  ;;  %v2435_v21 = vrot.slane %v2407_v2, %v5739_v29  ;;  %v2437_v32 = vcombine.high %v2421_v39, %v2421_v39  ;;  %v1009_v44 = vld [vmem:[#allocation2 + $0x2f] sm:$0x7]  ;;  %vm1025_vm7 = vmor %vm7387_vm0, %vm6955_vm14  ;;  %v1904_v33 = vsel %vm7673_vm4, %v1903_v40, %v1902_v58 }
 0x432   :  { %3954 = vmatmul.mubr.bf16.vlgmr.msra.gmra.mrb[0].mxu0 %v2414_v4 }
 0x433   :  { %v1898_v62 = vld [vmem:[#allocation2 + $0x2b] sm:$0x7]  ;;  %3962 = vmatpush1.bf16.xpose.msra.mxu0 %v5124_v13  ;;  %3993 = vmatprep.mubr.bf16.mxu0 %v2438_v5  ;;  %v2439_v43 = vcombine.high %v2435_v21, %v2435_v21 }
 0x434   :  { %v1899_v34 = vsel %vm1897_vm8, %v1892_v6, %v1898_v62  ;;  %3963 = vmatprep.subr.bf16.mxu0 %v5132_v1  ;;  %vm1008_vm8 = vmor %vm1007_vm11, %vm1005_vm5  ;;  %vm7666_vm5 = vcmask 256002  }
 0x435   :  { %1900 = vst [vmem:[#allocation2 + $0x2b] sm:$0x7] %v1899_v34  ;;  %vm1908_vm11 = vmand %vm7666_vm5, %vm7665_vm13 }
 0x436   :  { %3754 = vmatmul.mubr.bf16.vlgmr.msra.gmra.mrb[16].mxu1 %v2339_v9  ;;  %vm6971_vm2 = vmor %vm1908_vm11, %vm1907_vm6  ;;  %vm7679_vm6 = vcmask 223234  }
 0x437   :  { %3762 = vmatpush1.bf16.xpose.msra.mxu1 %v5127_v19  ;;  %3793 = vmatprep.mubr.bf16.mxu1 %v2379_v0  ;;  %vm6977_vm13 = vmand %vm1003_vm3, %vm7670_vm1  ;;  %vm7348_vm1 = vcmask 157698   ;;  %vm7677_vm3 = vnez %v7363_v48 }
 0x438   :  { %3763 = vmatprep.subr.bf16.mxu1 %v5135_v11  ;;  %vm1937_vm4 = vmor %vm7677_vm3, %vm6977_vm13  ;;  %vm7347_vm13 = vcmask 1040544   ;;  %vm7687_vm3 = vsmask.f32 256 }
 0x43b   :  { %3964 = vmatpush1.bf16.xpose.msra.mxu0 %v5130_v16 }
 0x43c   :  { %4001 = vmatprep.subr.bf16.mxu0 %v5138_v17 }
 0x43f   :  { %3764 = vmatpush1.bf16.xpose.msra.mxu1 %v5133_v27  ;;  %v5199_v27 = vld [vmem:[#allocation3 + $0xd8] ss:$252 sps:$4 sm:$0xff]  }
 0x440   :  { %3801 = vmatprep.subr.bf16.mxu1 %v5142_v22 }
 0x442   :  { %3994 = vmatmul.mubr.bf16.vlgmr.msra.gmra.mrb[0].mxu0 %v2436_v25 }
 0x443   :  { %4002 = vmatpush1.bf16.xpose.msra.mxu0 %v5136_v23  ;;  %4033 = vmatprep.mubr.bf16.mxu0 %v2435_v21 }
 0x444   :  { %4003 = vmatprep.subr.bf16.mxu0 %v5145_v24 }
 0x446   :  { %3794 = vmatmul.mubr.bf16.vlgmr.msra.gmra.mrb[16].mxu1 %v2365_v28 }
 0x447   :  { %3802 = vmatpush1.bf16.xpose.msra.mxu1 %v5140_v26  ;;  %3833 = vmatprep.mubr.bf16.mxu1 %v2389_v31 }
 0x448   :  { %3803 = vmatprep.subr.bf16.mxu1 %v5148_v30 }
 0x44b   :  { %4004 = vmatpush1.bf16.xpose.msra.mxu0 %v5143_v37 }
 0x44c   :  { %4041 = vmatprep.subr.bf16.mxu0 %v5151_v50 }
 0x44f   :  { %3804 = vmatpush1.bf16.xpose.msra.mxu1 %v5146_v54 }
 0x452   :  { %4034 = vmatmul.mubr.bf16.vlgmr.msra.gmra.mrb[0].mxu0 %v2421_v39 }
 0x453   :  { %4042 = vmatpush1.bf16.xpose.msra.mxu0 %v5149_v38  ;;  %4073 = vmatprep.mubr.bf16.mxu0 %v2439_v43 }
 0x454   :  { %4043 = vmatprep.subr.bf16.mxu0 %v5154_v41 }
 0x456   :  { %3834 = vmatmul.mubr.bf16.vlgmr.msra.gmra.mrb[16].mxu1 %v2387_v7 }
 0x45b   :  { %4044 = vmatpush1.bf16.xpose.msra.mxu0 %v5152_v57 }
 0x45c   :  { %4081 = vmatprep.subr.bf16.mxu0 %v5157_v46 }
 0x462   :  { %4074 = vmatmul.mubr.bf16.vlgmr.msra.gmra.mrb[0].mxu0 %v2437_v32 }
 0x463   :  { %4082 = vmatpush1.bf16.xpose.msra.mxu0 %v5155_v45  ;;  %v5161_v45 = vld [vmem:[#allocation3 + $0xa8] ss:$252 sps:$4 sm:$0xff]  }
 0x464   :  { %4083 = vmatprep.subr.bf16.mxu0 %v5160_v61 }
 0x46b   :  { %4084 = vmatpush1.bf16.xpose.msra.mxu0 %v5158_v36  ;;  %v5166_v36 = vld [vmem:[#allocation3 + $0x2a4] ss:$252 sps:$4 sm:$0xff]  }
 0x46c   :  { %4121 = vmatprep.subr.bf16.mxu0 %v5163_v42 }
 0x47c   :  { %v998_v53 = vpop.permute.xlu0 %997 }
 0x47d   :  { %v999_v47 = vrot.slane %v998_v53, 7 }
 0x47e   :  { %v1041_v4 = vpop.permute.xlu1 %1040 }
 0x47f   :  { %v1001_v49 = vsel %vm7338_vm12, %v999_v47, %v998_v53  ;;  %vm7667_vm12 = vsmask.f32 2304  ;;  %v1042_v5 = vrot.slane %v1041_v4, 7 }
 0x480   :  { %v1010_v55 = vsel %vm1008_vm8, %v1001_v49, %v1009_v44  ;;  %v1018_v14 = vpop.permute.xlu0 %1017  ;;  %vm1027_vm10 = vmand %vm7345_vm15, %vm7667_vm12  ;;  %vm7344_vm8 = vcmask 1040576   ;;  %vm7674_vm12 = vsmask.f32 256  ;;  %vm7684_vm15 = vcmask 1040608  }
 0x481   :  { %1011 = vst [vmem:[#allocation2 + $0x2f] sm:$0x7] %v1010_v55  ;;  %v1019_v10 = vrot.slane %v1018_v14, 7  ;;  %vm1028_vm5 = vmor %vm1027_vm10, %vm1025_vm7  ;;  %vm7678_vm10 = vsmask.f32 7946 }
 0x482   :  { %vm6985_vm14 = vmand %vm7344_vm8, %vm7674_vm12  ;;  %vm7683_vm8 = vsmask.f32 7938  ;;  %v1944_v17 = vpop.permute.xlu1 %1943 }
 0x483   :  { %v1021_v52 = vsel %vm7343_vm9, %v1019_v10, %v1018_v14  ;;  %vm1938_vm11 = vmand %vm7679_vm6, %vm7678_vm10  ;;  %vm7346_vm9 = vcmask 195584   ;;  %v1945_v22 = vrot.slane %v1944_v17, 7  ;;  %v5164_v10 = vld [vmem:[#allocation3 + $0x2a0] ss:$252 sps:$4 sm:$0xff]  }
 0x484   :  { %v1932_v1 = vpop.permute.xlu0 %1931  ;;  %vm1048_vm7 = vmor %vm7387_vm0, %vm6985_vm14  ;;  %v1044_v34 = vsel %vm7346_vm9, %v1042_v5, %v1041_v4  ;;  %v5191_v5 = vld [vmem:[#allocation3 + $0x2c4] ss:$252 sps:$4 sm:$0xff]  }
 0x485   :  { %vm7003_vm12 = vmor %vm1938_vm11, %vm1937_vm4  ;;  %v1933_v6 = vrot.slane %v1932_v1, 7  ;;  %vm7690_vm4 = vnez %v7363_v48  ;;  %v5183_v48 = vld [vmem:[#allocation3 + $0x2b8] ss:$252 sps:$4 sm:$0xff]  }
 0x486   :  { %vm7009_vm10 = vmand %vm7684_vm15, %vm7683_vm8  ;;  %vm1069_vm15 = vcmask 124930   ;;  %vm7692_vm8 = vsmask.f32 7946  ;;  %v1967_v38 = vpop.permute.xlu1 %1966 }
 0x487   :  { %vm7015_vm14 = vmand %vm7347_vm13, %vm7687_vm3  ;;  %vm7700_vm13 = vcmask 1040576   ;;  %v1968_v43 = vrot.slane %v1967_v38, 7 }
 0x488   :  { %v1910_v3 = vld [vmem:[#allocation2 + $0x2d] sm:$0x7]  ;;  %v1029_v63 = vld [vmem:[#allocation2 + $0x31] sm:$0x7]  ;;  %vm1949_vm11 = vmor %vm7690_vm4, %vm7009_vm10  ;;  %v1061_v20 = vpop.permute.xlu0 %1060  ;;  %vm7694_vm10 = vsmask.f32 2304 }
 0x489   :  { %v1911_v12 = vsel %vm6971_vm2, %v1904_v33, %v1910_v3  ;;  %v1030_v13 = vsel %vm1028_vm5, %v1021_v52, %v1029_v63  ;;  %vm7680_vm2 = vsmask.f32 2304  ;;  %vm1068_vm3 = vmor %vm7387_vm0, %vm7015_vm14  ;;  %v1062_v2 = vrot.slane %v1061_v20, 7  ;;  %v5169_v52 = vld [vmem:[#allocation3 + $0xb4] ss:$252 sps:$4 sm:$0xff]  }
 0x48a   :  { %1912 = vst [vmem:[#allocation2 + $0x2d] sm:$0x7] %v1911_v12  ;;  %1031 = vst [vmem:[#allocation2 + $0x31] sm:$0x7] %v1030_v13  ;;  %vm7703_vm14 = vsmask.f32 256  ;;  %v1979_v14 = vpop.permute.xlu1 %1978 }
 0x48b   :  { %vm1050_vm5 = vmand %vm7348_vm1, %vm7680_vm2  ;;  %vm7691_vm2 = vcmask 261120   ;;  %v1980_v33 = vrot.slane %v1979_v14, 7 }
 0x48c   :  { %vm1051_vm6 = vmor %vm1050_vm5, %vm1048_vm7  ;;  %v1934_v11 = vsel %vm7691_vm2, %v1933_v6, %v1932_v1  ;;  %vm7693_vm7 = vcmask 190466   ;;  %v1077_v39 = vpop.permute.xlu0 %1076 }
 0x48d   :  { %vm1950_vm5 = vmand %vm7693_vm7, %vm7692_vm8  ;;  %vm7699_vm7 = vsmask.f32 7938  ;;  %v1078_v57 = vrot.slane %v1077_v39, 7 }
 0x48e   :  { %vm1070_vm2 = vmand %vm1069_vm15, %vm7694_vm10  ;;  %vm7707_vm10 = vsmask.f32 7946  ;;  %v1113_v19 = vpop.permute.xlu1 %1112 }
 0x48f   :  { %vm7035_vm9 = vmor %vm1950_vm5, %vm1949_vm11  ;;  %vm7706_vm5 = vcmask 228352  }
 0x490   :  { %vm7039_vm8 = vmor %vm1070_vm2, %vm1068_vm3  ;;  %v1946_v21 = vsel %vm7706_vm5, %v1945_v22, %v1944_v17  ;;  %vm1085_vm3 = vcmask 92162   ;;  %vm7708_vm2 = vcmask 157698   ;;  %vm7712_vm5 = vsmask.f32 7938  ;;  %v1097_v40 = vpop.permute.xlu0 %1096 }
 0x491   :  { %v1052_v9 = vld [vmem:[#allocation2 + $0x33] sm:$0x7]  ;;  %v1940_v0 = vld [vmem:[#allocation2 + $0x2f] sm:$0x7]  ;;  %vm7045_vm1 = vmand %vm7700_vm13, %vm7699_vm7  ;;  %v1098_v3 = vrot.slane %v1097_v40, 7 }
 0x492   :  { %v1053_v15 = vsel %vm1051_vm6, %v1044_v34, %v1052_v9  ;;  %v1941_v16 = vsel %vm7003_vm12, %v1934_v11, %v1940_v0  ;;  %vm1082_vm6 = vcmask 1040512   ;;  %vm7349_vm12 = vcmask 162816   ;;  %vm1972_vm13 = vmor %vm7690_vm4, %vm7045_vm1  ;;  %v5167_v9 = vld [vmem:[#allocation3 + $0xb0] ss:$252 sps:$4 sm:$0xff]  }
 0x493   :  { %1054 = vst [vmem:[#allocation2 + $0x33] sm:$0x7] %v1053_v15  ;;  %1942 = vst [vmem:[#allocation2 + $0x2f] sm:$0x7] %v1941_v16  ;;  %v1064_v28 = vsel %vm7349_vm12, %v1062_v2, %v1061_v20  ;;  %vm7709_vm1 = vsmask.f32 2304 }
 0x494   :  { %vm7051_vm11 = vmand %vm1082_vm6, %vm7703_vm14  ;;  %vm7351_vm12 = vcmask 1040480   ;;  %v1995_v34 = vpop.permute.xlu0 %1994  ;;  %v5173_v0 = vld [vmem:[#allocation3 + $0x2ac] ss:$252 sps:$4 sm:$0xff]   ;;  %v1114_v15 = vrot.slane %v1113_v19, 7  ;;  %v5201_v20 = vld [vmem:[#allocation3 + $0xdc] ss:$252 sps:$4 sm:$0xff]  }
 0x495   :  { %vm1973_vm7 = vmand %vm7708_vm2, %vm7707_vm10  ;;  %vm7713_vm10 = vcmask 1040544   ;;  %v1996_v16 = vrot.slane %v1995_v34, 7 }
 0x496   :  { %vm1086_vm14 = vmand %vm1085_vm3, %vm7709_vm1  ;;  %vm7719_vm1 = vsmask.f32 256 }
 0x497   :  { %vm7081_vm2 = vmand %vm7713_vm10, %vm7712_vm5  ;;  %vm7722_vm10 = vsmask.f32 7946 }
 0x498   :  { %vm7097_vm5 = vmand %vm7351_vm12, %vm7719_vm1  ;;  %vm7723_vm1 = vsmask.f32 2304  ;;  %vm1118_vm12 = vcmask 1040448  }
 0x49a   :  { %v1952_v26 = vld [vmem:[#allocation2 + $0x31] sm:$0x7]  ;;  %v1072_v30 = vld [vmem:[#allocation2 + $0x35] sm:$0x7]  ;;  %v2049_v31 = vld [vmem:[#allocation2 + $0x28] sm:$0xff] }
 0x49b   :  { %v1953_v37 = vsel %vm7035_vm9, %v1946_v21, %v1952_v26  ;;  %v1073_v50 = vsel %vm7039_vm8, %v1064_v28, %v1072_v30  ;;  %v2447_v54 = vrot.slane %v2049_v31, %v5739_v29  ;;  %vm1084_vm9 = vmor %vm7387_vm0, %vm7051_vm11  ;;  %vm7350_vm11 = vcmask 130048   ;;  %v2007_v28 = vpop.permute.xlu1 %2006  ;;  %v1133_v30 = vpop.permute.xlu0 %1132 }
 0x49c   :  { %1954 = vst [vmem:[#allocation2 + $0x31] sm:$0x7] %v1953_v37  ;;  %1074 = vst [vmem:[#allocation2 + $0x35] sm:$0x7] %v1073_v50  ;;  %v1080_v49 = vsel %vm7350_vm11, %v1078_v57, %v1077_v39  ;;  %v2440_v8 = vcombine.high %v2049_v31, %v2049_v31  ;;  %v5171_v31 = vld [vmem:[#allocation3 + $0x2a8] ss:$252 sps:$4 sm:$0xff]  }
 0x49d   :  { %v2455_v41 = vcombine.high %v2447_v54, %v2447_v54  ;;  %vm7074_vm8 = vmor %vm1973_vm7, %vm1972_vm13  ;;  %v7086_v61 = vrot.slane %v2447_v54, %v5739_v29  ;;  %vm7718_vm7 = vcmask 195584   ;;  %v5176_v37 = vld [vmem:[#allocation3 + $0xbc] ss:$252 sps:$4 sm:$0xff]   ;;  %v2008_v50 = vrot.slane %v2007_v28, 7 }
 0x49e   :  { %vm7088_vm13 = vmor %vm1086_vm14, %vm1084_vm9  ;;  %v1969_v53 = vsel %vm7718_vm7, %v1968_v43, %v1967_v38  ;;  %vm1105_vm14 = vcmask 59394   ;;  %v7128_v60 = vrot.slane %v2440_v8, %v5739_v29  ;;  %v1134_v54 = vrot.slane %v1133_v30, 7 }
 0x49f   :  { %v2477_v46 = vrot.slane %v2455_v41, %v5739_v29  ;;  %vm1984_vm9 = vmor %vm7690_vm4, %vm7081_vm2  ;;  %v2485_v11 = vcombine.high %v7086_v61, %v7086_v61  ;;  %v2023_v56 = vpop.permute.xlu0 %2022 }
 0x4a0   :  { %vm1985_vm7 = vmand %vm1069_vm15, %vm7722_vm10  ;;  %vm1099_vm15 = vcmask 97280   ;;  %vm7726_vm10 = vsmask.f32 7938  ;;  %v2456_v62 = vcombine.high %v7128_v60, %v7128_v60  ;;  %v2470_v32 = vrot.slane %v7128_v60, %v5739_v29 }
 0x4a1   :  { %4113 = vmatprep.mubr.bf16.mxu0 %v2477_v46  ;;  %v2487_v35 = vcombine.high %v2477_v46, %v2477_v46  ;;  %vm1104_vm2 = vmor %vm7387_vm0, %vm7097_vm5  ;;  %v1100_v4 = vsel %vm1099_vm15, %v1098_v3, %v1097_v40  ;;  %v2009_v38 = vsel %vm1099_vm15, %v2008_v50, %v2007_v28  ;;  %vm7750_vm15 = vcmask 26626  }
 0x4a2   :  { %4114 = vmatmul.mubr.bf16.vlgmr.msra.gmra.mrb[0].mxu0 %v7086_v61  ;;  %vm7123_vm11 = vmand %vm1082_vm6, %vm7726_vm10  ;;  %v2484_v17 = vrot.slane %v2456_v62, %v5739_v29  ;;  %v5179_v61 = vld [vmem:[#allocation3 + $0x2b4] ss:$252 sps:$4 sm:$0xff]   ;;  %v2024_v42 = vrot.slane %v2023_v56, 7  ;;  %v2486_v3 = vcombine.high %v2470_v32, %v2470_v32  ;;  %v5189_v62 = vld [vmem:[#allocation3 + $0x2c0] ss:$252 sps:$4 sm:$0xff]  }
 0x4a3   :  { %v1975_v47 = vld [vmem:[#allocation2 + $0x33] sm:$0x7]  ;;  %v1088_v44 = vld [vmem:[#allocation2 + $0x37] sm:$0x7]  ;;  %4122 = vmatpush1.bf16.xpose.msra.mxu0 %v5161_v45  ;;  %4153 = vmatprep.mubr.bf16.mxu0 %v2487_v35  ;;  %vm2000_vm6 = vmor %vm7690_vm4, %vm7123_vm11  ;;  %vm7743_vm11 = vcmask 130048   ;;  %v5338_v35 = vmov 0.0  }
 0x4a4   :  { %v1976_v55 = vsel %vm7074_vm8, %v1969_v53, %v1975_v47  ;;  %v1089_v58 = vsel %vm7088_vm13, %v1080_v49, %v1088_v44  ;;  %4123 = vmatprep.subr.bf16.mxu0 %v5166_v36  ;;  %vm1106_vm8 = vmand %vm1105_vm14, %vm7723_vm1  ;;  %v1997_v23 = vsel %vm7743_vm11, %v1996_v16, %v1995_v34  ;;  %v5174_v45 = vld [vmem:[#allocation3 + $0xb8] ss:$252 sps:$4 sm:$0xff]   ;;  %v2488_v36 = vcombine.high %v2484_v17, %v2484_v17  ;;  %v5177_v44 = vld [vmem:[#allocation3 + $0x2b0] ss:$252 sps:$4 sm:$0xff]  }
 0x4a5   :  { %1977 = vst [vmem:[#allocation2 + $0x33] sm:$0x7] %v1976_v55  ;;  %1090 = vst [vmem:[#allocation2 + $0x37] sm:$0x7] %v1089_v58  ;;  %4854 = vmatprep.subr.bf16.mxu1 %v5338_v35  ;;  %v5182_v55 = vld [vmem:[#allocation3 + $0xc4] ss:$252 sps:$4 sm:$0xff]   ;;  %v2035_v58 = vpop.permute.xlu1 %2034 }
 0x4a6   :  { %vm7117_vm13 = vmor %vm1985_vm7, %vm1984_vm9  ;;  %vm7729_vm9 = vcmask 162816   ;;  %vm7730_vm7 = vsmask.f32 256  ;;  %v2036_v40 = vrot.slane %v2035_v58, 7 }
 0x4a7   :  { %vm1107_vm5 = vmor %vm1106_vm8, %vm1104_vm2  ;;  %v1981_v12 = vsel %vm7729_vm9, %v1980_v33, %v1979_v14  ;;  %vm7352_vm2 = vcmask 26626   ;;  %vm7733_vm8 = vsmask.f32 7946 }
 0x4a8   :  { %vm7134_vm1 = vmand %vm1118_vm12, %vm7730_vm7  ;;  %vm1115_vm7 = vcmask 64512  }
 0x4a9   :  { %vm2001_vm10 = vmand %vm1085_vm3, %vm7733_vm8  ;;  %vm7739_vm8 = vsmask.f32 7938  ;;  %v1116_v2 = vsel %vm1115_vm7, %v1114_v15, %v1113_v19  ;;  %v2025_v47 = vsel %vm1115_vm7, %v2024_v42, %v2023_v56  ;;  %v5194_v19 = vld [vmem:[#allocation3 + $0xd4] ss:$252 sps:$4 sm:$0xff]   ;;  %v5198_v15 = vld [vmem:[#allocation3 + $0x2cc] ss:$252 sps:$4 sm:$0xff]  }
 0x4aa   :  { %vm7162_vm3 = vmor %vm2001_vm10, %vm2000_vm6  ;;  %vm1138_vm6 = vcmask 1040416  }
 0x4ab   :  { %4124 = vmatpush1.bf16.xpose.msra.mxu0 %v5164_v10  ;;  %v5180_v10 = vld [vmem:[#allocation3 + $0xc0] ss:$252 sps:$4 sm:$0xff]  }
 0x4ac   :  { %v1987_v13 = vld [vmem:[#allocation2 + $0x35] sm:$0x7]  ;;  %v1108_v1 = vld [vmem:[#allocation2 + $0x39] sm:$0x7]  ;;  %4161 = vmatprep.subr.bf16.mxu0 %v5169_v52 }
 0x4ad   :  { %v1988_v18 = vsel %vm7117_vm13, %v1981_v12, %v1987_v13  ;;  %v1109_v6 = vsel %vm1107_vm5, %v1100_v4, %v1108_v1  ;;  %vm1120_vm13 = vmor %vm7387_vm0, %vm7134_vm1  ;;  %vm7734_vm5 = vsmask.f32 2304  ;;  %v5185_v52 = vld [vmem:[#allocation3 + $0x2bc] ss:$252 sps:$4 sm:$0xff]   ;;  %v5226_v12 = vld [vmem:[%s7278_s7] sm:$0xff]  }
 0x4ae   :  { %1989 = vst [vmem:[#allocation2 + $0x35] sm:$0x7] %v1988_v18  ;;  %1110 = vst [vmem:[#allocation2 + $0x39] sm:$0x7] %v1109_v6  ;;  %4855 = vmatpush3.bf16.msra.mxu1 %v5226_v12  ;;  %v5188_v13 = vld [vmem:[#allocation3 + $0xcc] ss:$252 sps:$4 sm:$0xff]  }
 0x4af   :  { %vm1122_vm9 = vmand %vm7352_vm2, %vm7734_vm5  ;;  %vm7740_vm5 = vcmask 1040480   ;;  %4856 = vmatprep.subr.bf16.mxu1 %v5338_v35  ;;  %v5186_v4 = vld [vmem:[#allocation3 + $0xc8] ss:$252 sps:$4 sm:$0xff]  }
 0x4b0   :  { %vm7166_vm1 = vmor %vm1122_vm9, %vm1120_vm13  ;;  %vm7744_vm13 = vsmask.f32 7946 }
 0x4b1   :  { %vm7172_vm2 = vmand %vm7740_vm5, %vm7739_vm8  ;;  %vm7745_vm8 = vsmask.f32 256 }
 0x4b2   :  { %4154 = vmatmul.mubr.bf16.vlgmr.msra.gmra.mrb[0].mxu0 %v2485_v11  ;;  %vm2012_vm10 = vmor %vm7690_vm4, %vm7172_vm2  ;;  %vm1135_vm2 = vcmask 31744   ;;  %v5192_v11 = vld [vmem:[#allocation3 + $0xd0] ss:$252 sps:$4 sm:$0xff]  }
 0x4b3   :  { %4162 = vmatpush1.bf16.xpose.msra.mxu0 %v5167_v9  ;;  %4193 = vmatprep.mubr.bf16.mxu0 %v2484_v17  ;;  %vm2013_vm9 = vmand %vm1105_vm14, %vm7744_vm13  ;;  %v1136_v39 = vsel %vm1135_vm2, %v1134_v54, %v1133_v30  ;;  %vm7746_vm14 = vsmask.f32 7938  ;;  %v2037_v59 = vsel %vm1135_vm2, %v2036_v40, %v2035_v58  ;;  %v5196_v17 = vld [vmem:[#allocation3 + $0x2c8] ss:$252 sps:$4 sm:$0xff]   ;;  %v5205_v30 = vld [vmem:[#allocation3 + $0xe0] ss:$252 sps:$4 sm:$0xff]  }
 0x4b4   :  { %4163 = vmatprep.subr.bf16.mxu0 %v5173_v0  ;;  %vm7196_vm11 = vmand %vm1118_vm12, %vm7746_vm14  ;;  %v5208_v54 = vld [vmem:[#allocation3 + $0x2d8] ss:$252 sps:$4 sm:$0xff]   ;;  %v5225_v40 = vld [vmem:[#allocation3 + $0x2f0] ss:$252 sps:$4 sm:$0xff]  }
 0x4b5   :  { %v2003_v25 = vld [vmem:[#allocation2 + $0x37] sm:$0x7]  ;;  %v1124_v24 = vld [vmem:[#allocation2 + $0x3b] sm:$0x7]  ;;  %vm7749_vm12 = vmmov %vm7744_vm13 }
 0x4b6   :  { %v2004_v21 = vsel %vm7162_vm3, %v1997_v23, %v2003_v25  ;;  %v1125_v26 = vsel %vm7166_vm1, %v1116_v2, %v1124_v24  ;;  %vm1139_vm3 = vmand %vm1138_vm6, %vm7745_vm8  ;;  %v5204_v2 = vld [vmem:[#allocation3 + $0x2d4] ss:$252 sps:$4 sm:$0xff]  }
 0x4b7   :  { %2005 = vst [vmem:[#allocation2 + $0x37] sm:$0x7] %v2004_v21  ;;  %1126 = vst [vmem:[#allocation2 + $0x3b] sm:$0x7] %v1125_v26  ;;  %v5202_v24 = vld [vmem:[#allocation3 + $0x2d0] ss:$252 sps:$4 sm:$0xff]  }
 0x4b8   :  { %vm2014_vm1 = vmor %vm2013_vm9, %vm2012_vm10  ;;  %v5207_v21 = vld [vmem:[#allocation3 + $0xe4] ss:$252 sps:$4 sm:$0xff]   ;;  %v5224_v58 = vld [vmem:[#allocation3 + $0xf8] ss:$252 sps:$4 sm:$0xff]  }
 0x4b9   :  { %vm1140_vm5 = vmor %vm7387_vm0, %vm1139_vm3  ;;  %vm5339_vm3 = vmmov 0  }
 0x4ba   :  { %vm2028_vm0 = vmor %vm7690_vm4, %vm7196_vm11  ;;  %4858 = vmatprep.mubr.msk.bf16.mxu1 %vm5339_vm3, %v5338_v35 }
 0x4bb   :  { %4164 = vmatpush1.bf16.xpose.msra.mxu0 %v5171_v31  ;;  %vm2029_vm10 = vmand %vm7750_vm15, %vm7749_vm12 }
 0x4bc   :  { %4201 = vmatprep.subr.bf16.mxu0 %v5176_v37  ;;  %vm2030_vm13 = vmor %vm2029_vm10, %vm2028_vm0  ;;  %v5210_v37 = vld [vmem:[#allocation3 + $0x2dc] ss:$252 sps:$4 sm:$0xff]  }
 0x4bd   :  { %vm7751_vm9 = vmmov %vm7746_vm14 }
 0x4be   :  { %v1141_v41 = vld [vmem:[#allocation2 + $0x3d] sm:$0x3]  ;;  %v2015_v43 = vld [vmem:[#allocation2 + $0x39] sm:$0x7]  ;;  %v2050_v53 = vld [vmem:[#allocation2 + $0x30] sm:$0xff] }
 0x4bf   :  { %v1142_v57 = vsel %vm1140_vm5, %v1136_v39, %v1141_v41  ;;  %v2016_v46 = vsel %vm2014_vm1, %v2009_v38, %v2015_v43  ;;  %v2496_v14 = vrot.slane %v2050_v53, %v5739_v29  ;;  %vm2039_vm8 = vmand %vm1138_vm6, %vm7751_vm9  ;;  %v2489_v6 = vcombine.high %v2050_v53, %v2050_v53  ;;  %v5213_v38 = vld [vmem:[#allocation3 + $0xec] ss:$252 sps:$4 sm:$0xff]   ;;  %v5216_v43 = vld [vmem:[#allocation3 + $0x2e4] ss:$252 sps:$4 sm:$0xff]  }
 0x4c0   :  { %1143 = vst [vmem:[#allocation2 + $0x3d] sm:$0x3] %v1142_v57  ;;  %2017 = vst [vmem:[#allocation2 + $0x39] sm:$0x7] %v2016_v46  ;;  %v5211_v39 = vld [vmem:[#allocation3 + $0xe8] ss:$252 sps:$4 sm:$0xff]  }
 0x4c1   :  { %v2504_v8 = vcombine.high %v2496_v14, %v2496_v14  ;;  %vm2040_vm7 = vmor %vm7690_vm4, %vm2039_vm8  ;;  %v2512_v1 = vrot.slane %v2496_v14, %v5739_v29  ;;  %v2503_v34 = vrot.slane %v2489_v6, %v5739_v29  ;;  %v5214_v46 = vld [vmem:[#allocation3 + $0x2e0] ss:$252 sps:$4 sm:$0xff]   ;;  %vm4629_vm4 = vcmask 254976  }
 0x4c2   :  { %4194 = vmatmul.mubr.bf16.vlgmr.msra.gmra.mrb[0].mxu0 %v2470_v32  ;;  %vm7752_vm6 = vcmask 261120  }
 0x4c3   :  { %4202 = vmatpush1.bf16.xpose.msra.mxu0 %v5174_v45  ;;  %4233 = vmatprep.mubr.bf16.mxu0 %v2488_v36  ;;  %v2526_v60 = vrot.slane %v2504_v8, %v5739_v29  ;;  %v2505_v9 = vcombine.high %v2503_v34, %v2503_v34  ;;  %v2534_v0 = vcombine.high %v2512_v1, %v2512_v1  ;;  %v5219_v45 = vld [vmem:[#allocation3 + $0xf4] ss:$252 sps:$4 sm:$0xff]  }
 0x4c4   :  { %4203 = vmatprep.subr.bf16.mxu0 %v5179_v61  ;;  %v2519_v22 = vrot.slane %v2503_v34, %v5739_v29 }
 0x4c5   :  { %v2536_v18 = vcombine.high %v2526_v60, %v2526_v60  ;;  %v2533_v16 = vrot.slane %v2505_v9, %v5739_v29 }
 0x4c6   :  { %v2535_v31 = vcombine.high %v2519_v22, %v2519_v22 }
 0x4c7   :  { %v2031_v49 = vld [vmem:[#allocation2 + $0x3b] sm:$0x7]  ;;  %v2537_v23 = vcombine.high %v2533_v16, %v2533_v16 }
 0x4c8   :  { %v2032_v51 = vsel %vm2030_vm13, %v2025_v47, %v2031_v49  ;;  %v5217_v47 = vld [vmem:[#allocation3 + $0xf0] ss:$252 sps:$4 sm:$0xff]  }
 0x4c9   :  { %2033 = vst [vmem:[#allocation2 + $0x3b] sm:$0x7] %v2032_v51 }
 0x4cb   :  { %4204 = vmatpush1.bf16.xpose.msra.mxu0 %v5177_v44  ;;  %v5223_v44 = vld [vmem:[#allocation3 + $0x2ec] ss:$252 sps:$4 sm:$0xff]  }
 0x4cc   :  { %4241 = vmatprep.subr.bf16.mxu0 %v5182_v55  ;;  %v5221_v55 = vld [vmem:[#allocation3 + $0x2e8] ss:$252 sps:$4 sm:$0xff]  }
 0x4d0   :  { %v2041_v33 = vld [vmem:[#allocation2 + $0x3d] sm:$0x3] }
 0x4d1   :  { %v2042_v63 = vsel %vm2040_vm7, %v2037_v59, %v2041_v33 }
 0x4d2   :  { %2043 = vst [vmem:[#allocation2 + $0x3d] sm:$0x3] %v2042_v63  ;;  %4234 = vmatmul.mubr.bf16.vlgmr.msra.gmra.mrb[0].mxu0 %v2486_v3 }
 0x4d3   :  { %4242 = vmatpush1.bf16.xpose.msra.mxu0 %v5180_v10  ;;  %4273 = vmatprep.mubr.bf16.mxu0 %v2526_v60  ;;  %v5227_v10 = vld [vmem:[%s7278_s7 + $0x8] sm:$0xff]   ;;  %s5250_s7 = scalar_lea.vmem %s4640_s12, 32 }
 0x4d4   :  { %4243 = vmatprep.subr.bf16.mxu0 %v5185_v52  ;;  %4857 = vmatpush3.bf16.msra.mxu1 %v5227_v10  ;;  %p5251_p8 = scmp.ne.s32.totalorder %s4640_s12, %s5250_s7  ;;  %p5256_p10 = scmp.lt.s32.totalorder %s5250_s7, %s5250_s7 }
 0x4d6   :  { %p5257_p11 = por %p5256_p10, %p5255_p9 }
 0x4d8   :  { %p5258_p12 = pnand %p5257_p11, %p5251_p8 }
 0x4d9   :  { %v2051_v25 = vld [vmem:[#allocation2 + $0x38] sm:$0x7f] }
 0x4da   :  { %v2545_v26 = vrot.slane %v2051_v25, %v5739_v29  ;;  %v2538_v57 = vcombine.high %v2051_v25, %v2051_v25 }
 0x4db   :  { %4244 = vmatpush1.bf16.xpose.msra.mxu0 %v5183_v48 }
 0x4dc   :  { %4281 = vmatprep.subr.bf16.mxu0 %v5188_v13  ;;  %v2553_v28 = vcombine.high %v2545_v26, %v2545_v26  ;;  %v2561_v41 = vrot.slane %v2545_v26, %v5739_v29  ;;  %v2552_v32 = vrot.slane %v2538_v57, %v5739_v29 }
 0x4de   :  { %v2575_v50 = vrot.slane %v2553_v28, %v5739_v29  ;;  %v2554_v53 = vcombine.high %v2552_v32, %v2552_v32  ;;  %v2583_v49 = vcombine.high %v2561_v41, %v2561_v41  ;;  %v2568_v14 = vrot.slane %v2552_v32, %v5739_v29 }
 0x4e0   :  { %v2585_v7 = vcombine.high %v2575_v50, %v2575_v50  ;;  %v2582_v51 = vrot.slane %v2554_v53, %v5739_v29  ;;  %v2584_v8 = vcombine.high %v2568_v14, %v2568_v14  ;;  %v4709_v29 = vld [vmem:[%s7277_s6] ss:$0 sm:$0xff] }
 0x4e2   :  { %4274 = vmatmul.mubr.bf16.vlgmr.msra.gmra.mrb[0].mxu0 %v2512_v1 }
 0x4e3   :  { %4282 = vmatpush1.bf16.xpose.msra.mxu0 %v5186_v4  ;;  %4313 = vmatprep.mubr.bf16.mxu0 %v2536_v18 }
 0x4e4   :  { %4283 = vmatprep.subr.bf16.mxu0 %v5191_v5 }
 0x4eb   :  { %4284 = vmatpush1.bf16.xpose.msra.mxu0 %v5189_v62 }
 0x4ec   :  { %4321 = vmatprep.subr.bf16.mxu0 %v5194_v19 }
 0x4f2   :  { %4314 = vmatmul.mubr.bf16.vlgmr.msra.gmra.mrb[0].mxu0 %v2534_v0 }
 0x4f3   :  { %4322 = vmatpush1.bf16.xpose.msra.mxu0 %v5192_v11  ;;  %4353 = vmatprep.mubr.bf16.mxu0 %v2533_v16 }
 0x4f4   :  { %4323 = vmatprep.subr.bf16.mxu0 %v5198_v15 }
 0x4fb   :  { %4324 = vmatpush1.bf16.xpose.msra.mxu0 %v5196_v17 }
 0x4fc   :  { %4361 = vmatprep.subr.bf16.mxu0 %v5201_v20 }
 0x502   :  { %4354 = vmatmul.mubr.bf16.vlgmr.msra.gmra.mrb[0].mxu0 %v2519_v22 }
 0x503   :  { %4362 = vmatpush1.bf16.xpose.msra.mxu0 %v5199_v27  ;;  %4393 = vmatprep.mubr.bf16.mxu0 %v2537_v23 }
 0x504   :  { %4363 = vmatprep.subr.bf16.mxu0 %v5204_v2 }
 0x50b   :  { %4364 = vmatpush1.bf16.xpose.msra.mxu0 %v5202_v24 }
 0x50c   :  { %4401 = vmatprep.subr.bf16.mxu0 %v5207_v21 }
 0x512   :  { %4394 = vmatmul.mubr.bf16.vlgmr.msra.gmra.mrb[0].mxu0 %v2535_v31 }
 0x513   :  { %4402 = vmatpush1.bf16.xpose.msra.mxu0 %v5205_v30  ;;  %4433 = vmatprep.mubr.bf16.mxu0 %v2575_v50 }
 0x514   :  { %4403 = vmatprep.subr.bf16.mxu0 %v5210_v37 }
 0x51b   :  { %4404 = vmatpush1.bf16.xpose.msra.mxu0 %v5208_v54 }
 0x51c   :  { %4441 = vmatprep.subr.bf16.mxu0 %v5213_v38 }
 0x522   :  { %4434 = vmatmul.mubr.bf16.vlgmr.msra.gmra.mrb[0].mxu0 %v2561_v41 }
 0x523   :  { %4442 = vmatpush1.bf16.xpose.msra.mxu0 %v5211_v39  ;;  %4473 = vmatprep.mubr.bf16.mxu0 %v2585_v7 }
 0x524   :  { %4443 = vmatprep.subr.bf16.mxu0 %v5216_v43 }
 0x529   :  { %v3835_v56 = vpop.f32.mrb[16].mxu1 }
 0x52a   :  { %v3837_v61 = vpop.f32.mrb[17].mxu1  ;;  %v4862_v59 = vadd.f32 %v4709_v29, %v3835_v56 }
 0x52b   :  { %v3838_v36 = vpop.f32.mrb[18].mxu1  ;;  %4444 = vmatpush1.bf16.xpose.msra.mxu0 %v5214_v46 }
 0x52c   :  { %v3839_v42 = vpop.f32.mrb[19].mxu1  ;;  %4481 = vmatprep.subr.bf16.mxu0 %v5219_v45 }
 0x532   :  { %4474 = vmatmul.mubr.bf16.vlgmr.msra.gmra.mrb[0].mxu0 %v2583_v49 }
 0x533   :  { %4482 = vmatpush1.bf16.xpose.msra.mxu0 %v5217_v47  ;;  %4513 = vmatprep.mubr.bf16.mxu0 %v2582_v51 }
 0x534   :  { %4483 = vmatprep.subr.bf16.mxu0 %v5223_v44 }
 0x53b   :  { %4484 = vmatpush1.bf16.xpose.msra.mxu0 %v5221_v55 }
 0x53c   :  { %4846 = vmatprep.subr.bf16.mxu0 %v5338_v35 }
 0x542   :  { %4514 = vmatmul.mubr.bf16.vlgmr.msra.gmra.mrb[0].mxu0 %v2568_v14 }
 0x543   :  { %4847 = vmatpush3.bf16.xpose.msra.mxu0 %v5224_v58  ;;  %4850 = vmatprep.mubr.msk.bf16.mxu0 %vm5339_vm3, %v5338_v35 }
 0x544   :  { %4848 = vmatprep.subr.bf16.mxu0 %v5338_v35 }
 0x54b   :  { %4849 = vmatpush3.bf16.xpose.msra.mxu0 %v5225_v40 }
 0x552   :  { %4851 = vmatmul.mubr.bf16.vlgmr.msra.gmra.mrb[0].mxu0 %v2584_v8 }
 0x625   :  { %v4555_v33 = vpop.f32.mrb[0].mxu0 }
 0x626   :  { %v4863_v3 = vadd.f32 %v4862_v59, %v4555_v33  ;;  %v4852_v52 = vpop.f32.mrb[1].mxu0 }
 0x627   :  { %v4558_v63 = vpop.f32.mrb[2].mxu0 }
 0x628   :  { %v4561_v35 = vpack.c.bf16 %v4863_v3, %v4863_v3  ;;  %v4853_v60 = vpop.f32.mrb[3].mxu0  ;;  %4630 = vst.msk [vmem:[#allocation6] sm:$0x3] %vm4629_vm4, %v4863_v3 }
 0x62a   :  { %4859 = vmatmul.mubr.msk.bf16.vlgmr.msra.gmra.mrb[20].mxu1 %vm7752_vm6, %v4561_v35 }
 0x62b   :  { %5261 = shalt.err (!%p5258_p12)
}
 0x62c   :  { %s5262_s14 = scalar_lea.hbm %s7280_s9, 32 }
 0x62d   :  { %p5263_p13 = scmp.ne.s32.totalorder %s7280_s9, %s5262_s14  ;;  %p5266_p0 = scmp.lt.u32.totalorder %s5262_s14, %s7280_s9 }
 0x62f   :  { %p5268_p1 = pnand %p5266_p0, %p5263_p13 }
 0x631   :  { %5271 = shalt.err (!%p5268_p1)
}
 0x632   :  { %4642 = dma.vmem_to_hbm [thread:$0]  %s4640_s12, 32, %s7280_s9, [#allocation5]   ;;  %v4836_v12 = vld [vmem:[%s7279_s8] ss:$0 sm:$0xff]  ;;  %vm4631_vm1 = vcmask 25600  }
 0x633   :  { %s5341_s21 = smov [#allocation7]  }
 0x634   :  { %s4649_s3 = sshll.u32 %s5341_s21, 4  ;;  %s4650_s3 = int_to_ptr.vmem [resolvable:$true] %s4649_s3 }
 0x635   :  { %s5272_s22 = scalar_lea.vmem %s4650_s3, 32  ;;  %p5277_p3 = scmp.lt.s32.totalorder %s4650_s3, %s4650_s3 }
 0x636   :  { %p5273_p2 = scmp.ne.s32.totalorder %s4650_s3, %s5272_s22  ;;  %p5278_p4 = scmp.lt.s32.totalorder %s5272_s22, %s5272_s22 }
 0x638   :  { %p5279_p5 = por %p5278_p4, %p5277_p3 }
 0x63a   :  { %p5280_p6 = pnand %p5279_p5, %p5273_p2 }
 0x6fd   :  { %v4623_v48 = vpop.f32.mrb[20].mxu1 }
 0x6fe   :  { %v4624_v13 = vadd.f32 %v4836_v12, %v4623_v48  ;;  %v4860_v4 = vpop.f32.mrb[21].mxu1 }
 0x6ff   :  { %v4626_v1 = vpop.f32.mrb[22].mxu1 }
 0x700   :  { %v4861_v5 = vpop.f32.mrb[23].mxu1  ;;  %4632 = vst.msk [vmem:[#allocation7] sm:$0x3] %vm4631_vm1, %v4624_v13 }
 0x701   :  { %5283 = shalt.err (!%p5280_p6)
}
 0x702   :  { %s5284_s8 = scalar_lea.hbm %s7281_s10, 32 }
 0x703   :  { %p5285_p7 = scmp.ne.s32.totalorder %s7281_s10, %s5284_s8  ;;  %p5288_p8 = scmp.lt.u32.totalorder %s5284_s8, %s7281_s10 }
 0x705   :  { %p5290_p9 = pnand %p5288_p8, %p5285_p7 }
 0x707   :  { %5293 = shalt.err (!%p5290_p9)
}
 0x708   :  { %4652 = dma.vmem_to_hbm [thread:$0]  %s4650_s3, 32, %s7281_s10, [#allocation8]  }
 0x709   :  { %5296 = dma.done.wait [#allocation5], 32  }
 0x70a   :  { %5297 = vsyncadd [#allocation5], 4294967264 }
 0x70b   :  { %5298 = dma.done.wait [#allocation8], 32  }
 0x70c   :  { %5299 = vsyncadd [#allocation8], 4294967264 }
 0x70d   :  { %4659 = vsyncpa [#allocation4], 1 }
 0x70e   :  { %4660 = vsyncpa [#allocation5], 1 }
 0x70f   :  { %4661 = vsyncpa [#allocation8], 1 }

</bundles_post_ra>
